<compile_context>
chip_gen: v6e
topology: v6e:2x2x1
jax: 0.10.0
libtpu: 0.0.40
codegen_flags: <defaults>
</compile_context>

<pallas_src>
import jax
import jax.numpy as jnp
from jax import lax
from jax.experimental import pallas as pl
from jax.experimental.pallas import tpu as pltpu

LATENT = 256
N_PRIM = 10
PN_LAYERS = (3, 64, 128, 128, 256)
BN_EPS = 1e-5
# head order matches self.decoders: Trans(3), Rota(4), Size(3), Shape(2), Deform(2), Prob(1)
HEAD_DIMS = (3 * N_PRIM, 4 * N_PRIM, 3 * N_PRIM, 2 * N_PRIM, 2 * N_PRIM, N_PRIM)
HEAD_OFFS = tuple(int(sum(HEAD_DIMS[:i])) for i in range(len(HEAD_DIMS)))
HEAD_TOTAL = int(sum(HEAD_DIMS))                     # 150
HPAD = ((HEAD_TOTAL + 127) // 128) * 128             # 256: lane-dense decoder output slab


# ----------------------------- the fused SegNets kernel -----------------------------

def _segnets_kernel(x_ref, w1, ss1, w2, ss2, w3, ss3, w4, ss4,
                    enc_w, enc_ss, w_all, b_all, gmat, aux,
                    latent_ref, heads_ref, feat_acc):
    t = pl.program_id(1)
    nt = pl.num_programs(1)

    # ---- per-point MLP on this tile of points ----
    x = x_ref[0]                                            # (TN, 3) f32
    w1v = w1[...]
    # K=3 first layer as VPU rank-1 multiply-adds (keeps the MXU free of a wasteful K=3 push)
    h = (x[:, 0:1] * w1v[0:1, :]
         + x[:, 1:2] * w1v[1:2, :]
         + x[:, 2:3] * w1v[2:3, :])                         # (TN, 64)
    h = jnp.maximum(h * ss1[0:1, :] + ss1[1:2, :], 0.0)     # folded conv-bias + eval-mode BN, ReLU

    def layer(h, w_ref, ss_ref):
        y = jnp.dot(h.astype(w_ref.dtype), w_ref[...],      # bf16 operands on v6e/v7x, f32 acc
                    preferred_element_type=jnp.float32)
        return jnp.maximum(y * ss_ref[0:1, :] + ss_ref[1:2, :], 0.0)

    h = layer(h, w2, ss2)
    h = layer(h, w3, ss3)
    h = layer(h, w4, ss4)                                   # (TN, 256)
    tile_max = jnp.max(h, axis=0, keepdims=True)            # (1, 256) max-pool of this tile

    @pl.when(t == 0)
    def _():
        feat_acc[...] = tile_max

    @pl.when(t > 0)
    def _():
        feat_acc[...] = jnp.maximum(feat_acc[...], tile_max)

    # ---- post-pool stage: encoder head + all six decoder heads, once per batch element ----
    @pl.when(t == nt - 1)
    def _():
        feat = feat_acc[...]                                # (1, 256), never leaves VMEM
        lt = jnp.dot(feat, enc_w[...], preferred_element_type=jnp.float32)
        lt = jnp.maximum(lt * enc_ss[0:1, :] + enc_ss[1:2, :], 0.0)
        latent_ref[0] = lt                                  # lane-dense (1, 256) store

        # one lane-dense matmul for all six heads (cols 0..149 real, 150..255 zero pad)
        z = jnp.dot(lt, w_all[...], preferred_element_type=jnp.float32) + b_all[...]
        th = jnp.tanh(z)                                    # EUP
        sg = pl.reciprocal(1.0 + jnp.exp(-z), approx=True)  # sigmoid via EUP exp + approx recip
        # per-quaternion L2 normalization: block-diagonal group-sum matmul + rsqrt (EUP)
        ssq = jnp.dot(z * z, gmat[...], preferred_element_type=jnp.float32)
        qn = z * lax.rsqrt(jnp.maximum(ssq, 1e-12))
        a = aux[...]                                        # (5, HPAD): masks / scale / shift
        act = a[0:1] * th + a[1:2] * sg + a[2:3] * qn
        heads_ref[0] = act * a[3:4] + a[4:5]                # lane-dense (1, HPAD) store


# ----------------------------- JAX wrapper -----------------------------

def _pick_point_tile(n, cap=1024):
    """Largest point-tile <= cap dividing N (whole axis if N is small / awkward)."""
    if n <= cap:
        return n
    for t in (1024, 512, 256, 128, 64, 32, 16, 8):
        if t <= cap and n % t == 0:
            return t
    return n


def seg_nets_forward(x, p):
    B, N, cin = x.shape
    assert cin == PN_LAYERS[0]
    TN = _pick_point_tile(N)
    T = N // TN

    w1, w2, w3, w4 = p["conv_ws"]
    ss1, ss2, ss3, ss4 = p["conv_ss"]
    weight_args = [w1, ss1, w2, ss2, w3, ss3, w4, ss4,
                   p["enc_w"], p["enc_ss"], p["w_all"], p["b_all"], p["gmat"], p["aux"]]

    in_specs = [pl.BlockSpec((1, TN, cin), lambda b, t: (b, t, 0))]
    # all weights / folded-BN vectors stay VMEM-resident via constant-index BlockSpecs (~230 KB)
    in_specs += [pl.BlockSpec(w.shape, lambda b, t: (0, 0)) for w in weight_args]

    latent3, slab3 = pl.pallas_call(
        _segnets_kernel,
        out_shape=(jax.ShapeDtypeStruct((B, 1, LATENT), jnp.float32),
                   jax.ShapeDtypeStruct((B, 1, HPAD), jnp.float32)),
        grid=(B, T),
        in_specs=in_specs,
        out_specs=(pl.BlockSpec((1, 1, LATENT), lambda b, t: (b, 0, 0)),
                   pl.BlockSpec((1, 1, HPAD), lambda b, t: (b, 0, 0))),
        scratch_shapes=[pltpu.VMEM((1, LATENT), jnp.float32)],
        compiler_params=pltpu.CompilerParams(
            dimension_semantics=("parallel", "arbitrary")),
    )(x, *weight_args)

    latent = latent3[:, 0, :]                               # (B, 256)
    slab = slab3[:, 0, :]                                   # (B, HPAD)
    trans, rota, size, shape, deform, prob = (
        slab[:, off:off + d] for off, d in zip(HEAD_OFFS, HEAD_DIMS))
    prims = (
        trans.reshape(B, N_PRIM, 3),     # TransNN:  tanh * 0.51
        rota.reshape(B, N_PRIM, 4),      # RotaNN:   L2-normalized quaternions
        size.reshape(B, N_PRIM, 3),      # SizeNN:   sigmoid * 0.5 + 0.03
        shape.reshape(B, N_PRIM, 2),     # ShapeNN:  sigmoid * 1.1 + 0.4
        deform.reshape(B, N_PRIM, 2),    # DeformNN: tanh * 0.9
        prob,                            # ProbNN:   sigmoid, (B, N_PRIM)
    )
    return latent, prims                 # PrimitiveParams container -> plain tuple


# ----------------------------- deterministic parameter construction -----------------------------

def _matmul_dtype():
    """bf16 MXU operands on v6e/v7x (≈2x f32 throughput); f32 elsewhere (e.g. v5e)."""
    try:
        kind = jax.devices()[0].device_kind.lower()
    except Exception:
        return jnp.float32
    return jnp.bfloat16 if ("v6" in kind or "v7" in kind) else jnp.float32


def init_params(key, matmul_dtype=jnp.float32):
    kit = iter(jax.random.split(key, 128))

    def nrm(shape, scale=0.05):
        return scale * jax.random.normal(next(kit), shape, dtype=jnp.float32)

    def bn_scale_shift(co, lin_bias):
        gamma = 1.0 + nrm((co,))
        beta = nrm((co,))
        rmean = nrm((co,))
        rvar = jax.random.uniform(next(kit), (co,), jnp.float32, 0.5, 1.5)
        scale = gamma / jnp.sqrt(rvar + BN_EPS)
        shift = (lin_bias - rmean) * scale + beta
        return jnp.stack([scale, shift], axis=0)            # (2, co), always f32

    conv_ws, conv_ss = [], []
    for li, (ci, co) in enumerate(zip(PN_LAYERS[:-1], PN_LAYERS[1:])):
        w = nrm((ci, co), 1.0 / float(ci) ** 0.5)           # weights stored as (Cin, Cout)
        b = nrm((co,))
        if li > 0:                                          # layer 1 stays f32 (runs on the VPU)
            w = w.astype(matmul_dtype)
        conv_ws.append(w)
        conv_ss.append(bn_scale_shift(co, b))

    enc_w = nrm((LATENT, LATENT), 1.0 / float(LATENT) ** 0.5)
    enc_b = nrm((LATENT,))
    enc_ss = bn_scale_shift(LATENT, enc_b)

    # fused decoder heads: single lane-dense (256, HPAD) weight / (1, HPAD) bias
    w_all = jnp.zeros((LATENT, HPAD), jnp.float32)
    b_all = jnp.zeros((1, HPAD), jnp.float32)
    for d, off in zip(HEAD_DIMS, HEAD_OFFS):
        w = nrm((LATENT, d), 1.0 / float(LATENT) ** 0.5)
        b = nrm((1, d))
        w_all = w_all.at[:, off:off + d].set(w)
        b_all = b_all.at[:, off:off + d].set(b)

    lane = jnp.arange(HPAD)

    def seg(off, d):
        return ((lane >= off) & (lane < off + d)).astype(jnp.float32)

    tr, ro, sz, sh, de, pr = (seg(o, d) for o, d in zip(HEAD_OFFS, HEAD_DIMS))
    tanh_mask = tr + de
    sig_mask = sz + sh + pr
    quat_mask = ro
    scale = 0.51 * tr + 1.0 * ro + 0.5 * sz + 1.1 * sh + 0.9 * de + 1.0 * pr
    shift = 0.03 * sz + 0.4 * sh
    aux = jnp.stack([tanh_mask, sig_mask, quat_mask, scale, shift], axis=0)   # (5, HPAD)

    # block-diagonal group-sum matrix (4-lane quaternion groups inside the rota segment)
    in_rota = (lane >= HEAD_OFFS[1]) & (lane < HEAD_OFFS[1] + HEAD_DIMS[1])
    grp = (lane - HEAD_OFFS[1]) // 4
    gmat = (in_rota[:, None] & in_rota[None, :]
            & (grp[:, None] == grp[None, :])).astype(jnp.float32)             # (HPAD, HPAD)

    return dict(conv_ws=conv_ws, conv_ss=conv_ss, enc_w=enc_w, enc_ss=enc_ss,
                w_all=w_all, b_all=b_all, gmat=gmat, aux=aux)


if __name__ == "__main__":
    key = jax.random.PRNGKey(0)
    B, N = 2, 256
    x = jax.random.normal(jax.random.fold_in(key, 1), (B, N, 3), dtype=jnp.float32)
    params = init_params(jax.random.fold_in(key, 2), matmul_dtype=_matmul_dtype())

    latent, prims = jax.jit(seg_nets_forward)(x, params)
    jax.block_until_ready((latent, prims))

    assert latent.shape == (B, LATENT)
    assert prims[0].shape == (B, N_PRIM, 3)
    assert prims[1].shape == (B, N_PRIM, 4)
    assert prims[2].shape == (B, N_PRIM, 3)
    assert prims[3].shape == (B, N_PRIM, 2)
    assert prims[4].shape == (B, N_PRIM, 2)
    assert prims[5].shape == (B, N_PRIM)
    assert bool(jnp.all(jnp.isfinite(latent)))
    # quaternions are unit-norm, sigmoid heads within their ranges
    assert bool(jnp.allclose(jnp.linalg.norm(prims[1], axis=-1), 1.0, atol=1e-3))
    assert bool(jnp.all((prims[5] > 0.0) & (prims[5] < 1.0)))
    print("KERNEL_OK")
</pallas_src>

<mosaic_0001>
module attributes {stable_mosaic.version = 11 : i64} {
  func.func @_segnets_kernel(%arg0: i32, %arg1: i32, %arg2: memref<1x256x3xf32, #tpu.memory_space<vmem>>, %arg3: memref<3x64xf32, #tpu.memory_space<vmem>>, %arg4: memref<2x64xf32, #tpu.memory_space<vmem>>, %arg5: memref<64x128xf32, #tpu.memory_space<vmem>>, %arg6: memref<2x128xf32, #tpu.memory_space<vmem>>, %arg7: memref<128x128xf32, #tpu.memory_space<vmem>>, %arg8: memref<2x128xf32, #tpu.memory_space<vmem>>, %arg9: memref<128x256xf32, #tpu.memory_space<vmem>>, %arg10: memref<2x256xf32, #tpu.memory_space<vmem>>, %arg11: memref<256x256xf32, #tpu.memory_space<vmem>>, %arg12: memref<2x256xf32, #tpu.memory_space<vmem>>, %arg13: memref<256x256xf32, #tpu.memory_space<vmem>>, %arg14: memref<1x256xf32, #tpu.memory_space<vmem>>, %arg15: memref<256x256xf32, #tpu.memory_space<vmem>>, %arg16: memref<5x256xf32, #tpu.memory_space<vmem>>, %arg17: memref<1x1x256xf32, #tpu.memory_space<vmem>>, %arg18: memref<1x1x256xf32, #tpu.memory_space<vmem>>, %arg19: memref<1x256xf32, #tpu.memory_space<vmem>>) attributes {dimension_semantics = [#tpu.dimension_semantics<parallel>, #tpu.dimension_semantics<arbitrary>], iteration_bounds = array<i64: 2, 1>, scalar_prefetch = 0 : i64, scratch_operands = 1 : i64, tpu.core_type = #tpu.core_type<tc>, window_params = [{transform_indices = @transform_0, window_bounds = array<i64: 1, 256, 3>}, {pipeline_mode = #tpu.pipeline_mode<synchronous>, transform_indices = @transform_1, window_bounds = array<i64: 3, 64>}, {pipeline_mode = #tpu.pipeline_mode<synchronous>, transform_indices = @transform_2, window_bounds = array<i64: 2, 64>}, {pipeline_mode = #tpu.pipeline_mode<synchronous>, transform_indices = @transform_3, window_bounds = array<i64: 64, 128>}, {pipeline_mode = #tpu.pipeline_mode<synchronous>, transform_indices = @transform_4, window_bounds = array<i64: 2, 128>}, {pipeline_mode = #tpu.pipeline_mode<synchronous>, transform_indices = @transform_5, window_bounds = array<i64: 128, 128>}, {pipeline_mode = #tpu.pipeline_mode<synchronous>, transform_indices = @transform_6, window_bounds = array<i64: 2, 128>}, {pipeline_mode = #tpu.pipeline_mode<synchronous>, transform_indices = @transform_7, window_bounds = array<i64: 128, 256>}, {pipeline_mode = #tpu.pipeline_mode<synchronous>, transform_indices = @transform_8, window_bounds = array<i64: 2, 256>}, {pipeline_mode = #tpu.pipeline_mode<synchronous>, transform_indices = @transform_9, window_bounds = array<i64: 256, 256>}, {pipeline_mode = #tpu.pipeline_mode<synchronous>, transform_indices = @transform_10, window_bounds = array<i64: 2, 256>}, {pipeline_mode = #tpu.pipeline_mode<synchronous>, transform_indices = @transform_11, window_bounds = array<i64: 256, 256>}, {pipeline_mode = #tpu.pipeline_mode<synchronous>, transform_indices = @transform_12, window_bounds = array<i64: 1, 256>}, {pipeline_mode = #tpu.pipeline_mode<synchronous>, transform_indices = @transform_13, window_bounds = array<i64: 256, 256>}, {pipeline_mode = #tpu.pipeline_mode<synchronous>, transform_indices = @transform_14, window_bounds = array<i64: 5, 256>}, {transform_indices = @transform_15, window_bounds = array<i64: 1, 1, 256>}, {transform_indices = @transform_16, window_bounds = array<i64: 1, 1, 256>}]} {
    %c0 = arith.constant 0 : index
    %c0_0 = arith.constant 0 : index
    %c0_1 = arith.constant 0 : index
    %0 = vector.load %arg2[%c0, %c0_0, %c0_1] : memref<1x256x3xf32, #tpu.memory_space<vmem>>, vector<1x256x3xf32>
    %1 = vector.shape_cast %0 : vector<1x256x3xf32> to vector<256x3xf32>
    %c0_2 = arith.constant 0 : index
    %c0_3 = arith.constant 0 : index
    %2 = vector.load %arg3[%c0_2, %c0_3] : memref<3x64xf32, #tpu.memory_space<vmem>>, vector<3x64xf32>
    %3 = vector.extract_strided_slice %1 {offsets = [0, 0], sizes = [256, 1], strides = [1, 1]} : vector<256x3xf32> to vector<256x1xf32>
    %4 = vector.extract_strided_slice %2 {offsets = [0, 0], sizes = [1, 64], strides = [1, 1]} : vector<3x64xf32> to vector<1x64xf32>
    %5 = vector.broadcast %3 : vector<256x1xf32> to vector<256x64xf32>
    %6 = vector.broadcast %4 : vector<1x64xf32> to vector<256x64xf32>
    %7 = arith.mulf %5, %6 : vector<256x64xf32>
    %8 = vector.extract_strided_slice %1 {offsets = [0, 1], sizes = [256, 1], strides = [1, 1]} : vector<256x3xf32> to vector<256x1xf32>
    %9 = vector.extract_strided_slice %2 {offsets = [1, 0], sizes = [1, 64], strides = [1, 1]} : vector<3x64xf32> to vector<1x64xf32>
    %10 = vector.broadcast %8 : vector<256x1xf32> to vector<256x64xf32>
    %11 = vector.broadcast %9 : vector<1x64xf32> to vector<256x64xf32>
    %12 = arith.mulf %10, %11 : vector<256x64xf32>
    %13 = arith.addf %7, %12 : vector<256x64xf32>
    %14 = vector.extract_strided_slice %1 {offsets = [0, 2], sizes = [256, 1], strides = [1, 1]} : vector<256x3xf32> to vector<256x1xf32>
    %15 = vector.extract_strided_slice %2 {offsets = [2, 0], sizes = [1, 64], strides = [1, 1]} : vector<3x64xf32> to vector<1x64xf32>
    %16 = vector.broadcast %14 : vector<256x1xf32> to vector<256x64xf32>
    %17 = vector.broadcast %15 : vector<1x64xf32> to vector<256x64xf32>
    %18 = arith.mulf %16, %17 : vector<256x64xf32>
    %19 = arith.addf %13, %18 : vector<256x64xf32>
    %c0_4 = arith.constant 0 : index
    %c0_5 = arith.constant 0 : index
    %20 = vector.load %arg4[%c0_4, %c0_5] : memref<2x64xf32, #tpu.memory_space<vmem>>, vector<1x64xf32>
    %21 = vector.broadcast %20 : vector<1x64xf32> to vector<256x64xf32>
    %22 = arith.mulf %19, %21 : vector<256x64xf32>
    %c1 = arith.constant 1 : index
    %c0_6 = arith.constant 0 : index
    %23 = vector.load %arg4[%c1, %c0_6] : memref<2x64xf32, #tpu.memory_space<vmem>>, vector<1x64xf32>
    %24 = vector.broadcast %23 : vector<1x64xf32> to vector<256x64xf32>
    %25 = arith.addf %22, %24 : vector<256x64xf32>
    %cst = arith.constant 0.000000e+00 : f32
    %26 = vector.broadcast %cst : f32 to vector<256x64xf32>
    %27 = arith.maximumf %25, %26 : vector<256x64xf32>
    %c0_7 = arith.constant 0 : index
    %c0_8 = arith.constant 0 : index
    %28 = vector.load %arg5[%c0_7, %c0_8] : memref<64x128xf32, #tpu.memory_space<vmem>>, vector<64x128xf32>
    %cst_9 = arith.constant dense<0.000000e+00> : vector<256x128xf32>
    %29 = tpu.matmul %27, %28, %cst_9 {dimension_numbers = #tpu.dot_dimension_numbers<[1], [0], [0], [1], [0, 0, 1, 1], [], []>} : vector<256x64xf32>, vector<64x128xf32>, vector<256x128xf32> -> vector<256x128xf32>
    %c0_10 = arith.constant 0 : index
    %c0_11 = arith.constant 0 : index
    %30 = vector.load %arg6[%c0_10, %c0_11] : memref<2x128xf32, #tpu.memory_space<vmem>>, vector<1x128xf32>
    %31 = vector.broadcast %30 : vector<1x128xf32> to vector<256x128xf32>
    %32 = arith.mulf %29, %31 : vector<256x128xf32>
    %c1_12 = arith.constant 1 : index
    %c0_13 = arith.constant 0 : index
    %33 = vector.load %arg6[%c1_12, %c0_13] : memref<2x128xf32, #tpu.memory_space<vmem>>, vector<1x128xf32>
    %34 = vector.broadcast %33 : vector<1x128xf32> to vector<256x128xf32>
    %35 = arith.addf %32, %34 : vector<256x128xf32>
    %cst_14 = arith.constant 0.000000e+00 : f32
    %36 = vector.broadcast %cst_14 : f32 to vector<256x128xf32>
    %37 = arith.maximumf %35, %36 : vector<256x128xf32>
    %c0_15 = arith.constant 0 : index
    %c0_16 = arith.constant 0 : index
    %38 = vector.load %arg7[%c0_15, %c0_16] : memref<128x128xf32, #tpu.memory_space<vmem>>, vector<128x128xf32>
    %cst_17 = arith.constant dense<0.000000e+00> : vector<256x128xf32>
    %39 = tpu.matmul %37, %38, %cst_17 {dimension_numbers = #tpu.dot_dimension_numbers<[1], [0], [0], [1], [0, 0, 1, 1], [], []>} : vector<256x128xf32>, vector<128x128xf32>, vector<256x128xf32> -> vector<256x128xf32>
    %c0_18 = arith.constant 0 : index
    %c0_19 = arith.constant 0 : index
    %40 = vector.load %arg8[%c0_18, %c0_19] : memref<2x128xf32, #tpu.memory_space<vmem>>, vector<1x128xf32>
    %41 = vector.broadcast %40 : vector<1x128xf32> to vector<256x128xf32>
    %42 = arith.mulf %39, %41 : vector<256x128xf32>
    %c1_20 = arith.constant 1 : index
    %c0_21 = arith.constant 0 : index
    %43 = vector.load %arg8[%c1_20, %c0_21] : memref<2x128xf32, #tpu.memory_space<vmem>>, vector<1x128xf32>
    %44 = vector.broadcast %43 : vector<1x128xf32> to vector<256x128xf32>
    %45 = arith.addf %42, %44 : vector<256x128xf32>
    %cst_22 = arith.constant 0.000000e+00 : f32
    %46 = vector.broadcast %cst_22 : f32 to vector<256x128xf32>
    %47 = arith.maximumf %45, %46 : vector<256x128xf32>
    %c0_23 = arith.constant 0 : index
    %c0_24 = arith.constant 0 : index
    %48 = vector.load %arg9[%c0_23, %c0_24] : memref<128x256xf32, #tpu.memory_space<vmem>>, vector<128x256xf32>
    %cst_25 = arith.constant dense<0.000000e+00> : vector<256x256xf32>
    %49 = tpu.matmul %47, %48, %cst_25 {dimension_numbers = #tpu.dot_dimension_numbers<[1], [0], [0], [1], [0, 0, 1, 1], [], []>} : vector<256x128xf32>, vector<128x256xf32>, vector<256x256xf32> -> vector<256x256xf32>
    %c0_26 = arith.constant 0 : index
    %c0_27 = arith.constant 0 : index
    %50 = vector.load %arg10[%c0_26, %c0_27] : memref<2x256xf32, #tpu.memory_space<vmem>>, vector<1x256xf32>
    %51 = vector.broadcast %50 : vector<1x256xf32> to vector<256x256xf32>
    %52 = arith.mulf %49, %51 : vector<256x256xf32>
    %c1_28 = arith.constant 1 : index
    %c0_29 = arith.constant 0 : index
    %53 = vector.load %arg10[%c1_28, %c0_29] : memref<2x256xf32, #tpu.memory_space<vmem>>, vector<1x256xf32>
    %54 = vector.broadcast %53 : vector<1x256xf32> to vector<256x256xf32>
    %55 = arith.addf %52, %54 : vector<256x256xf32>
    %cst_30 = arith.constant 0.000000e+00 : f32
    %56 = vector.broadcast %cst_30 : f32 to vector<256x256xf32>
    %57 = arith.maximumf %55, %56 : vector<256x256xf32>
    %cst_31 = arith.constant dense<0xFF800000> : vector<256xf32>
    %58 = vector.multi_reduction <maximumf>, %57, %cst_31 [0] : vector<256x256xf32> to vector<256xf32>
    %59 = vector.shape_cast %58 : vector<256xf32> to vector<1x256xf32>
    %c0_i32 = arith.constant 0 : i32
    %60 = arith.cmpi eq, %arg1, %c0_i32 : i32
    %61 = arith.extui %60 : i1 to i32
    %c0_i32_32 = arith.constant 0 : i32
    %62 = arith.cmpi ne, %61, %c0_i32_32 : i32
    scf.if %62 {
      %c0_37 = arith.constant 0 : index
      %c0_38 = arith.constant 0 : index
      %69 = vector.load %arg19[%c0_37, %c0_38] : memref<1x256xf32, #tpu.memory_space<vmem>>, vector<1x256xf32>
      tpu.vector_store %arg19[%c0_37, %c0_38], %59 {strides = array<i32>} : memref<1x256xf32, #tpu.memory_space<vmem>>, vector<1x256xf32>,
    } else {
    }
    %c0_i32_33 = arith.constant 0 : i32
    %63 = arith.cmpi sgt, %arg1, %c0_i32_33 : i32
    %64 = arith.extui %63 : i1 to i32
    %c0_i32_34 = arith.constant 0 : i32
    %65 = arith.cmpi ne, %64, %c0_i32_34 : i32
    scf.if %65 {
      %c0_37 = arith.constant 0 : index
      %c0_38 = arith.constant 0 : index
      %69 = vector.load %arg19[%c0_37, %c0_38] : memref<1x256xf32, #tpu.memory_space<vmem>>, vector<1x256xf32>
      %70 = arith.maximumf %69, %59 : vector<1x256xf32>
      %c0_39 = arith.constant 0 : index
      %c0_40 = arith.constant 0 : index
      %71 = vector.load %arg19[%c0_39, %c0_40] : memref<1x256xf32, #tpu.memory_space<vmem>>, vector<1x256xf32>
      tpu.vector_store %arg19[%c0_39, %c0_40], %70 {strides = array<i32>} : memref<1x256xf32, #tpu.memory_space<vmem>>, vector<1x256xf32>,
    } else {
    }
    %c0_i32_35 = arith.constant 0 : i32
    %66 = arith.cmpi eq, %arg1, %c0_i32_35 : i32
    %67 = arith.extui %66 : i1 to i32
    %c0_i32_36 = arith.constant 0 : i32
    %68 = arith.cmpi ne, %67, %c0_i32_36 : i32
    scf.if %68 {
      %c0_37 = arith.constant 0 : index
      %c0_38 = arith.constant 0 : index
      %69 = vector.load %arg19[%c0_37, %c0_38] : memref<1x256xf32, #tpu.memory_space<vmem>>, vector<1x256xf32>
      %c0_39 = arith.constant 0 : index
      %c0_40 = arith.constant 0 : index
      %70 = vector.load %arg11[%c0_39, %c0_40] : memref<256x256xf32, #tpu.memory_space<vmem>>, vector<256x256xf32>
      %cst_41 = arith.constant dense<0.000000e+00> : vector<1x256xf32>
      %71 = tpu.matmul %69, %70, %cst_41 {dimension_numbers = #tpu.dot_dimension_numbers<[1], [0], [0], [1], [0, 0, 1, 1], [], []>} : vector<1x256xf32>, vector<256x256xf32>, vector<1x256xf32> -> vector<1x256xf32>
      %c0_42 = arith.constant 0 : index
      %c0_43 = arith.constant 0 : index
      %72 = vector.load %arg12[%c0_42, %c0_43] : memref<2x256xf32, #tpu.memory_space<vmem>>, vector<1x256xf32>
      %73 = arith.mulf %71, %72 : vector<1x256xf32>
      %c1_44 = arith.constant 1 : index
      %c0_45 = arith.constant 0 : index
      %74 = vector.load %arg12[%c1_44, %c0_45] : memref<2x256xf32, #tpu.memory_space<vmem>>, vector<1x256xf32>
      %75 = arith.addf %73, %74 : vector<1x256xf32>
      %cst_46 = arith.constant 0.000000e+00 : f32
      %76 = vector.broadcast %cst_46 : f32 to vector<1x256xf32>
      %77 = arith.maximumf %75, %76 : vector<1x256xf32>
      %c0_47 = arith.constant 0 : index
      %c0_48 = arith.constant 0 : index
      %c0_49 = arith.constant 0 : index
      %78 = vector.load %arg17[%c0_47, %c0_48, %c0_49] : memref<1x1x256xf32, #tpu.memory_space<vmem>>, vector<1x1x256xf32>
      %79 = vector.shape_cast %78 : vector<1x1x256xf32> to vector<1x256xf32>
      %80 = vector.shape_cast %77 : vector<1x256xf32> to vector<1x1x256xf32>
      tpu.vector_store %arg17[%c0_47, %c0_48, %c0_49], %80 {strides = array<i32>} : memref<1x1x256xf32, #tpu.memory_space<vmem>>, vector<1x1x256xf32>,
      %c0_50 = arith.constant 0 : index
      %c0_51 = arith.constant 0 : index
      %81 = vector.load %arg13[%c0_50, %c0_51] : memref<256x256xf32, #tpu.memory_space<vmem>>, vector<256x256xf32>
      %cst_52 = arith.constant dense<0.000000e+00> : vector<1x256xf32>
      %82 = tpu.matmul %77, %81, %cst_52 {dimension_numbers = #tpu.dot_dimension_numbers<[1], [0], [0], [1], [0, 0, 1, 1], [], []>} : vector<1x256xf32>, vector<256x256xf32>, vector<1x256xf32> -> vector<1x256xf32>
      %c0_53 = arith.constant 0 : index
      %c0_54 = arith.constant 0 : index
      %83 = vector.load %arg14[%c0_53, %c0_54] : memref<1x256xf32, #tpu.memory_space<vmem>>, vector<1x256xf32>
      %84 = arith.addf %82, %83 : vector<1x256xf32>
      %85 = math.tanh %84 : vector<1x256xf32>
      %cst_55 = arith.constant 0.000000e+00 : f32
      %86 = vector.broadcast %cst_55 : f32 to vector<1x256xf32>
      %87 = arith.subf %86, %84 : vector<1x256xf32>
      %88 = math.exp %87 : vector<1x256xf32>
      %cst_56 = arith.constant 1.000000e+00 : f32
      %89 = vector.broadcast %cst_56 : f32 to vector<1x256xf32>
      %90 = arith.addf %89, %88 : vector<1x256xf32>
      %91 = tpu.reciprocal %90 {approx = true} : vector<1x256xf32> -> vector<1x256xf32>
      %92 = arith.mulf %84, %84 : vector<1x256xf32>
      %c0_57 = arith.constant 0 : index
      %c0_58 = arith.constant 0 : index
      %93 = vector.load %arg15[%c0_57, %c0_58] : memref<256x256xf32, #tpu.memory_space<vmem>>, vector<256x256xf32>
      %cst_59 = arith.constant dense<0.000000e+00> : vector<1x256xf32>
      %94 = tpu.matmul %92, %93, %cst_59 {dimension_numbers = #tpu.dot_dimension_numbers<[1], [0], [0], [1], [0, 0, 1, 1], [], []>} : vector<1x256xf32>, vector<256x256xf32>, vector<1x256xf32> -> vector<1x256xf32>
      %cst_60 = arith.constant 9.99999996E-13 : f32
      %95 = vector.broadcast %cst_60 : f32 to vector<1x256xf32>
      %96 = arith.maximumf %94, %95 : vector<1x256xf32>
      %97 = math.rsqrt %96 : vector<1x256xf32>
      %98 = arith.mulf %84, %97 : vector<1x256xf32>
      %c0_61 = arith.constant 0 : index
      %c0_62 = arith.constant 0 : index
      %99 = vector.load %arg16[%c0_61, %c0_62] : memref<5x256xf32, #tpu.memory_space<vmem>>, vector<5x256xf32>
      %100 = vector.extract_strided_slice %99 {offsets = [0, 0], sizes = [1, 256], strides = [1, 1]} : vector<5x256xf32> to vector<1x256xf32>
      %101 = arith.mulf %100, %85 : vector<1x256xf32>
      %102 = vector.extract_strided_slice %99 {offsets = [1, 0], sizes = [1, 256], strides = [1, 1]} : vector<5x256xf32> to vector<1x256xf32>
      %103 = arith.mulf %102, %91 : vector<1x256xf32>
      %104 = arith.addf %101, %103 : vector<1x256xf32>
      %105 = vector.extract_strided_slice %99 {offsets = [2, 0], sizes = [1, 256], strides = [1, 1]} : vector<5x256xf32> to vector<1x256xf32>
      %106 = arith.mulf %105, %98 : vector<1x256xf32>
      %107 = arith.addf %104, %106 : vector<1x256xf32>
      %108 = vector.extract_strided_slice %99 {offsets = [3, 0], sizes = [1, 256], strides = [1, 1]} : vector<5x256xf32> to vector<1x256xf32>
      %109 = arith.mulf %107, %108 : vector<1x256xf32>
      %110 = vector.extract_strided_slice %99 {offsets = [4, 0], sizes = [1, 256], strides = [1, 1]} : vector<5x256xf32> to vector<1x256xf32>
      %111 = arith.addf %109, %110 : vector<1x256xf32>
      %c0_63 = arith.constant 0 : index
      %c0_64 = arith.constant 0 : index
      %c0_65 = arith.constant 0 : index
      %112 = vector.load %arg18[%c0_63, %c0_64, %c0_65] : memref<1x1x256xf32, #tpu.memory_space<vmem>>, vector<1x1x256xf32>
      %113 = vector.shape_cast %112 : vector<1x1x256xf32> to vector<1x256xf32>
      %114 = vector.shape_cast %111 : vector<1x256xf32> to vector<1x1x256xf32>
      tpu.vector_store %arg18[%c0_63, %c0_64, %c0_65], %114 {strides = array<i32>} : memref<1x1x256xf32, #tpu.memory_space<vmem>>, vector<1x1x256xf32>,
    } else {
    }
    return
  }
  func.func @transform_0(%arg0: i32, %arg1: i32) -> (i32, i32, i32) {
    %c0_i32 = arith.constant 0 : i32
    %c0_i32_0 = arith.constant 0 : i32
    return %arg0, %arg1, %c0_i32 : i32, i32, i32
  }
  func.func @transform_1(%arg0: i32, %arg1: i32) -> (i32, i32) {
    %c0_i32 = arith.constant 0 : i32
    %c0_i32_0 = arith.constant 0 : i32
    %c0_i32_1 = arith.constant 0 : i32
    return %c0_i32, %c0_i32_0 : i32, i32
  }
  func.func @transform_2(%arg0: i32, %arg1: i32) -> (i32, i32) {
    %c0_i32 = arith.constant 0 : i32
    %c0_i32_0 = arith.constant 0 : i32
    %c0_i32_1 = arith.constant 0 : i32
    return %c0_i32, %c0_i32_0 : i32, i32
  }
  func.func @transform_3(%arg0: i32, %arg1: i32) -> (i32, i32) {
    %c0_i32 = arith.constant 0 : i32
    %c0_i32_0 = arith.constant 0 : i32
    %c0_i32_1 = arith.constant 0 : i32
    return %c0_i32, %c0_i32_0 : i32, i32
  }
  func.func @transform_4(%arg0: i32, %arg1: i32) -> (i32, i32) {
    %c0_i32 = arith.constant 0 : i32
    %c0_i32_0 = arith.constant 0 : i32
    %c0_i32_1 = arith.constant 0 : i32
    return %c0_i32, %c0_i32_0 : i32, i32
  }
  func.func @transform_5(%arg0: i32, %arg1: i32) -> (i32, i32) {
    %c0_i32 = arith.constant 0 : i32
    %c0_i32_0 = arith.constant 0 : i32
    %c0_i32_1 = arith.constant 0 : i32
    return %c0_i32, %c0_i32_0 : i32, i32
  }
  func.func @transform_6(%arg0: i32, %arg1: i32) -> (i32, i32) {
    %c0_i32 = arith.constant 0 : i32
    %c0_i32_0 = arith.constant 0 : i32
    %c0_i32_1 = arith.constant 0 : i32
    return %c0_i32, %c0_i32_0 : i32, i32
  }
  func.func @transform_7(%arg0: i32, %arg1: i32) -> (i32, i32) {
    %c0_i32 = arith.constant 0 : i32
    %c0_i32_0 = arith.constant 0 : i32
    %c0_i32_1 = arith.constant 0 : i32
    return %c0_i32, %c0_i32_0 : i32, i32
  }
  func.func @transform_8(%arg0: i32, %arg1: i32) -> (i32, i32) {
    %c0_i32 = arith.constant 0 : i32
    %c0_i32_0 = arith.constant 0 : i32
    %c0_i32_1 = arith.constant 0 : i32
    return %c0_i32, %c0_i32_0 : i32, i32
  }
  func.func @transform_9(%arg0: i32, %arg1: i32) -> (i32, i32) {
    %c0_i32 = arith.constant 0 : i32
    %c0_i32_0 = arith.constant 0 : i32
    %c0_i32_1 = arith.constant 0 : i32
    return %c0_i32, %c0_i32_0 : i32, i32
  }
  func.func @transform_10(%arg0: i32, %arg1: i32) -> (i32, i32) {
    %c0_i32 = arith.constant 0 : i32
    %c0_i32_0 = arith.constant 0 : i32
    %c0_i32_1 = arith.constant 0 : i32
    return %c0_i32, %c0_i32_0 : i32, i32
  }
  func.func @transform_11(%arg0: i32, %arg1: i32) -> (i32, i32) {
    %c0_i32 = arith.constant 0 : i32
    %c0_i32_0 = arith.constant 0 : i32
    %c0_i32_1 = arith.constant 0 : i32
    return %c0_i32, %c0_i32_0 : i32, i32
  }
  func.func @transform_12(%arg0: i32, %arg1: i32) -> (i32, i32) {
    %c0_i32 = arith.constant 0 : i32
    %c0_i32_0 = arith.constant 0 : i32
    %c0_i32_1 = arith.constant 0 : i32
    return %c0_i32, %c0_i32_0 : i32, i32
  }
  func.func @transform_13(%arg0: i32, %arg1: i32) -> (i32, i32) {
    %c0_i32 = arith.constant 0 : i32
    %c0_i32_0 = arith.constant 0 : i32
    %c0_i32_1 = arith.constant 0 : i32
    return %c0_i32, %c0_i32_0 : i32, i32
  }
  func.func @transform_14(%arg0: i32, %arg1: i32) -> (i32, i32) {
    %c0_i32 = arith.constant 0 : i32
    %c0_i32_0 = arith.constant 0 : i32
    %c0_i32_1 = arith.constant 0 : i32
    return %c0_i32, %c0_i32_0 : i32, i32
  }
  func.func @transform_15(%arg0: i32, %arg1: i32) -> (i32, i32, i32) {
    %c0_i32 = arith.constant 0 : i32
    %c0_i32_0 = arith.constant 0 : i32
    %c0_i32_1 = arith.constant 0 : i32
    return %arg0, %c0_i32, %c0_i32_0 : i32, i32, i32
  }
  func.func @transform_16(%arg0: i32, %arg1: i32) -> (i32, i32, i32) {
    %c0_i32 = arith.constant 0 : i32
    %c0_i32_0 = arith.constant 0 : i32
    %c0_i32_1 = arith.constant 0 : i32
    return %arg0, %c0_i32, %c0_i32_0 : i32, i32, i32
  }
}

</mosaic_0001>

<bundles_post_ra>
// kernel: seg_nets_forward.1
= control target key start
LH: loop header
LB: loop body
LE: loop exit
PB: predicated region body
PF: predicated region fallthrough
CT: control target
= control target key end

     0   :  { %s5554_s0 = inlined_call_operand.vmem [shape: f32[2,256,3], index: 0, kind: input, shape index: {}]   ;;  %s5555_s1 = inlined_call_operand.vmem [shape: f32[3,64], index: 1, kind: input, shape index: {}]   ;;  %s5556_s2 = inlined_call_operand.vmem [shape: f32[2,64], index: 2, kind: input, shape index: {}]   ;;  %s5557_s3 = inlined_call_operand.hbm [shape: f32[64,128], index: 3, kind: input, shape index: {}]   ;;  %s5558_s4 = inlined_call_operand.vmem [shape: f32[2,128], index: 4, kind: input, shape index: {}]   ;;  %s5559_s5 = inlined_call_operand.hbm [shape: f32[128,128], index: 5, kind: input, shape index: {}]   ;;  %s5560_s6 = inlined_call_operand.hbm [shape: f32[2,128], index: 6, kind: input, shape index: {}]   ;;  %s5561_s7 = inlined_call_operand.hbm [shape: f32[128,256], index: 7, kind: input, shape index: {}]   ;;  %s5562_s8 = inlined_call_operand.vmem [shape: f32[2,256], index: 8, kind: input, shape index: {}]   ;;  %s5563_s9 = inlined_call_operand.vmem [shape: f32[256,256], index: 9, kind: input, shape index: {}]   ;;  %s5564_s10 = inlined_call_operand.vmem [shape: f32[2,256], index: 10, kind: input, shape index: {}]   ;;  %s5565_s11 = inlined_call_operand.hbm [shape: f32[256,256], index: 11, kind: input, shape index: {}]   ;;  %s5566_s12 = inlined_call_operand.hbm [shape: f32[1,256], index: 12, kind: input, shape index: {}]   ;;  %s5567_s13 = inlined_call_operand.hbm [shape: f32[256,256], index: 13, kind: input, shape index: {}]   ;;  %s5568_s14 = inlined_call_operand.vmem [shape: f32[5,256], index: 14, kind: input, shape index: {}]   ;;  %s5569_s15 = inlined_call_operand.vmem [shape: f32[2,1,256], index: 15, kind: output, shape index: {0}]   ;;  %s5570_s16 = inlined_call_operand.vmem [shape: f32[2,1,256], index: 16, kind: output, shape index: {1}]  }
   0x1   :  { %5580 = sst [smem:[#allocation19_spill]] %s5554_s0 }
   0x2   :  { %5581 = sst [smem:[#allocation20_spill]] %s5559_s5 }
   0x3   :  { %5582 = sst [smem:[#allocation21_spill]] %s5561_s7 }
   0x4   :  { %5583 = sst [smem:[#allocation22_spill]] %s5570_s16 }
   0x5   :  { %22 = vsyncpa [#allocation4], 0 }
   0x6   :  { %23 = vsyncpa [#allocation6], 0 }
   0x7   :  { %24 = vsyncpa [#allocation9], 0 }
   0x8   :  { %25 = vsyncpa [#allocation12], 0  ;;  %s4359_s21 = smov 0   ;;  %s4361_s22 = smov 0  }
   0x9   :  { %s4363_s23 = smov 0  }
   0xa LB: > { %5584 = sst [smem:[#allocation18_spill]] %s4256_s23  ;;  %s3546_s24 = sadd.s32 4294967295, %s4256_s23   ;;  %s4256_s23 = sphi %s4363_s23, %s31_s23   ;;  %s4252_s22 = sphi %s4361_s22, %s5602_s22   ;;  %s4248_s21 = sphi %s4359_s21, %s5601_s21  }
   0xb   : > { %p3548_p0 = scmp.ge.s32.totalorder %s4256_s23, 1  ;;  %p422_p1 = scmp.lt.s32.totalorder %s4256_s23, 3 }
   0xc   : > { %p4377_p2 = scmp.eq.s32.totalorder %s3546_s24, 0  ;;  %s4258_s27 = smov [#allocation5]  }
   0xd   : > { %p4381_p3 = pnand %p3548_p0, %p422_p1  ;;  %s456_s28 = sshll.u32 %s4258_s27, 4  ;;  %s457_s28 = int_to_ptr.vmem [resolvable:$true] %s456_s28 }
   0xe   : > { %s5585_s25 = scalar_select %p4377_p2, 1, 0 }
   0xf   : > { %s5586_s26 = scalar_select %p4381_p3, 1, 0 }
  0x10   : > { %p3888_p4 = pneg %p4381_p3  ;;  %s4259_s29 = smov [#allocation8]  }
  0x11   : > { %s480_s30 = sshll.u32 %s4259_s29, 4  ;;  %s4260_s17 = smov [#allocation11]   ;;  %s4387_s30 = int_to_ptr.vmem [resolvable:$true] %s480_s30 }
  0x12   : > { %p4391_p5 = pnand %p4377_p2, %p3888_p4  ;;  %s4395_s18 = sshll.u32 %s4260_s17, 4  ;;  %s517_s18 = int_to_ptr.vmem [resolvable:$true] %s4395_s18 }
  0x13   : > { %s4047_s20 = scalar_lea.vmem %s457_s28, 2048  ;;  %p4055_p10 = scmp.lt.s32.totalorder %s457_s28, %s457_s28 }
  0x14   : > { %p4399_p6 = pneg %p4391_p5  ;;  %p4048_p7 = scmp.ne.s32.totalorder %s457_s28, %s4047_s20 }
  0x15   : > { %p4056_p11 = scmp.lt.s32.totalorder %s4047_s20, %s4047_s20 }
  0x16   : > { %p4050_p8 = pnand %p4048_p7, %p4399_p6 }
  0x17   : > { %p4057_p12 = por %p4056_p11, %p4055_p10 }
  0x18   : > { %p4051_p9 = pneg %p4050_p8 }
  0x1a   : > { %p4058_p13 = pnand %p4057_p12, %p4051_p9 }
  0x1c   : > { %4061 = shalt.err (!%p4058_p13)
}
  0x1d   : > { %s5572_s24 = smov 128   ;;  %s4262_s27 = smov 8  }
  0x1e   : > { %s5589_s5 = sld [smem:[#allocation20_spill]]  ;;  %s4073_s23 = scalar_lea.vmem %s4387_s30, 4096 }
  0x1f   : > { %p4074_p0 = scmp.ne.s32.totalorder %s4387_s30, %s4073_s23  ;;  %p4081_p7 = scmp.lt.s32.totalorder %s4387_s30, %s4387_s30 }
  0x20   : > { %p4082_p8 = scmp.lt.s32.totalorder %s4073_s23, %s4073_s23 }
  0x21   : > { %p4076_p1 = pnand %p4074_p0, %p4399_p6 }
  0x22   : > { %p4083_p9 = por %p4082_p8, %p4081_p7 }
  0x23   : > { %p4077_p4 = pneg %p4076_p1 }
  0x24   : > { %3894 = dma.hbm_to_vmem [thread:$0]  (!%p4391_p5), %s5589_s5, 2048, %s457_s28, [#allocation6], %s5572_s24, %s5572_s24, %s4262_s27  }
  0x25   : > { %p4084_p10 = pnand %p4083_p9, %p4077_p4 }
  0x27   : > { %4087 = shalt.err (!%p4084_p10)
}
  0x28   : > { %s5573_s20 = smov 256   ;;  %s5575_s16 = smov 16  }
  0x29   : > { %s5590_s7 = sld [smem:[#allocation21_spill]]  ;;  %s4099_s17 = scalar_lea.vmem %s517_s18, 32 }
  0x2a   : > { %p4100_p11 = scmp.ne.s32.totalorder %s517_s18, %s4099_s17  ;;  %p4107_p0 = scmp.lt.s32.totalorder %s517_s18, %s517_s18 }
  0x2b   : > { %p4108_p1 = scmp.lt.s32.totalorder %s4099_s17, %s4099_s17 }
  0x2c   : > { %p4102_p12 = pnand %p4100_p11, %p4399_p6 }
  0x2d   : > { %p4109_p4 = por %p4108_p1, %p4107_p0 }
  0x2e   : > { %p4103_p13 = pneg %p4102_p12 }
  0x2f   : > { %3900 = dma.hbm_to_vmem [thread:$0]  (!%p4391_p5), %s5590_s7, 4096, %s4387_s30, [#allocation9], %s5573_s20, %s5573_s20, %s5575_s16  }
  0x30   : > { %p4110_p7 = pnand %p4109_p4, %p4103_p13 }
  0x32   : > { %4113 = shalt.err (!%p4110_p7)
}
  0x33   : > { %3906 = dma.hbm_to_vmem [thread:$0]  (!%p4391_p5), %s5566_s12, 32, %s517_s18, [#allocation12]  }
  0x34   : > { %s43_s30 = sadd.s32 1, %s4252_s22  ;;  %s4265_s28 = smov [#allocation3]  }
  0x35   : > { %p45_p8 = scmp.ge.s32.totalorder %s43_s30, 2  ;;  %s440_s29 = sshll.u32 %s4265_s28, 4  ;;  %s441_s29 = int_to_ptr.vmem [resolvable:$true] %s440_s29 }
  0x36   : > { %s4125_s20 = scalar_lea.vmem %s441_s29, 1024  ;;  %p4133_p12 = scmp.lt.s32.totalorder %s441_s29, %s441_s29 }
  0x37   : > { %s5604_s30 = smov (%p45_p8, %s43_s30), 0  ;;  %p4126_p9 = scmp.ne.s32.totalorder %s441_s29, %s4125_s20 }
  0x38   : > { %p4134_p13 = scmp.lt.s32.totalorder %s4125_s20, %s4125_s20 }
  0x39   : > { %p4128_p10 = pnand %p4126_p9, %p4399_p6 }
  0x3a   : > { %p4135_p0 = por %p4134_p13, %p4133_p12 }
  0x3b   : > { %p4129_p11 = pneg %p4128_p10 }
  0x3d   : > { %p4136_p1 = pnand %p4135_p0, %p4129_p11 }
  0x3f   : > { %4139 = shalt.err (!%p4136_p1)
}
  0x40   : > { %s5591_s18 = smov 128   ;;  %s4266_s23 = smov [#allocation7]  }
  0x41   : > { %3891 = dma.hbm_to_vmem [thread:$0]  (!%p4391_p5), %s5557_s3, 1024, %s441_s29, [#allocation4], %s5591_s18, %s5591_s18, %s4262_s27  }
  0x42   : > { %s470_s28 = sshll.u32 %s4266_s23, 4  ;;  %s4267_s16 = smov [#allocation10]   ;;  %s471_s28 = int_to_ptr.vmem [resolvable:$true] %s470_s28 }
  0x43   : > { %s502_s5 = sshll.u32 %s4267_s16, 4  ;;  %s4151_s7 = scalar_lea.vmem %s471_s28, 32  ;;  %s503_s5 = int_to_ptr.vmem [resolvable:$true] %s502_s5 }
  0x44   : > { %p4152_p4 = scmp.ne.s32.totalorder %s471_s28, %s4151_s7  ;;  %p4159_p9 = scmp.lt.s32.totalorder %s471_s28, %s471_s28 }
  0x45   : > { %p4160_p10 = scmp.lt.s32.totalorder %s4151_s7, %s4151_s7 }
  0x46   : > { %p4154_p7 = pnand %p4152_p4, %p4399_p6 }
  0x47   : > { %p4161_p11 = por %p4160_p10, %p4159_p9 }
  0x48   : > { %p4155_p8 = pneg %p4154_p7 }
  0x4a   : > { %p4162_p12 = pnand %p4161_p11, %p4155_p8 }
  0x4c   : > { %4165 = shalt.err (!%p4162_p12)
}
  0x4d   : > { %3897 = dma.hbm_to_vmem [thread:$0]  (!%p4391_p5), %s5560_s6, 32, %s471_s28, [#allocation6]  }
  0x4e   : > { %s4177_s27 = scalar_lea.vmem %s503_s5, 8192  ;;  %p4185_p4 = scmp.lt.s32.totalorder %s503_s5, %s503_s5 }
  0x4f   : > { %p4178_p13 = scmp.ne.s32.totalorder %s503_s5, %s4177_s27  ;;  %p4186_p7 = scmp.lt.s32.totalorder %s4177_s27, %s4177_s27 }
  0x51   : > { %p4180_p0 = pnand %p4178_p13, %p4399_p6  ;;  %p4187_p2 = por %p4186_p7, %p4185_p4 }
  0x53   : > { %p4181_p1 = pneg %p4180_p0 }
  0x55   : > { %p4188_p3 = pnand %p4187_p2, %p4181_p1 }
  0x57   : > { %4191 = shalt.err (!%p4188_p3)
}
  0x58   : > { %s5592_s7 = smov 16   ;;  %s5593_s16 = smov 256  }
  0x59   : > { %3903 = dma.hbm_to_vmem [thread:$0]  (!%p4391_p5), %s5565_s11, 8192, %s503_s5, [#allocation9], %s5593_s16, %s5593_s16, %s5592_s7  }
  0x5a   : > { %s4268_s17 = smov [#allocation13]  }
  0x5b   : > { %s526_s23 = sshll.u32 %s4268_s17, 4  ;;  %s527_s23 = int_to_ptr.vmem [resolvable:$true] %s526_s23 }
  0x5c   : > { %s4203_s28 = scalar_lea.vmem %s527_s23, 8192  ;;  %p4211_p2 = scmp.lt.s32.totalorder %s527_s23, %s527_s23 }
  0x5d   : > { %p4204_p8 = scmp.ne.s32.totalorder %s527_s23, %s4203_s28  ;;  %p4212_p3 = scmp.lt.s32.totalorder %s4203_s28, %s4203_s28 }
  0x5f   : > { %p4206_p9 = pnand %p4204_p8, %p4399_p6  ;;  %p4213_p11 = por %p4212_p3, %p4211_p2 }
  0x61   : > { %p4207_p10 = pneg %p4206_p9 }
  0x63   : > { %p4214_p12 = pnand %p4213_p11, %p4207_p10 }
  0x65   : > { %4217 = shalt.err (!%p4214_p12)
}
  0x66   : > { %3909 = dma.hbm_to_vmem [thread:$0]  (!%p4391_p5), %s5567_s13, 8192, %s527_s23, [#allocation12], %s5593_s16, %s5593_s16, %s5592_s7  }
  0x67   : > { %p5594_p13 = scmp.ne.s32.totalorder %s5586_s26, 0 }
  0x68   : > { %p5595_p6 = scmp.ne.s32.totalorder (!%p5594_p13), %s5585_s25, 0 }
  0x69   : > { %558 = sbr.rel (%p5594_p13) target bundleno = 1830 (0x726), region = 80 }
  0x6e   : > { %4231 = dma.done.wait (%p5595_p6), [#allocation4], 1024  }
  0x6f   : > { %4233 = vsyncadd (%p5595_p6), [#allocation4], 4294966272 }
  0x70   : > { %4235 = dma.done.wait (%p5595_p6), [#allocation6], 2080  }
  0x71   : > { %4237 = vsyncadd (%p5595_p6), [#allocation6], 4294965216 }
  0x72   : > { %4239 = dma.done.wait (%p5595_p6), [#allocation9], 12288  }
  0x73   : > { %4241 = vsyncadd (%p5595_p6), [#allocation9], 4294955008 }
  0x74   : > { %4243 = dma.done.wait (%p5595_p6), [#allocation12], 8224  }
  0x75   : > { %4245 = vsyncadd (%p5595_p6), [#allocation12], 4294959072  ;;  %p640_p5 = scmp.lt.s32.totalorder %s4248_s21, 1  ;;  %v4269_v0 = vmov 1   ;;  %v4270_v1 = vmov 0   ;;  %s5596_s24 = sld [smem:[#allocation19_spill]]  ;;  %v850_v32 = vlaneseq }
  0x76   : > { %3964 = vset.pattern.permute.xlu0 %v4269_v0  ;;  %3965 = vset.pattern.permute.xlu1 %v4270_v1  ;;  %v4271_v4 = vmov 2   ;;  %v1391_v7 = vld [vmem:[#allocation3 + $0x38] sm:$0xff]  ;;  %v1390_v8 = vld [vmem:[#allocation3 + $0x30] sm:$0xff]  ;;  %v1389_v10 = vld [vmem:[#allocation3 + $0x28] sm:$0xff]  ;;  %vm1392_vm0 = vcmask 523264   ;;  %s5599_s23 = sld [smem:[#allocation22_spill]] }
  0x77   : > { %s5606_s21 = smov (!%p640_p5, %s4248_s21), 1  ;;  %3700 = vmatprep.subr.mxu0 %v1391_v7  ;;  %3844 = vmatprep.subr.mxu1 %v1391_v7  ;;  %v1388_v11 = vld [vmem:[#allocation3 + $0x20] sm:$0xff]  ;;  %v1387_v12 = vld [vmem:[#allocation3 + $0x18] sm:$0xff]  ;;  %v1386_v13 = vld [vmem:[#allocation3 + $0x10] sm:$0xff]  ;;  %v4585_v33 = vshrl.u32 %v850_v32, 7  ;;  %vm5499_vm1 = vcmp.lt.s32.totalorder %v850_v32, 256 }
  0x78   : > { %s3611_s26 = sshll.u32 %s5606_s21, 8  ;;  %3701 = vmatpush3.msra.mxu0 %v1391_v7  ;;  %3852 = vmatpush3.msra.mxu1 %v1391_v7  ;;  %v1385_v14 = vld [vmem:[#allocation3 + $0x8] sm:$0xff]  ;;  %v1384_v15 = vld [vmem:[#allocation3] sm:$0xff]  ;;  %v4625_v58 = vld [vmem:[%s5556_s2] ss:$0 sm:$0xff]  ;;  %s3567_s0 = sshll.u32 %s5606_s21, 1 }
  0x79   : > { %3702 = vmatprep.subr.mxu0 %v1390_v8  ;;  %3845 = vmatprep.subr.mxu1 %v1390_v8  ;;  %v4589_v36 = vsub.s32 1, %v4585_v33  ;;  %v4593_v38 = vsub.s32 0, %v4585_v33  ;;  %v689_v39 = vld [vmem:[%s5555_s1] sm:$0x7]  ;;  %v1212_v43 = vsub.s32 2, %v4585_v33 }
  0x7a   : > { %3703 = vmatpush3.msra.mxu0 %v1390_v8  ;;  %3853 = vmatpush3.msra.mxu1 %v1390_v8  ;;  %v3034_v32 = vld [vmem:[#allocation10 + $0xd8] sm:$0xff] }
  0x7b   : > { %s4504_s27 = scalar_lea.vmem %s5596_s24, %s3611_s26  ;;  %3704 = vmatprep.subr.mxu0 %v1389_v10  ;;  %3846 = vmatprep.subr.mxu1 %v1389_v10  ;;  %v4600_v42 = vrot.slane %v689_v39, %v4589_v36  ;;  %v4604_v44 = vrot.slane %v689_v39, %v4593_v38  ;;  %v4607_v47 = vrot.slane %v689_v39, %v1212_v43 }
  0x7c   : > { %v658_v2 = vld [vmem:[%s4504_s27 + $0x8] sm:$0xff]  ;;  %v657_v3 = vld [vmem:[%s4504_s27] sm:$0xff]  ;;  %v660_v5 = vld [vmem:[%s4504_s27 + $0x18] sm:$0xff]  ;;  %3705 = vmatpush3.msra.mxu0 %v1389_v10  ;;  %3854 = vmatpush3.msra.mxu1 %v1389_v10  ;;  %s656_s28 = scalar_lea.vmem %s5599_s23, %s3567_s0 }
  0x7d   : > { %697 = vperm.xlu1 %3965, %v658_v2   ;;  %887 = vperm.xlu0 %3964, %v657_v3   ;;  %v4513_v6 = vld [vmem:[%s4504_s27 + $0x28] sm:$0xff]  ;;  %v659_v9 = vld [vmem:[%s4504_s27 + $0x10] sm:$0xff]  ;;  %v664_v16 = vld [vmem:[%s4504_s27 + $0x38] sm:$0xff] }
  0x7e   : > { %3706 = vmatprep.subr.mxu0 %v1388_v11  ;;  %3847 = vmatprep.subr.mxu1 %v1388_v11  ;;  %v661_v17 = vld [vmem:[%s4504_s27 + $0x20] sm:$0xff]  ;;  %v666_v18 = vld [vmem:[%s4504_s27 + $0x48] sm:$0xff]  ;;  %v668_v19 = vld [vmem:[%s4504_s27 + $0x58] sm:$0xff] }
  0x7f   : > { %3707 = vmatpush3.msra.mxu0 %v1388_v11  ;;  %3855 = vmatpush3.msra.mxu1 %v1388_v11  ;;  %v670_v20 = vld [vmem:[%s4504_s27 + $0x68] sm:$0xff]  ;;  %v4531_v21 = vld [vmem:[%s4504_s27 + $0x78] sm:$0xff]  ;;  %v663_v22 = vld [vmem:[%s4504_s27 + $0x30] sm:$0xff] }
  0x80   : > { %3708 = vmatprep.subr.mxu0 %v1387_v12  ;;  %3848 = vmatprep.subr.mxu1 %v1387_v12  ;;  %v4542_v23 = vld [vmem:[%s4504_s27 + $0x88] sm:$0xff]  ;;  %v665_v24 = vld [vmem:[%s4504_s27 + $0x40] sm:$0xff]  ;;  %v4548_v25 = vld [vmem:[%s4504_s27 + $0x98] sm:$0xff] }
  0x81   : > { %3966 = vset.pattern.permute.xlu1 %v4269_v0  ;;  %3968 = vset.pattern.permute.xlu0 %v4271_v4  ;;  %v4553_v26 = vld [vmem:[%s4504_s27 + $0xa8] sm:$0xff]  ;;  %v667_v27 = vld [vmem:[%s4504_s27 + $0x50] sm:$0xff]  ;;  %v4564_v28 = vld [vmem:[%s4504_s27 + $0xb8] sm:$0xff] }
  0x82   : > { %891 = vperm.xlu1 %3966, %v658_v2   ;;  %1087 = vperm.xlu0 %3968, %v658_v2   ;;  %v4569_v29 = vld [vmem:[%s4504_s27 + $0xc8] sm:$0xff]  ;;  %v4573_v30 = vld [vmem:[%s4504_s27 + $0xd8] sm:$0xff]  ;;  %v669_v31 = vld [vmem:[%s4504_s27 + $0x60] sm:$0xff] }
  0x83   : > { %3709 = vmatpush3.msra.mxu0 %v1387_v12  ;;  %3856 = vmatpush3.msra.mxu1 %v1387_v12  ;;  %v671_v37 = vld [vmem:[%s4504_s27 + $0x70] sm:$0xff]  ;;  %v4612_v50 = vld [vmem:[%s4504_s27 + $0xe8] sm:$0xff]  ;;  %v4654_v39 = vld [vmem:[%s4504_s27 + $0xf8] sm:$0xff] }
  0x84   : > { %3710 = vmatprep.subr.mxu0 %v1386_v13  ;;  %3849 = vmatprep.subr.mxu1 %v1386_v13 }
  0x85   : > { %3711 = vmatpush3.msra.mxu0 %v1386_v13  ;;  %3857 = vmatpush3.msra.mxu1 %v1386_v13 }
  0x86   : > { %3967 = vset.pattern.permute.xlu1 %v4271_v4  ;;  %1095 = vperm.xlu0 %3968, %v660_v5  }
  0x87   : > { %1083 = vperm.xlu1 %3967, %v657_v3   ;;  %3712 = vmatprep.subr.mxu0 %v1385_v14 }
  0x88   : > { %3713 = vmatpush3.msra.mxu0 %v1385_v14  ;;  %3850 = vmatprep.subr.mxu1 %v1385_v14 }
  0x89   : > { %3714 = vmatprep.subr.mxu0 %v1384_v15  ;;  %3858 = vmatpush3.msra.mxu1 %v1385_v14 }
  0x8a   : > { %1103 = vperm.xlu0 %3968, %v4513_v6   ;;  %3715 = vmatpush3.msra.mxu0 %v1384_v15 }
  0x8b   : > { %3969 = vset.pattern.permute.xlu1 %v4270_v1  ;;  %3851 = vmatprep.subr.mxu1 %v1384_v15 }
  0x8c   : > { %702 = vperm.xlu1 %3969, %v659_v9   ;;  %3859 = vmatpush3.msra.mxu1 %v1384_v15 }
  0x8e   : > { %3975 = vset.pattern.permute.xlu0 %v4270_v1 }
  0x8f   : > { %692 = vperm.xlu0 %3975, %v657_v3   ;;  %v673_v3 = vld [vmem:[%s4504_s27 + $0x80] sm:$0xff] }
  0x90   : > { %3970 = vset.pattern.permute.xlu1 %v4269_v0 }
  0x91   : > { %895 = vperm.xlu1 %3970, %v659_v9  }
  0x93   : > { %707 = vperm.xlu0 %3975, %v660_v5  }
  0x95   : > { %899 = vperm.xlu1 %3970, %v660_v5   ;;  %v4635_v5 = vld [vmem:[%s5556_s2 + $0x1] ss:$0 sm:$0xff] }
  0x97   : > { %717 = vperm.xlu0 %3975, %v4513_v6  }
  0x99   : > { %3971 = vset.pattern.permute.xlu1 %v4271_v4 }
  0x9a   : > { %1091 = vperm.xlu1 %3971, %v659_v9  }
  0x9b   : > { %727 = vperm.xlu0 %3975, %v664_v16  }
  0x9e   : > { %3972 = vset.pattern.permute.xlu1 %v4270_v1 }
  0x9f   : > { %712 = vperm.xlu1 %3972, %v661_v17   ;;  %737 = vperm.xlu0 %3975, %v666_v18  }
  0xa3   : > { %3973 = vset.pattern.permute.xlu1 %v4269_v0  ;;  %747 = vperm.xlu0 %3975, %v668_v19  }
  0xa4   : > { %903 = vperm.xlu1 %3973, %v661_v17  }
  0xa7   : > { %757 = vperm.xlu0 %3975, %v670_v20  }
  0xa8   : > { %907 = vperm.xlu1 %3973, %v4513_v6  }
  0xab   : > { %767 = vperm.xlu0 %3975, %v4531_v21  }
  0xac   : > { %3974 = vset.pattern.permute.xlu1 %v4271_v4 }
  0xad   : > { %1099 = vperm.xlu1 %3974, %v661_v17  }
  0xaf   : > { %3990 = vset.pattern.permute.xlu0 %v4271_v4 }
  0xb0   : > { %1111 = vperm.xlu0 %3990, %v664_v16  }
  0xb1   : > { %3976 = vset.pattern.permute.xlu1 %v4270_v1 }
  0xb2   : > { %722 = vperm.xlu1 %3976, %v663_v22  }
  0xb4   : > { %1119 = vperm.xlu0 %3990, %v666_v18  }
  0xb6   : > { %3977 = vset.pattern.permute.xlu1 %v4269_v0 }
  0xb7   : > { %911 = vperm.xlu1 %3977, %v663_v22  }
  0xb8   : > { %1127 = vperm.xlu0 %3990, %v668_v19  }
  0xbb   : > { %915 = vperm.xlu1 %3977, %v664_v16  }
  0xbc   : > { %1135 = vperm.xlu0 %3990, %v670_v20  }
  0xbf   : > { %3978 = vset.pattern.permute.xlu1 %v4271_v4 }
  0xc0   : > { %1107 = vperm.xlu1 %3978, %v663_v22   ;;  %1143 = vperm.xlu0 %3990, %v4531_v21  }
  0xc4   : > { %3979 = vset.pattern.permute.xlu1 %v4270_v1  ;;  %1151 = vperm.xlu0 %3990, %v4542_v23  }
  0xc5   : > { %732 = vperm.xlu1 %3979, %v665_v24  }
  0xc8   : > { %1159 = vperm.xlu0 %3990, %v4548_v25  }
  0xc9   : > { %3980 = vset.pattern.permute.xlu1 %v4269_v0 }
  0xca   : > { %919 = vperm.xlu1 %3980, %v665_v24  }
  0xcc   : > { %1167 = vperm.xlu0 %3990, %v4553_v26  }
  0xce   : > { %923 = vperm.xlu1 %3980, %v666_v18  }
  0xd0   : > { %4001 = vset.pattern.permute.xlu0 %v4270_v1 }
  0xd1   : > { %777 = vperm.xlu0 %4001, %v4542_v23  }
  0xd2   : > { %3981 = vset.pattern.permute.xlu1 %v4271_v4 }
  0xd3   : > { %1115 = vperm.xlu1 %3981, %v665_v24  }
  0xd5   : > { %787 = vperm.xlu0 %4001, %v4548_v25  }
  0xd7   : > { %3982 = vset.pattern.permute.xlu1 %v4270_v1 }
  0xd8   : > { %742 = vperm.xlu1 %3982, %v667_v27  }
  0xd9   : > { %797 = vperm.xlu0 %4001, %v4553_v26  }
  0xdc   : > { %3983 = vset.pattern.permute.xlu1 %v4269_v0 }
  0xdd   : > { %927 = vperm.xlu1 %3983, %v667_v27   ;;  %807 = vperm.xlu0 %4001, %v4564_v28  }
  0xe1   : > { %931 = vperm.xlu1 %3983, %v668_v19   ;;  %817 = vperm.xlu0 %4001, %v4569_v29  }
  0xe5   : > { %3984 = vset.pattern.permute.xlu1 %v4271_v4  ;;  %827 = vperm.xlu0 %4001, %v4573_v30  }
  0xe6   : > { %1123 = vperm.xlu1 %3984, %v667_v27  }
  0xe9   : > { %4010 = vset.pattern.permute.xlu0 %v4271_v4 }
  0xea   : > { %3985 = vset.pattern.permute.xlu1 %v4270_v1  ;;  %1175 = vperm.xlu0 %4010, %v4564_v28  }
  0xeb   : > { %752 = vperm.xlu1 %3985, %v669_v31  }
  0xee   : > { %1183 = vperm.xlu0 %4010, %v4569_v29  }
  0xef   : > { %3986 = vset.pattern.permute.xlu1 %v4269_v0 }
  0xf0   : > { %935 = vperm.xlu1 %3986, %v669_v31  }
  0xf2   : > { %1191 = vperm.xlu0 %4010, %v4573_v30  }
  0xf4   : > { %939 = vperm.xlu1 %3986, %v670_v20  }
  0xf6   : > { %1199 = vperm.xlu0 %4010, %v4612_v50  }
  0xf8   : > { %v698_v34 = vpop.permute.xlu1 %697  ;;  %3987 = vset.pattern.permute.xlu1 %v4271_v4  ;;  %v888_v35 = vpop.permute.xlu0 %887 }
  0xf9   : > { %1131 = vperm.xlu1 %3987, %v669_v31   ;;  %v855_v49 = vmul.f32 %v4604_v44, %v698_v34  ;;  %v1018_v55 = vmul.f32 %v4600_v42, %v888_v35 }
  0xfa   : > { %4015 = vset.pattern.permute.xlu0 %v4270_v1 }
  0xfb   : > { %837 = vperm.xlu0 %4015, %v4612_v50  }
  0xfd   : > { %v892_v40 = vpop.permute.xlu1 %891  ;;  %3988 = vset.pattern.permute.xlu1 %v4270_v1  ;;  %v1088_v41 = vpop.permute.xlu0 %1087 }
  0xfe   : > { %762 = vperm.xlu1 %3988, %v671_v37   ;;  %v1019_v46 = vmul.f32 %v4600_v42, %v892_v40  ;;  %v1215_v53 = vmul.f32 %v4607_v47, %v1088_v41 }
  0xff   : > { %847 = vperm.xlu0 %4015, %v4654_v39  }
 0x100   : > { %v1051_v52 = vadd.f32 %v1019_v46, %v855_v49 }
 0x101   : > { %v1096_v45 = vpop.permute.xlu0 %1095 }
 0x102   : > { %3989 = vset.pattern.permute.xlu1 %v4269_v0  ;;  %v1084_v48 = vpop.permute.xlu1 %1083  ;;  %v1247_v56 = vadd.f32 %v1215_v53, %v1051_v52  ;;  %v1217_v9 = vmul.f32 %v4607_v47, %v1096_v45 }
 0x103   : > { %943 = vperm.xlu1 %3989, %v671_v37   ;;  %v1214_v61 = vmul.f32 %v4607_v47, %v1084_v48  ;;  %4019 = vset.pattern.permute.xlu0 %v4271_v4 }
 0x104   : > { %v1284_v63 = vmul.f32 %v4625_v58, %v1247_v56  ;;  %1207 = vperm.xlu0 %4019, %v4654_v39  }
 0x105   : > { %v4614_v51 = vpop.permute.xlu0 %1103 }
 0x106   : > { %v1321_v12 = vadd.f32 %v4635_v5, %v1284_v63 }
 0x107   : > { %947 = vperm.xlu1 %3989, %v4531_v21   ;;  %v703_v54 = vpop.permute.xlu1 %702 }
 0x108   : > { %v856_v17 = vmul.f32 %v4604_v44, %v703_v54  ;;  %v1353_v21 = vmax.f32 %v1321_v12, 0.0  ;;  %v1219_v54 = vmul.f32 %v4607_v47, %v4614_v51 }
 0x10a   : > { %v693_v57 = vpop.permute.xlu0 %692 }
 0x10b   : > { %v854_v59 = vmul.f32 %v4604_v44, %v693_v57  ;;  %3991 = vset.pattern.permute.xlu1 %v4271_v4 }
 0x10c   : > { %1139 = vperm.xlu1 %3991, %v671_v37   ;;  %v896_v60 = vpop.permute.xlu1 %895 }
 0x10d   : > { %v1050_v62 = vadd.f32 %v1018_v55, %v854_v59  ;;  %v1020_v13 = vmul.f32 %v4600_v42, %v896_v60 }
 0x10e   : > { %v708_v2 = vpop.permute.xlu0 %707 }
 0x10f   : > { %v1246_v6 = vadd.f32 %v1214_v61, %v1050_v62  ;;  %v857_v7 = vmul.f32 %v4604_v44, %v708_v2  ;;  %v1052_v22 = vadd.f32 %v1020_v13, %v856_v17 }
 0x110   : > { %3992 = vset.pattern.permute.xlu1 %v4270_v1  ;;  %v900_v8 = vpop.permute.xlu1 %899 }
 0x111   : > { %v1021_v10 = vmul.f32 %v4600_v42, %v900_v8  ;;  %772 = vperm.xlu1 %3992, %v673_v3   ;;  %v1283_v11 = vmul.f32 %v4625_v58, %v1246_v6 }
 0x112   : > { %v718_v14 = vpop.permute.xlu0 %717 }
 0x113   : > { %v1053_v15 = vadd.f32 %v1021_v10, %v857_v7  ;;  %v1320_v16 = vadd.f32 %v4635_v5, %v1283_v11  ;;  %v859_v49 = vmul.f32 %v4604_v44, %v718_v14  ;;  %v677_v14 = vld [vmem:[%s4504_s27 + $0xa0] sm:$0xff] }
 0x115   : > { %v1249_v18 = vadd.f32 %v1217_v9, %v1053_v15  ;;  %3993 = vset.pattern.permute.xlu1 %v4269_v0  ;;  %v1092_v19 = vpop.permute.xlu1 %1091  ;;  %v1352_v20 = vmax.f32 %v1320_v16, 0.0 }
 0x116   : > { %v1216_v24 = vmul.f32 %v4607_v47, %v1092_v19  ;;  %951 = vperm.xlu1 %3993, %v673_v3   ;;  %v728_v27 = vpop.permute.xlu0 %727 }
 0x117   : > { %v1286_v31 = vmul.f32 %v4625_v58, %v1249_v18  ;;  %3716 = vmatprep.mubr.msk.f32.mxu0 %vm1392_vm0, %v1352_v20 }
 0x118   : > { %v1248_v34 = vadd.f32 %v1216_v24, %v1052_v22  ;;  %3717 = vmatmul.mubr.msk.f32.vlgmr.msra.gmra.mxu0 %vm1392_vm0, %v1353_v21 }
 0x119   : > { %v1323_v40 = vadd.f32 %v4635_v5, %v1286_v31 }
 0x11a   : > { %v1285_v35 = vmul.f32 %v4625_v58, %v1248_v34  ;;  %955 = vperm.xlu1 %3993, %v4542_v23   ;;  %v713_v37 = vpop.permute.xlu1 %712  ;;  %v4659_v43 = vpop.permute.xlu0 %737  ;;  %v675_v23 = vld [vmem:[%s4504_s27 + $0x90] sm:$0xff] }
 0x11b   : > { %v1355_v48 = vmax.f32 %v1323_v40, 0.0  ;;  %v858_v59 = vmul.f32 %v4604_v44, %v713_v37 }
 0x11c   : > { %v1322_v41 = vadd.f32 %v4635_v5, %v1285_v35 }
 0x11e   : > { %3994 = vset.pattern.permute.xlu1 %v4271_v4  ;;  %v1354_v45 = vmax.f32 %v1322_v41, 0.0  ;;  %v4668_v52 = vpop.permute.xlu0 %747 }
 0x11f   : > { %1147 = vperm.xlu1 %3994, %v673_v3   ;;  %v904_v46 = vpop.permute.xlu1 %903 }
 0x120   : > { %3719 = vmatprep.mubr.msk.f32.mxu0 %vm1392_vm0, %v1354_v45  ;;  %v1022_v56 = vmul.f32 %v4600_v42, %v904_v46 }
 0x121   : > { %3720 = vmatmul.mubr.msk.f32.gmra.mxu0 %vm1392_vm0, %v1355_v48 }
 0x122   : > { %v4677_v62 = vpop.permute.xlu0 %757  ;;  %v1054_v63 = vadd.f32 %v1022_v56, %v858_v59 }
 0x123   : > { %3995 = vset.pattern.permute.xlu1 %v4270_v1  ;;  %v908_v53 = vpop.permute.xlu1 %907 }
 0x124   : > { %v1023_v55 = vmul.f32 %v4600_v42, %v908_v53  ;;  %782 = vperm.xlu1 %3995, %v675_v23  }
 0x126   : > { %v1055_v57 = vadd.f32 %v1023_v55, %v859_v49  ;;  %v4684_v9 = vpop.permute.xlu0 %767  ;;  %v679_v49 = vld [vmem:[%s4504_s27 + $0xb0] sm:$0xff] }
 0x128   : > { %v1251_v60 = vadd.f32 %v1219_v54, %v1055_v57  ;;  %3996 = vset.pattern.permute.xlu1 %v4269_v0  ;;  %v1100_v61 = vpop.permute.xlu1 %1099 }
 0x129   : > { %v1218_v2 = vmul.f32 %v4607_v47, %v1100_v61  ;;  %959 = vperm.xlu1 %3996, %v675_v23  }
 0x12a   : > { %v1288_v51 = vmul.f32 %v4625_v58, %v1251_v60 }
 0x12b   : > { %v1250_v3 = vadd.f32 %v1218_v2, %v1054_v63  ;;  %v1112_v15 = vpop.permute.xlu0 %1111 }
 0x12c   : > { %v1325_v8 = vadd.f32 %v4635_v5, %v1288_v51  ;;  %v1221_v18 = vmul.f32 %v4607_v47, %v1112_v15 }
 0x12d   : > { %v1287_v6 = vmul.f32 %v4625_v58, %v1250_v3  ;;  %963 = vperm.xlu1 %3996, %v4548_v25   ;;  %v723_v7 = vpop.permute.xlu1 %722  ;;  %v861_v25 = vmul.f32 %v4604_v44, %v728_v27 }
 0x12e   : > { %v1357_v13 = vmax.f32 %v1325_v8, 0.0  ;;  %v860_v21 = vmul.f32 %v4604_v44, %v723_v7 }
 0x12f   : > { %v1324_v10 = vadd.f32 %v4635_v5, %v1287_v6  ;;  %v1120_v53 = vpop.permute.xlu0 %1119 }
 0x130   : > { %v1223_v56 = vmul.f32 %v4607_v47, %v1120_v53 }
 0x131   : > { %3997 = vset.pattern.permute.xlu1 %v4271_v4  ;;  %v1356_v11 = vmax.f32 %v1324_v10, 0.0 }
 0x132   : > { %1155 = vperm.xlu1 %3997, %v675_v23   ;;  %v912_v12 = vpop.permute.xlu1 %911 }
 0x133   : > { %3722 = vmatprep.mubr.msk.f32.mxu0 %vm1392_vm0, %v1356_v11  ;;  %v1024_v19 = vmul.f32 %v4600_v42, %v912_v12  ;;  %v1128_v15 = vpop.permute.xlu0 %1127 }
 0x134   : > { %3723 = vmatmul.mubr.msk.f32.gmra.mxu0 %vm1392_vm0, %v1357_v13 }
 0x135   : > { %v1056_v31 = vadd.f32 %v1024_v19, %v860_v21 }
 0x136   : > { %3998 = vset.pattern.permute.xlu1 %v4270_v1  ;;  %v916_v16 = vpop.permute.xlu1 %915 }
 0x137   : > { %v1025_v17 = vmul.f32 %v4600_v42, %v916_v16  ;;  %792 = vperm.xlu1 %3998, %v677_v14  }
 0x139   : > { %v1057_v20 = vadd.f32 %v1025_v17, %v861_v25  ;;  %v1225_v17 = vmul.f32 %v4607_v47, %v1128_v15 }
 0x13b   : > { %v1253_v22 = vadd.f32 %v1221_v18, %v1057_v20  ;;  %3999 = vset.pattern.permute.xlu1 %v4269_v0  ;;  %v1108_v24 = vpop.permute.xlu1 %1107 }
 0x13c   : > { %v1220_v27 = vmul.f32 %v4607_v47, %v1108_v24  ;;  %967 = vperm.xlu1 %3999, %v677_v14  }
 0x13d   : > { %v1290_v34 = vmul.f32 %v4625_v58, %v1253_v22 }
 0x13e   : > { %v1252_v35 = vadd.f32 %v1220_v27, %v1056_v31 }
 0x13f   : > { %v1327_v41 = vadd.f32 %v4635_v5, %v1290_v34 }
 0x140   : > { %v1289_v37 = vmul.f32 %v4625_v58, %v1252_v35  ;;  %971 = vperm.xlu1 %3999, %v4553_v26   ;;  %v733_v40 = vpop.permute.xlu1 %732  ;;  %v863_v26 = vmul.f32 %v4604_v44, %v4659_v43 }
 0x141   : > { %v1359_v48 = vmax.f32 %v1327_v41, 0.0  ;;  %v862_v60 = vmul.f32 %v4604_v44, %v733_v40 }
 0x142   : > { %v1326_v45 = vadd.f32 %v4635_v5, %v1289_v37 }
 0x144   : > { %v1358_v46 = vmax.f32 %v1326_v45, 0.0  ;;  %4000 = vset.pattern.permute.xlu1 %v4271_v4 }
 0x145   : > { %1163 = vperm.xlu1 %4000, %v677_v14   ;;  %v920_v23 = vpop.permute.xlu1 %919  ;;  %v681_v14 = vld [vmem:[%s4504_s27 + $0xc0] sm:$0xff] }
 0x146   : > { %3725 = vmatprep.mubr.msk.f32.mxu0 %vm1392_vm0, %v1358_v46  ;;  %v1026_v57 = vmul.f32 %v4600_v42, %v920_v23  ;;  %v1136_v23 = vpop.permute.xlu0 %1135 }
 0x147   : > { %3726 = vmatmul.mubr.msk.f32.gmra.mxu0 %vm1392_vm0, %v1359_v48  ;;  %v683_v48 = vld [vmem:[%s4504_s27 + $0xd0] sm:$0xff] }
 0x148   : > { %v1058_v2 = vadd.f32 %v1026_v57, %v862_v60 }
 0x149   : > { %4002 = vset.pattern.permute.xlu1 %v4270_v1  ;;  %v924_v54 = vpop.permute.xlu1 %923 }
 0x14a   : > { %v1027_v55 = vmul.f32 %v4600_v42, %v924_v54  ;;  %802 = vperm.xlu1 %4002, %v679_v49  }
 0x14c   : > { %v1059_v59 = vadd.f32 %v1027_v55, %v863_v26  ;;  %v1227_v26 = vmul.f32 %v4607_v47, %v1136_v23 }
 0x14e   : > { %v1255_v61 = vadd.f32 %v1223_v56, %v1059_v59  ;;  %4003 = vset.pattern.permute.xlu1 %v4269_v0  ;;  %v1116_v63 = vpop.permute.xlu1 %1115 }
 0x14f   : > { %v1222_v43 = vmul.f32 %v4607_v47, %v1116_v63  ;;  %975 = vperm.xlu1 %4003, %v679_v49  }
 0x150   : > { %v1292_v51 = vmul.f32 %v4625_v58, %v1255_v61 }
 0x151   : > { %v1254_v3 = vadd.f32 %v1222_v43, %v1058_v2 }
 0x152   : > { %v1329_v8 = vadd.f32 %v4635_v5, %v1292_v51  ;;  %v1144_v51 = vpop.permute.xlu0 %1143 }
 0x153   : > { %v1291_v6 = vmul.f32 %v4625_v58, %v1254_v3  ;;  %979 = vperm.xlu1 %4003, %v4564_v28   ;;  %v743_v7 = vpop.permute.xlu1 %742  ;;  %v865_v28 = vmul.f32 %v4604_v44, %v4668_v52  ;;  %v1229_v15 = vmul.f32 %v4607_v47, %v1144_v51 }
 0x154   : > { %v1361_v12 = vmax.f32 %v1329_v8, 0.0  ;;  %v864_v20 = vmul.f32 %v4604_v44, %v743_v7 }
 0x155   : > { %v1328_v10 = vadd.f32 %v4635_v5, %v1291_v6 }
 0x157   : > { %v1360_v11 = vmax.f32 %v1328_v10, 0.0  ;;  %4004 = vset.pattern.permute.xlu1 %v4271_v4 }
 0x158   : > { %1171 = vperm.xlu1 %4004, %v679_v49   ;;  %v928_v13 = vpop.permute.xlu1 %927 }
 0x159   : > { %3728 = vmatprep.mubr.msk.f32.mxu0 %vm1392_vm0, %v1360_v11  ;;  %v1028_v18 = vmul.f32 %v4600_v42, %v928_v13  ;;  %v1152_v11 = vpop.permute.xlu0 %1151 }
 0x15a   : > { %3729 = vmatmul.mubr.msk.f32.gmra.mxu0 %vm1392_vm0, %v1361_v12  ;;  %v685_v12 = vld [vmem:[%s4504_s27 + $0xe0] sm:$0xff]  ;;  %v1231_v23 = vmul.f32 %v4607_v47, %v1152_v11 }
 0x15b   : > { %v1060_v24 = vadd.f32 %v1028_v18, %v864_v20 }
 0x15c   : > { %4005 = vset.pattern.permute.xlu1 %v4270_v1  ;;  %v932_v25 = vpop.permute.xlu1 %931 }
 0x15d   : > { %v1029_v16 = vmul.f32 %v4600_v42, %v932_v25  ;;  %812 = vperm.xlu1 %4005, %v681_v14  }
 0x15f   : > { %v1061_v19 = vadd.f32 %v1029_v16, %v865_v28  ;;  %v4768_v16 = vpop.permute.xlu0 %1159 }
 0x161   : > { %v1257_v21 = vadd.f32 %v1225_v17, %v1061_v19  ;;  %4006 = vset.pattern.permute.xlu1 %v4269_v0  ;;  %v1124_v22 = vpop.permute.xlu1 %1123 }
 0x162   : > { %v1224_v52 = vmul.f32 %v4607_v47, %v1124_v22  ;;  %983 = vperm.xlu1 %4006, %v681_v14  }
 0x163   : > { %v1294_v31 = vmul.f32 %v4625_v58, %v1257_v21 }
 0x164   : > { %v1256_v27 = vadd.f32 %v1224_v52, %v1060_v24  ;;  %v4774_v24 = vpop.permute.xlu0 %1167 }
 0x165   : > { %v1331_v37 = vadd.f32 %v4635_v5, %v1294_v31 }
 0x166   : > { %v1293_v34 = vmul.f32 %v4625_v58, %v1256_v27  ;;  %987 = vperm.xlu1 %4006, %v4569_v29   ;;  %v753_v35 = vpop.permute.xlu1 %752  ;;  %v867_v29 = vmul.f32 %v4604_v44, %v4677_v62 }
 0x167   : > { %v1363_v45 = vmax.f32 %v1331_v37, 0.0  ;;  %v866_v56 = vmul.f32 %v4604_v44, %v753_v35  ;;  %v1835_v35 = vld [vmem:[#allocation5 + $0x78] sm:$0xff] }
 0x168   : > { %v1330_v40 = vadd.f32 %v4635_v5, %v1293_v34  ;;  %3764 = vmatprep.subr.mxu1 %v1835_v35 }
 0x16a   : > { %v1362_v41 = vmax.f32 %v1330_v40, 0.0  ;;  %4007 = vset.pattern.permute.xlu1 %v4271_v4 }
 0x16b   : > { %1179 = vperm.xlu1 %4007, %v681_v14   ;;  %v936_v46 = vpop.permute.xlu1 %935 }
 0x16c   : > { %3731 = vmatprep.mubr.msk.f32.mxu0 %vm1392_vm0, %v1362_v41  ;;  %v1030_v54 = vmul.f32 %v4600_v42, %v936_v46  ;;  %v687_v46 = vld [vmem:[%s4504_s27 + $0xf0] sm:$0xff]  ;;  %s652_s27 = scalar_lea.vmem %s5569_s15, %s3567_s0 }
 0x16d   : > { %3732 = vmatmul.mubr.msk.f32.gmra.mxu0 %vm1392_vm0, %v1363_v45  ;;  %v778_v45 = vpop.permute.xlu0 %777 }
 0x16e   : > { %v1062_v60 = vadd.f32 %v1030_v54, %v866_v56 }
 0x16f   : > { %4008 = vset.pattern.permute.xlu1 %v4270_v1  ;;  %v940_v49 = vpop.permute.xlu1 %939 }
 0x170   : > { %v1031_v53 = vmul.f32 %v4600_v42, %v940_v49  ;;  %822 = vperm.xlu1 %4008, %v683_v48  }
 0x171   : > { %v788_v51 = vpop.permute.xlu0 %787 }
 0x172   : > { %v1063_v55 = vadd.f32 %v1031_v53, %v867_v29 }
 0x174   : > { %v1259_v57 = vadd.f32 %v1227_v26, %v1063_v55  ;;  %4009 = vset.pattern.permute.xlu1 %v4269_v0  ;;  %v1132_v59 = vpop.permute.xlu1 %1131 }
 0x175   : > { %v1226_v62 = vmul.f32 %v4607_v47, %v1132_v59  ;;  %991 = vperm.xlu1 %4009, %v683_v48  }
 0x176   : > { %v1296_v61 = vmul.f32 %v4625_v58, %v1259_v57 }
 0x177   : > { %v1258_v63 = vadd.f32 %v1226_v62, %v1062_v60 }
 0x178   : > { %v1333_v3 = vadd.f32 %v4635_v5, %v1296_v61 }
 0x179   : > { %v1295_v2 = vmul.f32 %v4625_v58, %v1258_v63  ;;  %995 = vperm.xlu1 %4009, %v4573_v30   ;;  %v763_v43 = vpop.permute.xlu1 %762  ;;  %v869_v30 = vmul.f32 %v4604_v44, %v4684_v9 }
 0x17a   : > { %v1365_v8 = vmax.f32 %v1333_v3, 0.0  ;;  %v868_v17 = vmul.f32 %v4604_v44, %v763_v43  ;;  %v1834_v3 = vld [vmem:[#allocation5 + $0x70] sm:$0xff] }
 0x17b   : > { %v1332_v6 = vadd.f32 %v4635_v5, %v1295_v2 }
 0x17d   : > { %v1364_v7 = vmax.f32 %v1332_v6, 0.0  ;;  %4011 = vset.pattern.permute.xlu1 %v4271_v4  ;;  %v1833_v6 = vld [vmem:[#allocation5 + $0x68] sm:$0xff] }
 0x17e   : > { %1187 = vperm.xlu1 %4011, %v683_v48   ;;  %v944_v10 = vpop.permute.xlu1 %943 }
 0x17f   : > { %3734 = vmatprep.mubr.msk.f32.mxu0 %vm1392_vm0, %v1364_v7  ;;  %v1032_v28 = vmul.f32 %v4600_v42, %v944_v10  ;;  %v1832_v10 = vld [vmem:[#allocation5 + $0x60] sm:$0xff] }
 0x180   : > { %3735 = vmatmul.mubr.msk.f32.gmra.mxu0 %vm1392_vm0, %v1365_v8  ;;  %v1233_v8 = vmul.f32 %v4607_v47, %v4768_v16 }
 0x181   : > { %v1064_v9 = vadd.f32 %v1032_v28, %v868_v17  ;;  %v1830_v28 = vld [vmem:[#allocation5 + $0x50] sm:$0xff] }
 0x182   : > { %4012 = vset.pattern.permute.xlu1 %v4270_v1  ;;  %v948_v13 = vpop.permute.xlu1 %947 }
 0x183   : > { %v1033_v14 = vmul.f32 %v4600_v42, %v948_v13  ;;  %832 = vperm.xlu1 %4012, %v685_v12  }
 0x185   : > { %v1065_v25 = vadd.f32 %v1033_v14, %v869_v30  ;;  %v1831_v30 = vld [vmem:[#allocation5 + $0x58] sm:$0xff] }
 0x187   : > { %v1261_v18 = vadd.f32 %v1229_v15, %v1065_v25  ;;  %4013 = vset.pattern.permute.xlu1 %v4269_v0  ;;  %v1140_v19 = vpop.permute.xlu1 %1139 }
 0x188   : > { %v1228_v20 = vmul.f32 %v4607_v47, %v1140_v19  ;;  %999 = vperm.xlu1 %4013, %v685_v12  }
 0x189   : > { %v1298_v21 = vmul.f32 %v4625_v58, %v1261_v18  ;;  %v1829_v18 = vld [vmem:[#allocation5 + $0x48] sm:$0xff] }
 0x18a   : > { %v1260_v22 = vadd.f32 %v1228_v20, %v1064_v9  ;;  %v1828_v9 = vld [vmem:[#allocation5 + $0x40] sm:$0xff] }
 0x18b   : > { %v1335_v27 = vadd.f32 %v4635_v5, %v1298_v21 }
 0x18c   : > { %v1297_v52 = vmul.f32 %v4625_v58, %v1260_v22  ;;  %1003 = vperm.xlu1 %4013, %v4612_v50   ;;  %v773_v31 = vpop.permute.xlu1 %772  ;;  %v871_v50 = vmul.f32 %v4604_v44, %v778_v45 }
 0x18d   : > { %v1367_v40 = vmax.f32 %v1335_v27, 0.0  ;;  %v870_v26 = vmul.f32 %v4604_v44, %v773_v31  ;;  %v1826_v27 = vld [vmem:[#allocation5 + $0x30] sm:$0xff] }
 0x18e   : > { %v1334_v34 = vadd.f32 %v4635_v5, %v1297_v52  ;;  %v1827_v52 = vld [vmem:[#allocation5 + $0x38] sm:$0xff] }
 0x190   : > { %v1366_v37 = vmax.f32 %v1334_v34, 0.0  ;;  %4014 = vset.pattern.permute.xlu1 %v4271_v4 }
 0x191   : > { %1195 = vperm.xlu1 %4014, %v685_v12   ;;  %v952_v41 = vpop.permute.xlu1 %951 }
 0x192   : > { %3737 = vmatprep.mubr.msk.f32.mxu0 %vm1392_vm0, %v1366_v37  ;;  %v1034_v49 = vmul.f32 %v4600_v42, %v952_v41  ;;  %v1825_v41 = vld [vmem:[#allocation5 + $0x28] sm:$0xff] }
 0x193   : > { %3738 = vmatmul.mubr.msk.f32.gmra.mxu0 %vm1392_vm0, %v1367_v40 }
 0x194   : > { %v1066_v56 = vadd.f32 %v1034_v49, %v870_v26  ;;  %v1823_v49 = vld [vmem:[#allocation5 + $0x18] sm:$0xff] }
 0x195   : > { %4016 = vset.pattern.permute.xlu1 %v4270_v1  ;;  %v956_v48 = vpop.permute.xlu1 %955 }
 0x196   : > { %v1035_v29 = vmul.f32 %v4600_v42, %v956_v48  ;;  %842 = vperm.xlu1 %4016, %v687_v46  }
 0x198   : > { %v1067_v53 = vadd.f32 %v1035_v29, %v871_v50  ;;  %v1824_v50 = vld [vmem:[#allocation5 + $0x20] sm:$0xff] }
 0x19a   : > { %v1263_v54 = vadd.f32 %v1231_v23, %v1067_v53  ;;  %4017 = vset.pattern.permute.xlu1 %v4269_v0  ;;  %v1148_v55 = vpop.permute.xlu1 %1147  ;;  %v1235_v23 = vmul.f32 %v4607_v47, %v4774_v24 }
 0x19b   : > { %v1230_v57 = vmul.f32 %v4607_v47, %v1148_v55  ;;  %1007 = vperm.xlu1 %4017, %v687_v46  }
 0x19c   : > { %v1300_v1 = vmul.f32 %v4625_v58, %v1263_v54  ;;  %v1822_v54 = vld [vmem:[#allocation5 + $0x10] sm:$0xff] }
 0x19d   : > { %v1262_v59 = vadd.f32 %v1230_v57, %v1066_v56 }
 0x19e   : > { %v1337_v61 = vadd.f32 %v4635_v5, %v1300_v1 }
 0x19f   : > { %1011 = vperm.xlu1 %4017, %v4654_v39   ;;  %v783_v60 = vpop.permute.xlu1 %782  ;;  %v1299_v62 = vmul.f32 %v4625_v58, %v1262_v59  ;;  %v873_v39 = vmul.f32 %v4604_v44, %v788_v51  ;;  %v1821_v59 = vld [vmem:[#allocation5 + $0x8] sm:$0xff] }
 0x1a0   : > { %v1369_v43 = vmax.f32 %v1337_v61, 0.0  ;;  %v872_v13 = vmul.f32 %v4604_v44, %v783_v60  ;;  %v1820_v61 = vld [vmem:[#allocation5] sm:$0xff] }
 0x1a1   : > { %v1336_v63 = vadd.f32 %v4635_v5, %v1299_v62 }
 0x1a3   : > { %4018 = vset.pattern.permute.xlu1 %v4271_v4  ;;  %v1368_v0 = vmax.f32 %v1336_v63, 0.0 }
 0x1a4   : > { %1203 = vperm.xlu1 %4018, %v687_v46   ;;  %v960_v2 = vpop.permute.xlu1 %959 }
 0x1a5   : > { %3740 = vmatprep.mubr.msk.f32.mxu1 %vm1392_vm0, %v1368_v0  ;;  %v1036_v11 = vmul.f32 %v4600_v42, %v960_v2 }
 0x1a6   : > { %3741 = vmatmul.mubr.msk.f32.vlgmr.msra.gmra.mxu1 %vm1392_vm0, %v1369_v43 }
 0x1a7   : > { %3765 = vmatpush3.msra.mxu1 %v1835_v35  ;;  %v1068_v25 = vadd.f32 %v1036_v11, %v872_v13  ;;  %v798_v35 = vpop.permute.xlu0 %797 }
 0x1a8   : > { %v964_v7 = vpop.permute.xlu1 %963  ;;  %3766 = vmatprep.subr.mxu1 %v1834_v3  ;;  %v875_v45 = vmul.f32 %v4604_v44, %v798_v35 }
 0x1a9   : > { %v1037_v4 = vmul.f32 %v4600_v42, %v964_v7  ;;  %3767 = vmatpush3.msra.mxu1 %v1834_v3 }
 0x1aa   : > { %3768 = vmatprep.subr.mxu1 %v1833_v6 }
 0x1ab   : > { %v1069_v12 = vadd.f32 %v1037_v4, %v873_v39  ;;  %3769 = vmatpush3.msra.mxu1 %v1833_v6  ;;  %v808_v46 = vpop.permute.xlu0 %807 }
 0x1ac   : > { %3770 = vmatprep.subr.mxu1 %v1832_v10  ;;  %v877_v4 = vmul.f32 %v4604_v44, %v808_v46 }
 0x1ad   : > { %v1265_v14 = vadd.f32 %v1233_v8, %v1069_v12  ;;  %v1156_v15 = vpop.permute.xlu1 %1155  ;;  %3771 = vmatpush3.msra.mxu1 %v1832_v10 }
 0x1ae   : > { %v1232_v16 = vmul.f32 %v4607_v47, %v1156_v15  ;;  %3772 = vmatprep.subr.mxu1 %v1831_v30 }
 0x1af   : > { %v1302_v17 = vmul.f32 %v4625_v58, %v1265_v14  ;;  %3773 = vmatpush3.msra.mxu1 %v1831_v30  ;;  %v818_v1 = vpop.permute.xlu0 %817 }
 0x1b0   : > { %v1264_v19 = vadd.f32 %v1232_v16, %v1068_v25  ;;  %3774 = vmatprep.subr.mxu1 %v1830_v28 }
 0x1b1   : > { %3775 = vmatpush3.msra.mxu1 %v1830_v28  ;;  %v1339_v22 = vadd.f32 %v4635_v5, %v1302_v17 }
 0x1b2   : > { %v1301_v20 = vmul.f32 %v4625_v58, %v1264_v19  ;;  %v793_v21 = vpop.permute.xlu1 %792  ;;  %3776 = vmatprep.subr.mxu1 %v1829_v18 }
 0x1b3   : > { %3777 = vmatpush3.msra.mxu1 %v1829_v18  ;;  %v1371_v40 = vmax.f32 %v1339_v22, 0.0  ;;  %v874_v55 = vmul.f32 %v4604_v44, %v793_v21  ;;  %v828_v51 = vpop.permute.xlu0 %827 }
 0x1b4   : > { %v1338_v31 = vadd.f32 %v4635_v5, %v1301_v20  ;;  %3778 = vmatprep.subr.mxu1 %v1828_v9 }
 0x1b5   : > { %3779 = vmatpush3.msra.mxu1 %v1828_v9 }
 0x1b6   : > { %v1370_v34 = vmax.f32 %v1338_v31, 0.0  ;;  %3780 = vmatprep.subr.mxu1 %v1827_v52 }
 0x1b7   : > { %v968_v37 = vpop.permute.xlu1 %967  ;;  %3781 = vmatpush3.msra.mxu1 %v1827_v52  ;;  %v1176_v8 = vpop.permute.xlu0 %1175 }
 0x1b8   : > { %3743 = vmatprep.mubr.msk.f32.mxu1 %vm1392_vm0, %v1370_v34  ;;  %3782 = vmatprep.subr.mxu1 %v1826_v27  ;;  %v1038_v53 = vmul.f32 %v4600_v42, %v968_v37  ;;  %v1237_v12 = vmul.f32 %v4607_v47, %v1176_v8  ;;  %v879_v34 = vmul.f32 %v4604_v44, %v818_v1 }
 0x1b9   : > { %3744 = vmatmul.mubr.msk.f32.gmra.mxu1 %vm1392_vm0, %v1371_v40 }
 0x1ba   : > { %3783 = vmatpush3.msra.mxu1 %v1826_v27  ;;  %v1070_v60 = vadd.f32 %v1038_v53, %v874_v55 }
 0x1bb   : > { %v972_v48 = vpop.permute.xlu1 %971  ;;  %3784 = vmatprep.subr.mxu1 %v1825_v41  ;;  %v1184_v27 = vpop.permute.xlu0 %1183 }
 0x1bc   : > { %v1039_v29 = vmul.f32 %v4600_v42, %v972_v48  ;;  %3785 = vmatpush3.msra.mxu1 %v1825_v41  ;;  %v1239_v40 = vmul.f32 %v4607_v47, %v1184_v27 }
 0x1bd   : > { %3786 = vmatprep.subr.mxu1 %v1824_v50 }
 0x1be   : > { %v1071_v26 = vadd.f32 %v1039_v29, %v875_v45  ;;  %3787 = vmatpush3.msra.mxu1 %v1824_v50 }
 0x1bf   : > { %3788 = vmatprep.subr.mxu1 %v1823_v49 }
 0x1c0   : > { %v1267_v56 = vadd.f32 %v1235_v23, %v1071_v26  ;;  %v1164_v57 = vpop.permute.xlu1 %1163  ;;  %3789 = vmatpush3.msra.mxu1 %v1823_v49 }
 0x1c1   : > { %v1234_v24 = vmul.f32 %v4607_v47, %v1164_v57  ;;  %3790 = vmatprep.subr.mxu1 %v1822_v54 }
 0x1c2   : > { %v1304_v62 = vmul.f32 %v4625_v58, %v1267_v56  ;;  %3791 = vmatpush3.msra.mxu1 %v1822_v54 }
 0x1c3   : > { %v1266_v63 = vadd.f32 %v1234_v24, %v1070_v60  ;;  %3792 = vmatprep.subr.mxu1 %v1821_v59  ;;  %v1192_v60 = vpop.permute.xlu0 %1191 }
 0x1c4   : > { %3793 = vmatpush3.msra.mxu1 %v1821_v59  ;;  %v1341_v43 = vadd.f32 %v4635_v5, %v1304_v62  ;;  %v881_v62 = vmul.f32 %v4604_v44, %v828_v51 }
 0x1c5   : > { %v1303_v0 = vmul.f32 %v4625_v58, %v1266_v63  ;;  %v803_v2 = vpop.permute.xlu1 %802  ;;  %3794 = vmatprep.subr.mxu1 %v1820_v61  ;;  %v1241_v63 = vmul.f32 %v4607_v47, %v1192_v60 }
 0x1c6   : > { %3795 = vmatpush3.msra.mxu1 %v1820_v61  ;;  %v1373_v7 = vmax.f32 %v1341_v43, 0.0  ;;  %v876_v14 = vmul.f32 %v4604_v44, %v803_v2 }
 0x1c7   : > { %v1340_v3 = vadd.f32 %v4635_v5, %v1303_v0 }
 0x1c9   : > { %v1372_v39 = vmax.f32 %v1340_v3, 0.0 }
 0x1ca   : > { %v976_v6 = vpop.permute.xlu1 %975 }
 0x1cb   : > { %3746 = vmatprep.mubr.msk.f32.mxu1 %vm1392_vm0, %v1372_v39  ;;  %v1040_v30 = vmul.f32 %v4600_v42, %v976_v6 }
 0x1cc   : > { %3747 = vmatmul.mubr.msk.f32.gmra.mxu1 %vm1392_vm0, %v1373_v7 }
 0x1cd   : > { %v1072_v25 = vadd.f32 %v1040_v30, %v876_v14 }
 0x1ce   : > { %v980_v10 = vpop.permute.xlu1 %979 }
 0x1cf   : > { %v1041_v11 = vmul.f32 %v4600_v42, %v980_v10 }
 0x1d1   : > { %v1073_v13 = vadd.f32 %v1041_v11, %v877_v4 }
 0x1d3   : > { %v1269_v15 = vadd.f32 %v1237_v12, %v1073_v13  ;;  %v1172_v28 = vpop.permute.xlu1 %1171  ;;  %v1200_v12 = vpop.permute.xlu0 %1199 }
 0x1d4   : > { %v1236_v16 = vmul.f32 %v4607_v47, %v1172_v28 }
 0x1d5   : > { %v1306_v17 = vmul.f32 %v4625_v58, %v1269_v15 }
 0x1d6   : > { %v1268_v18 = vadd.f32 %v1236_v16, %v1072_v25 }
 0x1d7   : > { %v1343_v20 = vadd.f32 %v4635_v5, %v1306_v17  ;;  %v838_v28 = vpop.permute.xlu0 %837 }
 0x1d8   : > { %v1305_v19 = vmul.f32 %v4625_v58, %v1268_v18  ;;  %v813_v9 = vpop.permute.xlu1 %812  ;;  %v883_v25 = vmul.f32 %v4604_v44, %v838_v28 }
 0x1d9   : > { %v1375_v52 = vmax.f32 %v1343_v20, 0.0  ;;  %v878_v46 = vmul.f32 %v4604_v44, %v813_v9 }
 0x1da   : > { %v1342_v21 = vadd.f32 %v4635_v5, %v1305_v19  ;;  %v1243_v19 = vmul.f32 %v4607_v47, %v1200_v12 }
 0x1dc   : > { %v1374_v22 = vmax.f32 %v1342_v21, 0.0 }
 0x1dd   : > { %v984_v31 = vpop.permute.xlu1 %983 }
 0x1de   : > { %3749 = vmatprep.mubr.msk.f32.mxu1 %vm1392_vm0, %v1374_v22  ;;  %v1042_v41 = vmul.f32 %v4600_v42, %v984_v31 }
 0x1df   : > { %3750 = vmatmul.mubr.msk.f32.gmra.mxu1 %vm1392_vm0, %v1375_v52 }
 0x1e0   : > { %v1074_v23 = vadd.f32 %v1042_v41, %v878_v46  ;;  %v848_v46 = vpop.permute.xlu0 %847 }
 0x1e1   : > { %v988_v35 = vpop.permute.xlu1 %987 }
 0x1e2   : > { %v1043_v37 = vmul.f32 %v4600_v42, %v988_v35  ;;  %v3718_v35 = vpop.f32.mrf.mxu0 }
 0x1e4   : > { %v1075_v45 = vadd.f32 %v1043_v37, %v879_v34 }
 0x1e6   : > { %v1271_v50 = vadd.f32 %v1239_v40, %v1075_v45  ;;  %v1180_v48 = vpop.permute.xlu1 %1179 }
 0x1e7   : > { %v1238_v29 = vmul.f32 %v4607_v47, %v1180_v48 }
 0x1e8   : > { %v1308_v49 = vmul.f32 %v4625_v58, %v1271_v50  ;;  %v1555_v50 = vpop.f32.mrf.mxu0 }
 0x1e9   : > { %v1270_v53 = vadd.f32 %v1238_v29, %v1074_v23 }
 0x1ea   : > { %v1345_v55 = vadd.f32 %v4635_v5, %v1308_v49  ;;  %v3721_v49 = vpop.f32.mrf.mxu0 }
 0x1eb   : > { %v1307_v26 = vmul.f32 %v4625_v58, %v1270_v53  ;;  %v823_v54 = vpop.permute.xlu1 %822  ;;  %v1208_v53 = vpop.permute.xlu0 %1207 }
 0x1ec   : > { %v1377_v1 = vmax.f32 %v1345_v55, 0.0  ;;  %v880_v43 = vmul.f32 %v4604_v44, %v823_v54  ;;  %v1565_v54 = vpop.f32.mrf.mxu0  ;;  %v885_v55 = vmul.f32 %v4604_v44, %v848_v46 }
 0x1ed   : > { %v1344_v56 = vadd.f32 %v4635_v5, %v1307_v26 }
 0x1ef   : > { %v1376_v57 = vmax.f32 %v1344_v56, 0.0 }
 0x1f0   : > { %v992_v59 = vpop.permute.xlu1 %991 }
 0x1f1   : > { %3752 = vmatprep.mubr.msk.f32.mxu1 %vm1392_vm0, %v1376_v57  ;;  %v1044_v0 = vmul.f32 %v4600_v42, %v992_v59  ;;  %v1245_v57 = vmul.f32 %v4607_v47, %v1208_v53 }
 0x1f2   : > { %3753 = vmatmul.mubr.msk.f32.gmra.mxu1 %vm1392_vm0, %v1377_v1 }
 0x1f3   : > { %v1076_v6 = vadd.f32 %v1044_v0, %v880_v43 }
 0x1f4   : > { %v996_v24 = vpop.permute.xlu1 %995  ;;  %v3724_v59 = vpop.f32.mrf.mxu0 }
 0x1f5   : > { %v1045_v61 = vmul.f32 %v4600_v42, %v996_v24 }
 0x1f6   : > { %v1575_v43 = vpop.f32.mrf.mxu0 }
 0x1f7   : > { %v1077_v2 = vadd.f32 %v1045_v61, %v881_v62 }
 0x1f9   : > { %v1273_v3 = vadd.f32 %v1241_v63, %v1077_v2  ;;  %v1188_v39 = vpop.permute.xlu1 %1187  ;;  %v4883_v2 = vld [vmem:[%s5558_s4] ss:$0 sm:$0xff] }
 0x1fa   : > { %v1240_v7 = vmul.f32 %v4607_v47, %v1188_v39  ;;  %v1719_v39 = vmul.f32 %v4883_v2, %v1555_v50 }
 0x1fb   : > { %v1310_v8 = vmul.f32 %v4625_v58, %v1273_v3 }
 0x1fc   : > { %v1272_v4 = vadd.f32 %v1240_v7, %v1076_v6 }
 0x1fd   : > { %v1347_v11 = vadd.f32 %v4635_v5, %v1310_v8 }
 0x1fe   : > { %v1309_v10 = vmul.f32 %v4625_v58, %v1272_v4  ;;  %v833_v51 = vpop.permute.xlu1 %832 }
 0x1ff   : > { %v1379_v14 = vmax.f32 %v1347_v11, 0.0  ;;  %v882_v20 = vmul.f32 %v4604_v44, %v833_v51 }
 0x200   : > { %v1346_v30 = vadd.f32 %v4635_v5, %v1309_v10  ;;  %v1721_v10 = vmul.f32 %v4883_v2, %v1565_v54 }
 0x202   : > { %v1378_v13 = vmax.f32 %v1346_v30, 0.0 }
 0x203   : > { %v1000_v15 = vpop.permute.xlu1 %999 }
 0x204   : > { %3755 = vmatprep.mubr.msk.f32.mxu1 %vm1392_vm0, %v1378_v13  ;;  %v1046_v18 = vmul.f32 %v4600_v42, %v1000_v15 }
 0x205   : > { %3756 = vmatmul.mubr.msk.f32.gmra.mxu1 %vm1392_vm0, %v1379_v14 }
 0x206   : > { %v1078_v52 = vadd.f32 %v1046_v18, %v882_v20 }
 0x207   : > { %v1004_v16 = vpop.permute.xlu1 %1003  ;;  %v3727_v6 = vpop.f32.mrf.mxu0 }
 0x208   : > { %v1047_v17 = vmul.f32 %v4600_v42, %v1004_v16 }
 0x209   : > { %v1585_v11 = vpop.f32.mrf.mxu0 }
 0x20a   : > { %v1079_v9 = vadd.f32 %v1047_v17, %v883_v25  ;;  %v1723_v25 = vmul.f32 %v4883_v2, %v1575_v43  ;;  %v1724_v17 = vmul.f32 %v3724_v59, %v4883_v2  ;;  %v1725_v20 = vmul.f32 %v4883_v2, %v1585_v11 }
 0x20c   : > { %v1275_v21 = vadd.f32 %v1243_v19, %v1079_v9  ;;  %v1196_v22 = vpop.permute.xlu1 %1195 }
 0x20d   : > { %v1242_v31 = vmul.f32 %v4607_v47, %v1196_v22 }
 0x20e   : > { %v1312_v27 = vmul.f32 %v4625_v58, %v1275_v21 }
 0x20f   : > { %v1274_v34 = vadd.f32 %v1242_v31, %v1078_v52  ;;  %v1726_v31 = vmul.f32 %v3727_v6, %v4883_v2 }
 0x210   : > { %v1349_v41 = vadd.f32 %v4635_v5, %v1312_v27 }
 0x211   : > { %v1311_v37 = vmul.f32 %v4625_v58, %v1274_v34  ;;  %v843_v40 = vpop.permute.xlu1 %842 }
 0x212   : > { %v1381_v29 = vmax.f32 %v1349_v41, 0.0  ;;  %v884_v24 = vmul.f32 %v4604_v44, %v843_v40  ;;  %v1720_v44 = vmul.f32 %v3718_v35, %v4883_v2 }
 0x213   : > { %v1348_v45 = vadd.f32 %v4635_v5, %v1311_v37 }
 0x215   : > { %v1380_v48 = vmax.f32 %v1348_v45, 0.0 }
 0x216   : > { %v1008_v23 = vpop.permute.xlu1 %1007 }
 0x217   : > { %3758 = vmatprep.mubr.msk.f32.mxu1 %vm1392_vm0, %v1380_v48  ;;  %v1048_v1 = vmul.f32 %v4600_v42, %v1008_v23 }
 0x218   : > { %3759 = vmatmul.mubr.msk.f32.gmra.mxu1 %vm1392_vm0, %v1381_v29 }
 0x219   : > { %v1080_v63 = vadd.f32 %v1048_v1, %v884_v24 }
 0x21a   : > { %v1012_v26 = vpop.permute.xlu1 %1011  ;;  %v3730_v13 = vpop.f32.mrf.mxu0 }
 0x21b   : > { %v1049_v56 = vmul.f32 %v4600_v42, %v1012_v26  ;;  %v1728_v45 = vmul.f32 %v3730_v13, %v4883_v2  ;;  %v2191_v13 = vld [vmem:[#allocation8 + $0xc0] sm:$0xff] }
 0x21c   : > { %v1595_v18 = vpop.f32.mrf.mxu0 }
 0x21d   : > { %v1081_v60 = vadd.f32 %v1049_v56, %v885_v55  ;;  %v1727_v35 = vmul.f32 %v4883_v2, %v1595_v18  ;;  %v2183_v18 = vld [vmem:[#allocation8 + $0x80] sm:$0xff] }
 0x21f   : > { %v1277_v62 = vadd.f32 %v1245_v57, %v1081_v60  ;;  %v1204_v61 = vpop.permute.xlu1 %1203 }
 0x220   : > { %v1244_v0 = vmul.f32 %v4607_v47, %v1204_v61  ;;  %v4892_v47 = vld [vmem:[%s5558_s4 + $0x1] ss:$0 sm:$0xff] }
 0x221   : > { %v1314_v3 = vmul.f32 %v4625_v58, %v1277_v62  ;;  %v1756_v4 = vadd.f32 %v4892_v47, %v1719_v39  ;;  %v1757_v30 = vadd.f32 %v4892_v47, %v1720_v44  ;;  %v1758_v28 = vadd.f32 %v4892_v47, %v1721_v10 }
 0x222   : > { %v1276_v42 = vadd.f32 %v1244_v0, %v1080_v63  ;;  %v1760_v9 = vadd.f32 %v4892_v47, %v1723_v25  ;;  %v1761_v52 = vadd.f32 %v4892_v47, %v1724_v17  ;;  %v1762_v34 = vadd.f32 %v4892_v47, %v1725_v20  ;;  %v2187_v25 = vld [vmem:[#allocation8 + $0xa0] sm:$0xff]  ;;  %v2184_v17 = vld [vmem:[#allocation8 + $0x88] sm:$0xff]  ;;  %v2181_v20 = vld [vmem:[#allocation8 + $0x70] sm:$0xff] }
 0x223   : > { %v1351_v8 = vadd.f32 %v4635_v5, %v1314_v3  ;;  %v1788_v15 = vmax.f32 %v1756_v4, 0.0  ;;  %v1789_v16 = vmax.f32 %v1757_v30, 0.0  ;;  %v1790_v19 = vmax.f32 %v1758_v28, 0.0  ;;  %v2196_v4 = vld [vmem:[#allocation8 + $0xe8] sm:$0xff]  ;;  %v2193_v30 = vld [vmem:[#allocation8 + $0xd0] sm:$0xff] }
 0x224   : > { %v1313_v7 = vmul.f32 %v4625_v58, %v1276_v42  ;;  %v1722_v58 = vmul.f32 %v3721_v49, %v4883_v2  ;;  %v1792_v27 = vmax.f32 %v1760_v9, 0.0  ;;  %v1793_v40 = vmax.f32 %v1761_v52, 0.0  ;;  %v2188_v28 = vld [vmem:[#allocation8 + $0xa8] sm:$0xff] }
 0x225   : > { %v1383_v14 = vmax.f32 %v1351_v8, 0.0  ;;  %v1763_v41 = vadd.f32 %v4892_v47, %v1726_v31  ;;  %v1794_v46 = vmax.f32 %v1762_v34, 0.0  ;;  %v1764_v50 = vadd.f32 %v4892_v47, %v1727_v35  ;;  %v2197_v8 = vld [vmem:[#allocation8 + $0xf0] sm:$0xff]  ;;  %v2179_v34 = vld [vmem:[#allocation8 + $0x60] sm:$0xff] }
 0x226   : > { %v1350_v51 = vadd.f32 %v4635_v5, %v1313_v7  ;;  %v1759_v5 = vadd.f32 %v4892_v47, %v1722_v58  ;;  %v1765_v29 = vadd.f32 %v4892_v47, %v1728_v45  ;;  %v2198_v7 = vld [vmem:[#allocation8 + $0xf8] sm:$0xff]  ;;  %v2192_v58 = vld [vmem:[#allocation8 + $0xc8] sm:$0xff] }
 0x227   : > { %v1795_v23 = vmax.f32 %v1763_v41, 0.0  ;;  %v1796_v53 = vmax.f32 %v1764_v50, 0.0  ;;  %2199 = vmatprep.subr.mxu0 %v2198_v7  ;;  %v2176_v45 = vld [vmem:[#allocation8 + $0x48] sm:$0xff]  ;;  %v2175_v50 = vld [vmem:[#allocation8 + $0x40] sm:$0xff] }
 0x228   : > { %v1382_v12 = vmax.f32 %v1350_v51, 0.0  ;;  %v1791_v22 = vmax.f32 %v1759_v5, 0.0  ;;  %v1797_v54 = vmax.f32 %v1765_v29, 0.0  ;;  %2200 = vmatpush1.msra.mxu0 %v2197_v8  ;;  %v2195_v51 = vld [vmem:[#allocation8 + $0xe0] sm:$0xff]  ;;  %v2185_v5 = vld [vmem:[#allocation8 + $0x90] sm:$0xff]  ;;  %v2172_v29 = vld [vmem:[#allocation8 + $0x28] sm:$0xff] }
 0x229   : > { %2201 = vmatprep.subr.mxu0 %v2196_v4 }
 0x22a   : > { %3761 = vmatprep.mubr.msk.f32.mxu1 %vm1392_vm0, %v1382_v12  ;;  %2202 = vmatpush1.msra.mxu0 %v2195_v51  ;;  %v2194_v12 = vld [vmem:[#allocation8 + $0xd8] sm:$0xff] }
 0x22b   : > { %3762 = vmatmul.mubr.msk.f32.gmra.mxu1 %vm1392_vm0, %v1383_v14  ;;  %2203 = vmatprep.subr.mxu0 %v2194_v12  ;;  %v2190_v14 = vld [vmem:[#allocation8 + $0xb8] sm:$0xff] }
 0x22c   : > { %3796 = vmatprep.mubr.f32.mxu1 %v1788_v15  ;;  %2204 = vmatpush1.msra.mxu0 %v2193_v30  ;;  %v2189_v15 = vld [vmem:[#allocation8 + $0xb0] sm:$0xff] }
 0x22d   : > { %v3733_v21 = vpop.f32.mrf.mxu0  ;;  %2205 = vmatprep.subr.mxu0 %v2192_v58 }
 0x22e   : > { %v1730_v49 = vmul.f32 %v3733_v21, %v4883_v2  ;;  %2206 = vmatpush1.msra.mxu0 %v2191_v13 }
 0x22f   : > { %3797 = vmatmul.mubr.f32.vlgmr.msra.gmra.mxu1 %v1789_v16  ;;  %v1605_v37 = vpop.f32.mrf.mxu0  ;;  %2207 = vmatprep.subr.mxu0 %v2190_v14  ;;  %v2186_v16 = vld [vmem:[#allocation8 + $0x98] sm:$0xff] }
 0x230   : > { %3799 = vmatprep.mubr.f32.mxu1 %v1790_v19  ;;  %v1729_v48 = vmul.f32 %v4883_v2, %v1605_v37  ;;  %v1767_v55 = vadd.f32 %v4892_v47, %v1730_v49  ;;  %2208 = vmatpush1.msra.mxu0 %v2189_v15  ;;  %v2182_v19 = vld [vmem:[#allocation8 + $0x78] sm:$0xff]  ;;  %v2171_v49 = vld [vmem:[#allocation8 + $0x20] sm:$0xff] }
 0x231   : > { %2209 = vmatprep.subr.mxu0 %v2188_v28  ;;  %v2178_v37 = vld [vmem:[#allocation8 + $0x58] sm:$0xff] }
 0x232   : > { %v1766_v26 = vadd.f32 %v4892_v47, %v1729_v48  ;;  %v1799_v1 = vmax.f32 %v1767_v55, 0.0  ;;  %2210 = vmatpush1.msra.mxu0 %v2187_v25  ;;  %v2174_v48 = vld [vmem:[#allocation8 + $0x38] sm:$0xff]  ;;  %v2167_v55 = vld [vmem:[#allocation8] sm:$0xff] }
 0x233   : > { %3800 = vmatmul.mubr.f32.gmra.mxu1 %v1791_v22  ;;  %2211 = vmatprep.subr.mxu0 %v2186_v16  ;;  %v2180_v22 = vld [vmem:[#allocation8 + $0x68] sm:$0xff] }
 0x234   : > { %3802 = vmatprep.mubr.f32.mxu1 %v1792_v27  ;;  %v1798_v56 = vmax.f32 %v1766_v26, 0.0  ;;  %2212 = vmatpush1.msra.mxu0 %v2185_v5  ;;  %v2169_v26 = vld [vmem:[#allocation8 + $0x10] sm:$0xff] }
 0x235   : > { %2213 = vmatprep.subr.mxu0 %v2184_v17 }
 0x236   : > { %2214 = vmatpush1.msra.mxu0 %v2183_v18 }
 0x237   : > { %3803 = vmatmul.mubr.f32.gmra.mxu1 %v1793_v40  ;;  %2215 = vmatprep.subr.mxu0 %v2182_v19  ;;  %v2177_v40 = vld [vmem:[#allocation8 + $0x50] sm:$0xff] }
 0x238   : > { %3805 = vmatprep.mubr.f32.mxu1 %v1794_v46  ;;  %2216 = vmatpush1.msra.mxu0 %v2181_v20 }
 0x239   : > { %2217 = vmatprep.subr.mxu0 %v2180_v22 }
 0x23a   : > { %2218 = vmatpush1.msra.mxu0 %v2179_v34 }
 0x23b   : > { %3806 = vmatmul.mubr.f32.gmra.mxu1 %v1795_v23  ;;  %2219 = vmatprep.subr.mxu0 %v2178_v37  ;;  %v2173_v23 = vld [vmem:[#allocation8 + $0x30] sm:$0xff] }
 0x23c   : > { %3808 = vmatprep.mubr.f32.mxu1 %v1796_v53  ;;  %2220 = vmatpush1.msra.mxu0 %v2177_v40  ;;  %v2170_v53 = vld [vmem:[#allocation8 + $0x18] sm:$0xff] }
 0x23d   : > { %2221 = vmatprep.subr.mxu0 %v2176_v45 }
 0x23e   : > { %2222 = vmatpush1.msra.mxu0 %v2175_v50 }
 0x23f   : > { %3809 = vmatmul.mubr.f32.gmra.mxu1 %v1797_v54  ;;  %2223 = vmatprep.subr.mxu0 %v2174_v48  ;;  %v2168_v54 = vld [vmem:[#allocation8 + $0x8] sm:$0xff] }
 0x240   : > { %v3736_v57 = vpop.f32.mrf.mxu0  ;;  %3811 = vmatprep.mubr.f32.mxu1 %v1798_v56  ;;  %2224 = vmatpush1.msra.mxu0 %v2173_v23  ;;  %v4272_v56 = vmov 0.0  }
 0x241   : > { %v1732_v59 = vmul.f32 %v3736_v57, %v4883_v2  ;;  %2225 = vmatprep.subr.mxu0 %v2172_v29  ;;  %2263 = vmatprep.mubr.f32.mxu0 %v4272_v56 }
 0x242   : > { %v1615_v60 = vpop.f32.mrf.mxu0  ;;  %2226 = vmatpush1.msra.mxu0 %v2171_v49 }
 0x243   : > { %v1731_v24 = vmul.f32 %v4883_v2, %v1615_v60  ;;  %3812 = vmatmul.mubr.f32.gmra.mxu1 %v1799_v1  ;;  %v1769_v62 = vadd.f32 %v4892_v47, %v1732_v59  ;;  %2227 = vmatprep.subr.mxu0 %v2170_v53 }
 0x244   : > { %2228 = vmatpush1.msra.mxu0 %v2169_v26  ;;  %v4960_v26 = vld [vmem:[#allocation7] ss:$0 sm:$0xff] }
 0x245   : > { %v1768_v61 = vadd.f32 %v4892_v47, %v1731_v24  ;;  %v1801_v0 = vmax.f32 %v1769_v62, 0.0  ;;  %2229 = vmatprep.subr.mxu0 %v2168_v54 }
 0x246   : > { %2230 = vmatpush1.msra.mxu0 %v2167_v55 }
 0x247   : > { %v1800_v63 = vmax.f32 %v1768_v61, 0.0 }
 0x249   : > { %3814 = vmatprep.mubr.f32.mxu1 %v1800_v63 }
 0x24a   : > { %3815 = vmatmul.mubr.f32.gmra.mxu1 %v1801_v0 }
 0x253   : > { %v3739_v43 = vpop.f32.mrf.mxu0 }
 0x254   : > { %v1734_v3 = vmul.f32 %v3739_v43, %v4883_v2 }
 0x255   : > { %v1625_v39 = vpop.f32.mrf.mxu0 }
 0x256   : > { %v1733_v42 = vmul.f32 %v4883_v2, %v1625_v39  ;;  %v1771_v6 = vadd.f32 %v4892_v47, %v1734_v3 }
 0x258   : > { %v1770_v44 = vadd.f32 %v4892_v47, %v1733_v42  ;;  %v1803_v11 = vmax.f32 %v1771_v6, 0.0 }
 0x25a   : > { %v1802_v10 = vmax.f32 %v1770_v44, 0.0 }
 0x25c   : > { %3817 = vmatprep.mubr.f32.mxu1 %v1802_v10 }
 0x25d   : > { %3818 = vmatmul.mubr.f32.gmra.mxu1 %v1803_v11 }
 0x266   : > { %v3742_v9 = vpop.f32.mrf.mxu1 }
 0x267   : > { %v1736_v21 = vmul.f32 %v3742_v9, %v4883_v2 }
 0x268   : > { %v1635_v52 = vpop.f32.mrf.mxu1 }
 0x269   : > { %v1735_v31 = vmul.f32 %v4883_v2, %v1635_v52  ;;  %v1773_v27 = vadd.f32 %v4892_v47, %v1736_v21 }
 0x26b   : > { %v1772_v35 = vadd.f32 %v4892_v47, %v1735_v31  ;;  %v1805_v46 = vmax.f32 %v1773_v27, 0.0 }
 0x26d   : > { %v1804_v41 = vmax.f32 %v1772_v35, 0.0 }
 0x26f   : > { %3820 = vmatprep.mubr.f32.mxu1 %v1804_v41 }
 0x270   : > { %3821 = vmatmul.mubr.f32.gmra.mxu1 %v1805_v46 }
 0x279   : > { %v3745_v57 = vpop.f32.mrf.mxu1 }
 0x27a   : > { %v1738_v1 = vmul.f32 %v3745_v57, %v4883_v2 }
 0x27b   : > { %v1645_v59 = vpop.f32.mrf.mxu1 }
 0x27c   : > { %v1737_v60 = vmul.f32 %v4883_v2, %v1645_v59  ;;  %v1775_v24 = vadd.f32 %v4892_v47, %v1738_v1 }
 0x27e   : > { %v1774_v62 = vadd.f32 %v4892_v47, %v1737_v60  ;;  %v1807_v63 = vmax.f32 %v1775_v24, 0.0  ;;  %v4965_v24 = vld [vmem:[#allocation7 + $0x1] ss:$0 sm:$0xff] }
 0x280   : > { %v1806_v61 = vmax.f32 %v1774_v62, 0.0 }
 0x282   : > { %3823 = vmatprep.mubr.f32.mxu1 %v1806_v61 }
 0x283   : > { %3824 = vmatmul.mubr.f32.gmra.mxu1 %v1807_v63 }
 0x28c   : > { %v3748_v0 = vpop.f32.mrf.mxu1 }
 0x28d   : > { %v1740_v43 = vmul.f32 %v3748_v0, %v4883_v2 }
 0x28e   : > { %v1655_v3 = vpop.f32.mrf.mxu1 }
 0x28f   : > { %v1739_v39 = vmul.f32 %v4883_v2, %v1655_v3  ;;  %v1777_v42 = vadd.f32 %v4892_v47, %v1740_v43 }
 0x291   : > { %v1776_v6 = vadd.f32 %v4892_v47, %v1739_v39  ;;  %v1809_v44 = vmax.f32 %v1777_v42, 0.0 }
 0x293   : > { %v1808_v7 = vmax.f32 %v1776_v6, 0.0 }
 0x295   : > { %3826 = vmatprep.mubr.f32.mxu1 %v1808_v7 }
 0x296   : > { %3827 = vmatmul.mubr.f32.gmra.mxu1 %v1809_v44 }
 0x29f   : > { %v3751_v8 = vpop.f32.mrf.mxu1 }
 0x2a0   : > { %v1742_v4 = vmul.f32 %v3751_v8, %v4883_v2 }
 0x2a1   : > { %v1665_v10 = vpop.f32.mrf.mxu1 }
 0x2a2   : > { %v1741_v51 = vmul.f32 %v4883_v2, %v1665_v10  ;;  %v1779_v11 = vadd.f32 %v4892_v47, %v1742_v4 }
 0x2a4   : > { %v1778_v12 = vadd.f32 %v4892_v47, %v1741_v51  ;;  %v1811_v58 = vmax.f32 %v1779_v11, 0.0 }
 0x2a6   : > { %v1810_v30 = vmax.f32 %v1778_v12, 0.0 }
 0x2a8   : > { %3829 = vmatprep.mubr.f32.mxu1 %v1810_v30 }
 0x2a9   : > { %3830 = vmatmul.mubr.f32.gmra.mxu1 %v1811_v58 }
 0x2b2   : > { %v3754_v13 = vpop.f32.mrf.mxu1 }
 0x2b3   : > { %v1744_v14 = vmul.f32 %v3754_v13, %v4883_v2 }
 0x2b4   : > { %v1675_v15 = vpop.f32.mrf.mxu1 }
 0x2b5   : > { %v1743_v28 = vmul.f32 %v4883_v2, %v1675_v15  ;;  %v1781_v25 = vadd.f32 %v4892_v47, %v1744_v14 }
 0x2b7   : > { %v1780_v16 = vadd.f32 %v4892_v47, %v1743_v28  ;;  %v1813_v17 = vmax.f32 %v1781_v25, 0.0 }
 0x2b9   : > { %v1812_v5 = vmax.f32 %v1780_v16, 0.0 }
 0x2bb   : > { %3832 = vmatprep.mubr.f32.mxu1 %v1812_v5 }
 0x2bc   : > { %3833 = vmatmul.mubr.f32.gmra.mxu1 %v1813_v17 }
 0x2c5   : > { %v3757_v18 = vpop.f32.mrf.mxu1 }
 0x2c6   : > { %v1746_v19 = vmul.f32 %v3757_v18, %v4883_v2 }
 0x2c7   : > { %v1685_v9 = vpop.f32.mrf.mxu1 }
 0x2c8   : > { %v1745_v20 = vmul.f32 %v4883_v2, %v1685_v9  ;;  %v1783_v21 = vadd.f32 %v4892_v47, %v1746_v19 }
 0x2ca   : > { %v1782_v22 = vadd.f32 %v4892_v47, %v1745_v20  ;;  %v1815_v31 = vmax.f32 %v1783_v21, 0.0 }
 0x2cc   : > { %v1814_v52 = vmax.f32 %v1782_v22, 0.0 }
 0x2ce   : > { %3835 = vmatprep.mubr.f32.mxu1 %v1814_v52 }
 0x2cf   : > { %3836 = vmatmul.mubr.f32.gmra.mxu1 %v1815_v31 }
 0x2d8   : > { %v3760_v27 = vpop.f32.mrf.mxu1 }
 0x2d9   : > { %v1748_v34 = vmul.f32 %v3760_v27, %v4883_v2 }
 0x2da   : > { %v1695_v35 = vpop.f32.mrf.mxu1 }
 0x2db   : > { %v1747_v37 = vmul.f32 %v4883_v2, %v1695_v35  ;;  %v1785_v40 = vadd.f32 %v4892_v47, %v1748_v34 }
 0x2dd   : > { %v1784_v41 = vadd.f32 %v4892_v47, %v1747_v37  ;;  %v1817_v46 = vmax.f32 %v1785_v40, 0.0 }
 0x2df   : > { %v1816_v45 = vmax.f32 %v1784_v41, 0.0 }
 0x2e1   : > { %3838 = vmatprep.mubr.f32.mxu1 %v1816_v45 }
 0x2e2   : > { %3839 = vmatmul.mubr.f32.gmra.mxu1 %v1817_v46 }
 0x2eb   : > { %v3763_v50 = vpop.f32.mrf.mxu1 }
 0x2ec   : > { %v1750_v48 = vmul.f32 %v3763_v50, %v4883_v2 }
 0x2ed   : > { %v1705_v23 = vpop.f32.mrf.mxu1 }
 0x2ee   : > { %v1749_v29 = vmul.f32 %v4883_v2, %v1705_v23  ;;  %v1787_v49 = vadd.f32 %v4892_v47, %v1750_v48 }
 0x2ef   : > { %v3798_v53 = vpop.f32.mrf.mxu1 }
 0x2f0   : > { %v1786_v54 = vadd.f32 %v4892_v47, %v1749_v29  ;;  %v2067_v1 = vmul.f32 %v3798_v53, %v4960_v26  ;;  %v1819_v60 = vmax.f32 %v1787_v49, 0.0 }
 0x2f1   : > { %v1902_v55 = vpop.f32.mrf.mxu1 }
 0x2f2   : > { %v1818_v57 = vmax.f32 %v1786_v54, 0.0  ;;  %v2066_v59 = vmul.f32 %v4960_v26, %v1902_v55  ;;  %v2104_v63 = vadd.f32 %v4965_v24, %v2067_v1 }
 0x2f3   : > { %v3801_v62 = vpop.f32.mrf.mxu1 }
 0x2f4   : > { %v2103_v61 = vadd.f32 %v4965_v24, %v2066_v59  ;;  %3841 = vmatprep.mubr.f32.mxu1 %v1818_v57  ;;  %v2136_v3 = vmax.f32 %v2104_v63, 0.0  ;;  %v2069_v39 = vmul.f32 %v3801_v62, %v4960_v26 }
 0x2f5   : > { %v1912_v2 = vpop.f32.mrf.mxu1  ;;  %3842 = vmatmul.mubr.f32.gmra.mxu1 %v1819_v60 }
 0x2f6   : > { %v2135_v0 = vmax.f32 %v2103_v61, 0.0  ;;  %v2068_v47 = vmul.f32 %v4960_v26, %v1912_v2  ;;  %v2106_v7 = vadd.f32 %v4965_v24, %v2069_v39 }
 0x2f7   : > { %v3804_v43 = vpop.f32.mrf.mxu1 }
 0x2f8   : > { %2264 = vmatmul.mubr.f32.vlgmr.msra.gmra.mxu0 %v2135_v0  ;;  %v2105_v42 = vadd.f32 %v4965_v24, %v2068_v47  ;;  %v2138_v10 = vmax.f32 %v2106_v7, 0.0  ;;  %v2071_v51 = vmul.f32 %v3804_v43, %v4960_v26 }
 0x2f9   : > { %2269 = vmatprep.mubr.f32.mxu0 %v4272_v56  ;;  %v1922_v6 = vpop.f32.mrf.mxu1 }
 0x2fa   : > { %v2137_v44 = vmax.f32 %v2105_v42, 0.0  ;;  %v2070_v8 = vmul.f32 %v4960_v26, %v1922_v6  ;;  %v2108_v30 = vadd.f32 %v4965_v24, %v2071_v51 }
 0x2fb   : > { %v3807_v4 = vpop.f32.mrf.mxu1 }
 0x2fc   : > { %2270 = vmatmul.mubr.f32.gmra.mxu0 %v2136_v3  ;;  %v2107_v11 = vadd.f32 %v4965_v24, %v2070_v8  ;;  %v2140_v15 = vmax.f32 %v2108_v30, 0.0  ;;  %v2073_v28 = vmul.f32 %v3807_v4, %v4960_v26 }
 0x2fd   : > { %2275 = vmatprep.mubr.f32.mxu0 %v4272_v56  ;;  %v1932_v12 = vpop.f32.mrf.mxu1 }
 0x2fe   : > { %v2139_v58 = vmax.f32 %v2107_v11, 0.0  ;;  %v2072_v13 = vmul.f32 %v4960_v26, %v1932_v12  ;;  %v2110_v5 = vadd.f32 %v4965_v24, %v2073_v28 }
 0x2ff   : > { %v3810_v14 = vpop.f32.mrf.mxu1 }
 0x300   : > { %2276 = vmatmul.mubr.f32.gmra.mxu0 %v2137_v44  ;;  %v2109_v25 = vadd.f32 %v4965_v24, %v2072_v13  ;;  %v2142_v9 = vmax.f32 %v2110_v5, 0.0  ;;  %v2075_v20 = vmul.f32 %v3810_v14, %v4960_v26 }
 0x301   : > { %2281 = vmatprep.mubr.f32.mxu0 %v4272_v56  ;;  %v1942_v16 = vpop.f32.mrf.mxu1 }
 0x302   : > { %v2141_v17 = vmax.f32 %v2109_v25, 0.0  ;;  %v2074_v18 = vmul.f32 %v4960_v26, %v1942_v16  ;;  %v2112_v52 = vadd.f32 %v4965_v24, %v2075_v20 }
 0x303   : > { %v3813_v19 = vpop.f32.mrf.mxu1 }
 0x304   : > { %2282 = vmatmul.mubr.f32.gmra.mxu0 %v2138_v10  ;;  %v2111_v21 = vadd.f32 %v4965_v24, %v2074_v18  ;;  %v2144_v35 = vmax.f32 %v2112_v52, 0.0  ;;  %v2077_v37 = vmul.f32 %v3813_v19, %v4960_v26 }
 0x305   : > { %2287 = vmatprep.mubr.f32.mxu0 %v4272_v56  ;;  %v1952_v22 = vpop.f32.mrf.mxu1 }
 0x306   : > { %v2143_v31 = vmax.f32 %v2111_v21, 0.0  ;;  %v2076_v27 = vmul.f32 %v4960_v26, %v1952_v22  ;;  %v2114_v45 = vadd.f32 %v4965_v24, %v2077_v37 }
 0x308   : > { %2288 = vmatmul.mubr.f32.gmra.mxu0 %v2139_v58  ;;  %v2113_v40 = vadd.f32 %v4965_v24, %v2076_v27  ;;  %v2146_v23 = vmax.f32 %v2114_v45, 0.0 }
 0x309   : > { %2293 = vmatprep.mubr.f32.mxu0 %v4272_v56 }
 0x30a   : > { %v3816_v34 = vpop.f32.mrf.mxu1  ;;  %v2145_v46 = vmax.f32 %v2113_v40, 0.0 }
 0x30b   : > { %v2079_v29 = vmul.f32 %v3816_v34, %v4960_v26 }
 0x30c   : > { %2294 = vmatmul.mubr.f32.gmra.mxu0 %v2140_v15  ;;  %v1962_v41 = vpop.f32.mrf.mxu1 }
 0x30d   : > { %2299 = vmatprep.mubr.f32.mxu0 %v4272_v56  ;;  %v2078_v50 = vmul.f32 %v4960_v26, %v1962_v41  ;;  %v2116_v54 = vadd.f32 %v4965_v24, %v2079_v29 }
 0x30f   : > { %v2115_v49 = vadd.f32 %v4965_v24, %v2078_v50  ;;  %v2148_v1 = vmax.f32 %v2116_v54, 0.0 }
 0x310   : > { %2300 = vmatmul.mubr.f32.gmra.mxu0 %v2141_v17 }
 0x311   : > { %2305 = vmatprep.mubr.f32.mxu0 %v4272_v56  ;;  %v2147_v55 = vmax.f32 %v2115_v49, 0.0 }
 0x314   : > { %2306 = vmatmul.mubr.f32.gmra.mxu0 %v2142_v9 }
 0x315   : > { %2311 = vmatprep.mubr.f32.mxu0 %v4272_v56 }
 0x318   : > { %2312 = vmatmul.mubr.f32.gmra.mxu0 %v2143_v31 }
 0x319   : > { %2317 = vmatprep.mubr.f32.mxu0 %v4272_v56 }
 0x31c   : > { %2318 = vmatmul.mubr.f32.gmra.mxu0 %v2144_v35 }
 0x31d   : > { %2323 = vmatprep.mubr.f32.mxu0 %v4272_v56  ;;  %v3819_v48 = vpop.f32.mrf.mxu1 }
 0x31e   : > { %v2081_v59 = vmul.f32 %v3819_v48, %v4960_v26 }
 0x31f   : > { %v1972_v53 = vpop.f32.mrf.mxu1 }
 0x320   : > { %2324 = vmatmul.mubr.f32.gmra.mxu0 %v2145_v46  ;;  %v2080_v57 = vmul.f32 %v4960_v26, %v1972_v53  ;;  %v2118_v62 = vadd.f32 %v4965_v24, %v2081_v59 }
 0x321   : > { %2329 = vmatprep.mubr.f32.mxu0 %v4272_v56 }
 0x322   : > { %v2117_v60 = vadd.f32 %v4965_v24, %v2080_v57  ;;  %v2150_v63 = vmax.f32 %v2118_v62, 0.0 }
 0x324   : > { %2330 = vmatmul.mubr.f32.gmra.mxu0 %v2146_v23  ;;  %v2149_v61 = vmax.f32 %v2117_v60, 0.0 }
 0x325   : > { %2335 = vmatprep.mubr.f32.mxu0 %v4272_v56 }
 0x328   : > { %2336 = vmatmul.mubr.f32.gmra.mxu0 %v2147_v55 }
 0x329   : > { %2341 = vmatprep.mubr.f32.mxu0 %v4272_v56 }
 0x32c   : > { %2342 = vmatmul.mubr.f32.gmra.mxu0 %v2148_v1 }
 0x32d   : > { %2347 = vmatprep.mubr.f32.mxu0 %v4272_v56 }
 0x330   : > { %v3822_v2 = vpop.f32.mrf.mxu1  ;;  %2348 = vmatmul.mubr.f32.gmra.mxu0 %v2149_v61 }
 0x331   : > { %2353 = vmatprep.mubr.f32.mxu0 %v4272_v56  ;;  %v2083_v47 = vmul.f32 %v3822_v2, %v4960_v26 }
 0x332   : > { %v1982_v0 = vpop.f32.mrf.mxu1 }
 0x333   : > { %v2082_v43 = vmul.f32 %v4960_v26, %v1982_v0  ;;  %v2120_v39 = vadd.f32 %v4965_v24, %v2083_v47 }
 0x334   : > { %2354 = vmatmul.mubr.f32.gmra.mxu0 %v2150_v63  ;;  %v2456_v63 = vld [vmem:[%s5562_s8] ss:$2 sm:$0x3] }
 0x335   : > { %v2119_v3 = vadd.f32 %v4965_v24, %v2082_v43  ;;  %2359 = vmatprep.mubr.f32.mxu0 %v4272_v56  ;;  %v2152_v6 = vmax.f32 %v2120_v39, 0.0  ;;  %v5061_v39 = vrot.slane %v2456_v63, %v4593_v38 }
 0x337   : > { %v2151_v42 = vmax.f32 %v2119_v3, 0.0 }
 0x339   : > { %2360 = vmatmul.mubr.f32.gmra.mxu0 %v2151_v42 }
 0x33a   : > { %2365 = vmatprep.mubr.f32.mxu0 %v4272_v56 }
 0x33d   : > { %2366 = vmatmul.mubr.f32.gmra.mxu0 %v2152_v6  ;;  %v3607_v6 = vld [vmem:[%s5562_s8 + $0x1] ss:$2 sm:$0x3] }
 0x33e   : > { %2371 = vmatprep.mubr.f32.mxu0 %v4272_v56 }
 0x343   : > { %v3825_v7 = vpop.f32.mrf.mxu1 }
 0x344   : > { %v2085_v8 = vmul.f32 %v3825_v7, %v4960_v26 }
 0x345   : > { %v1992_v44 = vpop.f32.mrf.mxu1 }
 0x346   : > { %v2084_v4 = vmul.f32 %v4960_v26, %v1992_v44  ;;  %v2122_v51 = vadd.f32 %v4965_v24, %v2085_v8  ;;  %v5068_v44 = vrot.slane %v2456_v63, %v4589_v36 }
 0x348   : > { %v2121_v10 = vadd.f32 %v4965_v24, %v2084_v4  ;;  %v2154_v12 = vmax.f32 %v2122_v51, 0.0  ;;  %v5073_v51 = vrot.slane %v3607_v6, %v4593_v38 }
 0x34a   : > { %v2153_v11 = vmax.f32 %v2121_v10, 0.0 }
 0x34c   : > { %2372 = vmatmul.mubr.f32.gmra.mxu0 %v2153_v11 }
 0x34d   : > { %2377 = vmatprep.mubr.f32.mxu0 %v4272_v56 }
 0x350   : > { %2378 = vmatmul.mubr.f32.gmra.mxu0 %v2154_v12  ;;  %v5077_v12 = vrot.slane %v3607_v6, %v4589_v36 }
 0x351   : > { %2383 = vmatprep.mubr.f32.mxu0 %v4272_v56 }
 0x356   : > { %v3828_v30 = vpop.f32.mrf.mxu1 }
 0x357   : > { %v2087_v13 = vmul.f32 %v3828_v30, %v4960_v26 }
 0x358   : > { %v2002_v58 = vpop.f32.mrf.mxu1 }
 0x359   : > { %v2086_v14 = vmul.f32 %v4960_v26, %v2002_v58  ;;  %v2124_v28 = vadd.f32 %v4965_v24, %v2087_v13 }
 0x35b   : > { %v2123_v15 = vadd.f32 %v4965_v24, %v2086_v14  ;;  %v2156_v16 = vmax.f32 %v2124_v28, 0.0 }
 0x35d   : > { %v2155_v25 = vmax.f32 %v2123_v15, 0.0 }
 0x35f   : > { %2384 = vmatmul.mubr.f32.gmra.mxu0 %v2155_v25 }
 0x360   : > { %2389 = vmatprep.mubr.f32.mxu0 %v4272_v56 }
 0x363   : > { %2390 = vmatmul.mubr.f32.gmra.mxu0 %v2156_v16 }
 0x364   : > { %2395 = vmatprep.mubr.f32.mxu0 %v4272_v56 }
 0x369   : > { %v3831_v5 = vpop.f32.mrf.mxu1 }
 0x36a   : > { %v2089_v18 = vmul.f32 %v3831_v5, %v4960_v26 }
 0x36b   : > { %v2012_v17 = vpop.f32.mrf.mxu1 }
 0x36c   : > { %v2088_v19 = vmul.f32 %v4960_v26, %v2012_v17  ;;  %v2126_v20 = vadd.f32 %v4965_v24, %v2089_v18 }
 0x36e   : > { %v2125_v9 = vadd.f32 %v4965_v24, %v2088_v19  ;;  %v2158_v22 = vmax.f32 %v2126_v20, 0.0 }
 0x370   : > { %v2157_v21 = vmax.f32 %v2125_v9, 0.0 }
 0x372   : > { %2396 = vmatmul.mubr.f32.gmra.mxu0 %v2157_v21 }
 0x373   : > { %2401 = vmatprep.mubr.f32.mxu0 %v4272_v56 }
 0x376   : > { %2402 = vmatmul.mubr.f32.gmra.mxu0 %v2158_v22 }
 0x377   : > { %2407 = vmatprep.mubr.f32.mxu0 %v4272_v56 }
 0x37c   : > { %v3834_v52 = vpop.f32.mrf.mxu1 }
 0x37d   : > { %v2091_v27 = vmul.f32 %v3834_v52, %v4960_v26 }
 0x37e   : > { %v2022_v31 = vpop.f32.mrf.mxu1 }
 0x37f   : > { %v2090_v34 = vmul.f32 %v4960_v26, %v2022_v31  ;;  %v2128_v37 = vadd.f32 %v4965_v24, %v2091_v27 }
 0x381   : > { %v2127_v35 = vadd.f32 %v4965_v24, %v2090_v34  ;;  %v2160_v41 = vmax.f32 %v2128_v37, 0.0 }
 0x383   : > { %v2159_v40 = vmax.f32 %v2127_v35, 0.0 }
 0x385   : > { %2408 = vmatmul.mubr.f32.gmra.mxu0 %v2159_v40 }
 0x386   : > { %2413 = vmatprep.mubr.f32.mxu0 %v4272_v56 }
 0x389   : > { %2414 = vmatmul.mubr.f32.gmra.mxu0 %v2160_v41 }
 0x38a   : > { %2419 = vmatprep.mubr.f32.mxu0 %v4272_v56 }
 0x38f   : > { %v3837_v45 = vpop.f32.mrf.mxu1 }
 0x390   : > { %v2093_v50 = vmul.f32 %v3837_v45, %v4960_v26 }
 0x391   : > { %v2032_v46 = vpop.f32.mrf.mxu1 }
 0x392   : > { %v2092_v48 = vmul.f32 %v4960_v26, %v2032_v46  ;;  %v2130_v29 = vadd.f32 %v4965_v24, %v2093_v50 }
 0x394   : > { %v2129_v23 = vadd.f32 %v4965_v24, %v2092_v48  ;;  %v2162_v53 = vmax.f32 %v2130_v29, 0.0 }
 0x396   : > { %v2161_v49 = vmax.f32 %v2129_v23, 0.0 }
 0x398   : > { %2420 = vmatmul.mubr.f32.gmra.mxu0 %v2161_v49 }
 0x399   : > { %2425 = vmatprep.mubr.f32.mxu0 %v4272_v56 }
 0x39c   : > { %2426 = vmatmul.mubr.f32.gmra.mxu0 %v2162_v53 }
 0x39d   : > { %2431 = vmatprep.mubr.f32.mxu0 %v4272_v56 }
 0x3a2   : > { %v3840_v54 = vpop.f32.mrf.mxu1 }
 0x3a3   : > { %v2095_v57 = vmul.f32 %v3840_v54, %v4960_v26 }
 0x3a4   : > { %v2042_v55 = vpop.f32.mrf.mxu1 }
 0x3a5   : > { %v2094_v1 = vmul.f32 %v4960_v26, %v2042_v55  ;;  %v2132_v60 = vadd.f32 %v4965_v24, %v2095_v57 }
 0x3a7   : > { %v2131_v59 = vadd.f32 %v4965_v24, %v2094_v1  ;;  %v2164_v61 = vmax.f32 %v2132_v60, 0.0 }
 0x3a9   : > { %v2163_v62 = vmax.f32 %v2131_v59, 0.0 }
 0x3ab   : > { %2432 = vmatmul.mubr.f32.gmra.mxu0 %v2163_v62 }
 0x3ac   : > { %2437 = vmatprep.mubr.f32.mxu0 %v4272_v56 }
 0x3af   : > { %2438 = vmatmul.mubr.f32.gmra.mxu0 %v2164_v61 }
 0x3b0   : > { %2443 = vmatprep.mubr.f32.mxu0 %v4272_v56 }
 0x3b5   : > { %v3843_v2 = vpop.f32.mrf.mxu1 }
 0x3b6   : > { %v2097_v47 = vmul.f32 %v3843_v2, %v4960_v26 }
 0x3b7   : > { %v2052_v0 = vpop.f32.mrf.mxu1 }
 0x3b8   : > { %v2096_v43 = vmul.f32 %v4960_v26, %v2052_v0  ;;  %v2265_v3 = vpop.f32.mrf.mxu0  ;;  %v2134_v8 = vadd.f32 %v4965_v24, %v2097_v47 }
 0x3b9   : > { %v2468_v26 = vmul.f32 %v5061_v39, %v2265_v3 }
 0x3ba   : > { %v2133_v42 = vadd.f32 %v4965_v24, %v2096_v43  ;;  %v2267_v7 = vpop.f32.mrf.mxu0  ;;  %v2166_v58 = vmax.f32 %v2134_v8, 0.0 }
 0x3bb   : > { %v2469_v11 = vmul.f32 %v5068_v44, %v2267_v7  ;;  %v2545_v14 = vadd.f32 %v5073_v51, %v2468_v26 }
 0x3bc   : > { %v2165_v4 = vmax.f32 %v2133_v42, 0.0  ;;  %v2271_v10 = vpop.f32.mrf.mxu0 }
 0x3bd   : > { %v2470_v13 = vmul.f32 %v5061_v39, %v2271_v10  ;;  %v2546_v28 = vadd.f32 %v5077_v12, %v2469_v11  ;;  %v2609_v19 = vmax.f32 %v2545_v14, 0.0 }
 0x3be   : > { %v2273_v30 = vpop.f32.mrf.mxu0  ;;  %2444 = vmatmul.mubr.f32.gmra.mxu0 %v2165_v4 }
 0x3bf   : > { %2449 = vmatprep.mubr.f32.mxu0 %v4272_v56  ;;  %v2471_v25 = vmul.f32 %v5068_v44, %v2273_v30  ;;  %v2547_v56 = vadd.f32 %v5073_v51, %v2470_v13  ;;  %v2610_v22 = vmax.f32 %v2546_v28, 0.0 }
 0x3c0   : > { %v2277_v24 = vpop.f32.mrf.mxu0 }
 0x3c1   : > { %v2472_v15 = vmul.f32 %v5061_v39, %v2277_v24  ;;  %v2548_v52 = vadd.f32 %v5077_v12, %v2471_v25  ;;  %v2611_v40 = vmax.f32 %v2547_v56, 0.0 }
 0x3c2   : > { %v2279_v16 = vpop.f32.mrf.mxu0  ;;  %2450 = vmatmul.mubr.f32.gmra.mxu0 %v2166_v58 }
 0x3c3   : > { %v2549_v5 = vadd.f32 %v5073_v51, %v2472_v15  ;;  %v2473_v17 = vmul.f32 %v5068_v44, %v2279_v16  ;;  %v2612_v23 = vmax.f32 %v2548_v52, 0.0 }
 0x3c4   : > { %v2283_v18 = vpop.f32.mrf.mxu0 }
 0x3c5   : > { %v2613_v9 = vmax.f32 %v2549_v5, 0.0  ;;  %v2550_v20 = vadd.f32 %v5077_v12, %v2473_v17  ;;  %v2474_v21 = vmul.f32 %v5061_v39, %v2283_v18 }
 0x3c6   : > { %v2285_v31 = vpop.f32.mrf.mxu0 }
 0x3c7   : > { %v2673_v27 = vmax.f32 %v2609_v19, %v2613_v9  ;;  %v2614_v34 = vmax.f32 %v2550_v20, 0.0  ;;  %v2551_v35 = vadd.f32 %v5073_v51, %v2474_v21  ;;  %v2475_v37 = vmul.f32 %v5068_v44, %v2285_v31 }
 0x3c8   : > { %v2289_v41 = vpop.f32.mrf.mxu0 }
 0x3c9   : > { %v2710_v45 = vmax.f32 %v2610_v22, %v2614_v34  ;;  %v2615_v46 = vmax.f32 %v2551_v35, 0.0  ;;  %v2552_v50 = vadd.f32 %v5077_v12, %v2475_v37  ;;  %v2476_v48 = vmul.f32 %v5061_v39, %v2289_v41 }
 0x3ca   : > { %v2291_v29 = vpop.f32.mrf.mxu0 }
 0x3cb   : > { %v2674_v49 = vmax.f32 %v2611_v40, %v2615_v46  ;;  %v2616_v53 = vmax.f32 %v2552_v50, 0.0  ;;  %v2553_v54 = vadd.f32 %v5073_v51, %v2476_v48  ;;  %v2477_v55 = vmul.f32 %v5068_v44, %v2291_v29 }
 0x3cc   : > { %v2295_v57 = vpop.f32.mrf.mxu0 }
 0x3cd   : > { %v2711_v1 = vmax.f32 %v2612_v23, %v2616_v53  ;;  %v2617_v59 = vmax.f32 %v2553_v54, 0.0  ;;  %v2554_v60 = vadd.f32 %v5077_v12, %v2477_v55  ;;  %v2478_v62 = vmul.f32 %v5061_v39, %v2295_v57 }
 0x3ce   : > { %v2297_v61 = vpop.f32.mrf.mxu0 }
 0x3cf   : > { %v2675_v2 = vmax.f32 %v2673_v27, %v2617_v59  ;;  %v2618_v63 = vmax.f32 %v2554_v60, 0.0  ;;  %v2555_v0 = vadd.f32 %v5073_v51, %v2478_v62  ;;  %v2479_v47 = vmul.f32 %v5068_v44, %v2297_v61 }
 0x3d0   : > { %v2301_v43 = vpop.f32.mrf.mxu0 }
 0x3d1   : > { %v2712_v3 = vmax.f32 %v2710_v45, %v2618_v63  ;;  %v2619_v42 = vmax.f32 %v2555_v0, 0.0  ;;  %v2556_v6 = vadd.f32 %v5077_v12, %v2479_v47  ;;  %v2480_v7 = vmul.f32 %v5061_v39, %v2301_v43  ;;  %v2838_v43 = vld [vmem:[%s5563_s9 + $0xf8] sm:$0xff] }
 0x3d2   : > { %v2303_v8 = vpop.f32.mrf.mxu0  ;;  %2882 = vmatprep.subr.mxu1 %v2838_v43 }
 0x3d3   : > { %v2676_v4 = vmax.f32 %v2674_v49, %v2619_v42  ;;  %v2620_v10 = vmax.f32 %v2556_v6, 0.0  ;;  %v2557_v26 = vadd.f32 %v5073_v51, %v2480_v7  ;;  %v2481_v11 = vmul.f32 %v5068_v44, %v2303_v8  ;;  %v2836_v42 = vld [vmem:[%s5563_s9 + $0xe8] sm:$0xff]  ;;  %v2835_v6 = vld [vmem:[%s5563_s9 + $0xe0] sm:$0xff]  ;;  %v2834_v7 = vld [vmem:[%s5563_s9 + $0xd8] sm:$0xff] }
 0x3d4   : > { %v2307_v30 = vpop.f32.mrf.mxu0  ;;  %v2833_v8 = vld [vmem:[%s5563_s9 + $0xd0] sm:$0xff] }
 0x3d5   : > { %v2713_v58 = vmax.f32 %v2711_v1, %v2620_v10  ;;  %v2621_v13 = vmax.f32 %v2557_v26, 0.0  ;;  %v2558_v24 = vadd.f32 %v5077_v12, %v2481_v11  ;;  %v2482_v14 = vmul.f32 %v5061_v39, %v2307_v30  ;;  %v2831_v26 = vld [vmem:[%s5563_s9 + $0xc0] sm:$0xff]  ;;  %v2830_v11 = vld [vmem:[%s5563_s9 + $0xb8] sm:$0xff]  ;;  %v2829_v30 = vld [vmem:[%s5563_s9 + $0xb0] sm:$0xff] }
 0x3d6   : > { %v2309_v15 = vpop.f32.mrf.mxu0 }
 0x3d7   : > { %v2677_v28 = vmax.f32 %v2675_v2, %v2621_v13  ;;  %v2622_v25 = vmax.f32 %v2558_v24, 0.0  ;;  %v2559_v16 = vadd.f32 %v5073_v51, %v2482_v14  ;;  %v2483_v5 = vmul.f32 %v5068_v44, %v2309_v15  ;;  %v2827_v24 = vld [vmem:[%s5563_s9 + $0xa0] sm:$0xff]  ;;  %v2826_v14 = vld [vmem:[%s5563_s9 + $0x98] sm:$0xff]  ;;  %v2825_v15 = vld [vmem:[%s5563_s9 + $0x90] sm:$0xff] }
 0x3d8   : > { %v2313_v17 = vpop.f32.mrf.mxu0 }
 0x3d9   : > { %v2714_v56 = vmax.f32 %v2712_v3, %v2622_v25  ;;  %v2623_v18 = vmax.f32 %v2559_v16, 0.0  ;;  %v2560_v19 = vadd.f32 %v5077_v12, %v2483_v5  ;;  %v2484_v9 = vmul.f32 %v5061_v39, %v2313_v17  ;;  %v2837_v3 = vld [vmem:[%s5563_s9 + $0xf0] sm:$0xff]  ;;  %v2823_v25 = vld [vmem:[%s5563_s9 + $0x80] sm:$0xff]  ;;  %v2822_v16 = vld [vmem:[%s5563_s9 + $0x78] sm:$0xff] }
 0x3da   : > { %v2315_v20 = vpop.f32.mrf.mxu0  ;;  %2883 = vmatpush1.msra.mxu1 %v2837_v3  ;;  %v2821_v17 = vld [vmem:[%s5563_s9 + $0x70] sm:$0xff]  ;;  %v2859_v3 = vld [vmem:[%s5563_s9 + $0x1a0] sm:$0xff] }
 0x3db   : > { %v2678_v21 = vmax.f32 %v2676_v4, %v2623_v18  ;;  %v2624_v22 = vmax.f32 %v2560_v19, 0.0  ;;  %v2561_v52 = vadd.f32 %v5073_v51, %v2484_v9  ;;  %v2485_v31 = vmul.f32 %v5068_v44, %v2315_v20  ;;  %2884 = vmatprep.subr.mxu1 %v2836_v42  ;;  %v2832_v4 = vld [vmem:[%s5563_s9 + $0xc8] sm:$0xff]  ;;  %v2819_v19 = vld [vmem:[%s5563_s9 + $0x60] sm:$0xff]  ;;  %v2818_v9 = vld [vmem:[%s5563_s9 + $0x58] sm:$0xff] }
 0x3dc   : > { %v2319_v27 = vpop.f32.mrf.mxu0  ;;  %2885 = vmatpush1.msra.mxu1 %v2835_v6  ;;  %v2817_v20 = vld [vmem:[%s5563_s9 + $0x50] sm:$0xff]  ;;  %v2858_v42 = vld [vmem:[%s5563_s9 + $0x198] sm:$0xff] }
 0x3dd   : > { %v2715_v34 = vmax.f32 %v2713_v58, %v2624_v22  ;;  %v2625_v35 = vmax.f32 %v2561_v52, 0.0  ;;  %v2562_v37 = vadd.f32 %v5077_v12, %v2485_v31  ;;  %v2486_v40 = vmul.f32 %v5061_v39, %v2319_v27  ;;  %2886 = vmatprep.subr.mxu1 %v2834_v7  ;;  %v2828_v58 = vld [vmem:[%s5563_s9 + $0xa8] sm:$0xff]  ;;  %v2815_v52 = vld [vmem:[%s5563_s9 + $0x40] sm:$0xff]  ;;  %v2814_v31 = vld [vmem:[%s5563_s9 + $0x38] sm:$0xff] }
 0x3de   : > { %v2321_v41 = vpop.f32.mrf.mxu0  ;;  %2887 = vmatpush1.msra.mxu1 %v2833_v8  ;;  %v2813_v27 = vld [vmem:[%s5563_s9 + $0x30] sm:$0xff]  ;;  %v2856_v7 = vld [vmem:[%s5563_s9 + $0x188] sm:$0xff] }
 0x3df   : > { %v2679_v45 = vmax.f32 %v2677_v28, %v2625_v35  ;;  %v2626_v46 = vmax.f32 %v2562_v37, 0.0  ;;  %v2563_v50 = vadd.f32 %v5073_v51, %v2486_v40  ;;  %v2487_v48 = vmul.f32 %v5068_v44, %v2321_v41  ;;  %2888 = vmatprep.subr.mxu1 %v2832_v4  ;;  %v2824_v28 = vld [vmem:[%s5563_s9 + $0x88] sm:$0xff]  ;;  %v2811_v37 = vld [vmem:[%s5563_s9 + $0x20] sm:$0xff]  ;;  %v2810_v40 = vld [vmem:[%s5563_s9 + $0x18] sm:$0xff] }
 0x3e0   : > { %v2325_v23 = vpop.f32.mrf.mxu0  ;;  %2889 = vmatpush1.msra.mxu1 %v2831_v26  ;;  %v2809_v41 = vld [vmem:[%s5563_s9 + $0x10] sm:$0xff]  ;;  %v2855_v4 = vld [vmem:[%s5563_s9 + $0x180] sm:$0xff]  ;;  %v2854_v26 = vld [vmem:[%s5563_s9 + $0x178] sm:$0xff] }
 0x3e1   : > { %v2716_v29 = vmax.f32 %v2714_v56, %v2626_v46  ;;  %v2627_v49 = vmax.f32 %v2563_v50, 0.0  ;;  %v2564_v53 = vadd.f32 %v5077_v12, %v2487_v48  ;;  %v2488_v54 = vmul.f32 %v5061_v39, %v2325_v23  ;;  %2890 = vmatprep.subr.mxu1 %v2830_v11  ;;  %v2820_v56 = vld [vmem:[%s5563_s9 + $0x68] sm:$0xff]  ;;  %v2807_v50 = vld [vmem:[%s5563_s9] sm:$0xff]  ;;  %v2870_v48 = vld [vmem:[%s5563_s9 + $0x1f8] sm:$0xff] }
 0x3e2   : > { %v2327_v55 = vpop.f32.mrf.mxu0  ;;  %2891 = vmatpush1.msra.mxu1 %v2829_v30  ;;  %v2869_v23 = vld [vmem:[%s5563_s9 + $0x1f0] sm:$0xff]  ;;  %v2852_v30 = vld [vmem:[%s5563_s9 + $0x168] sm:$0xff] }
 0x3e3   : > { %v5119_v57 = vmax.f32 %v2678_v21, %v2627_v49  ;;  %v2628_v1 = vmax.f32 %v2564_v53, 0.0  ;;  %v2565_v59 = vadd.f32 %v5073_v51, %v2488_v54  ;;  %v2489_v60 = vmul.f32 %v5068_v44, %v2327_v55  ;;  %2892 = vmatprep.subr.mxu1 %v2828_v58  ;;  %v2816_v21 = vld [vmem:[%s5563_s9 + $0x48] sm:$0xff]  ;;  %v2867_v53 = vld [vmem:[%s5563_s9 + $0x1e0] sm:$0xff]  ;;  %v2866_v54 = vld [vmem:[%s5563_s9 + $0x1d8] sm:$0xff] }
 0x3e4   : > { %v5151_v10 = vpop.f32.mrf.mxu0  ;;  %2893 = vmatpush1.msra.mxu1 %v2827_v24  ;;  %v2865_v55 = vld [vmem:[%s5563_s9 + $0x1d0] sm:$0xff]  ;;  %v2851_v24 = vld [vmem:[%s5563_s9 + $0x160] sm:$0xff] }
 0x3e5   : > { %v5123_v62 = vmax.f32 %v2715_v34, %v2628_v1  ;;  %v2629_v61 = vmax.f32 %v2565_v59, 0.0  ;;  %v2566_v2 = vadd.f32 %v5077_v12, %v2489_v60  ;;  %2894 = vmatprep.subr.mxu1 %v2826_v14  ;;  %v2812_v34 = vld [vmem:[%s5563_s9 + $0x28] sm:$0xff]  ;;  %v2863_v60 = vld [vmem:[%s5563_s9 + $0x1c0] sm:$0xff]  ;;  %v2857_v6 = vld [vmem:[%s5563_s9 + $0x190] sm:$0xff] }
 0x3e6   : > { %v5165_v13 = vpop.f32.mrf.mxu0  ;;  %2895 = vmatpush1.msra.mxu1 %v2825_v15  ;;  %v2864_v1 = vld [vmem:[%s5563_s9 + $0x1c8] sm:$0xff]  ;;  %v2853_v11 = vld [vmem:[%s5563_s9 + $0x170] sm:$0xff]  ;;  %v2850_v14 = vld [vmem:[%s5563_s9 + $0x158] sm:$0xff] }
 0x3e7   : > { %v5126_v63 = vmax.f32 %v2679_v45, %v2629_v61  ;;  %v2630_v0 = vmax.f32 %v2566_v2, 0.0  ;;  %2896 = vmatprep.subr.mxu1 %v2824_v28  ;;  %v2808_v45 = vld [vmem:[%s5563_s9 + $0x8] sm:$0xff]  ;;  %v2862_v61 = vld [vmem:[%s5563_s9 + $0x1b8] sm:$0xff]  ;;  %v2861_v2 = vld [vmem:[%s5563_s9 + $0x1b0] sm:$0xff] }
 0x3e8   : > { %v5185_v5 = vpop.f32.mrf.mxu0  ;;  %2897 = vmatpush1.msra.mxu1 %v2823_v25  ;;  %v2849_v15 = vld [vmem:[%s5563_s9 + $0x150] sm:$0xff]  ;;  %v2848_v28 = vld [vmem:[%s5563_s9 + $0x148] sm:$0xff]  ;;  %v2847_v25 = vld [vmem:[%s5563_s9 + $0x140] sm:$0xff] }
 0x3e9   : > { %v5128_v47 = vmax.f32 %v2716_v29, %v2630_v0  ;;  %2898 = vmatprep.subr.mxu1 %v2822_v16  ;;  %v2868_v29 = vld [vmem:[%s5563_s9 + $0x1e8] sm:$0xff]  ;;  %v2846_v16 = vld [vmem:[%s5563_s9 + $0x138] sm:$0xff] }
 0x3ea   : > { %2899 = vmatpush1.msra.mxu1 %v2821_v17  ;;  %v5193_v18 = vpop.f32.mrf.mxu0  ;;  %v2860_v0 = vld [vmem:[%s5563_s9 + $0x1a8] sm:$0xff] }
 0x3eb   : > { %2900 = vmatprep.subr.mxu1 %v2820_v56  ;;  %v2845_v56 = vld [vmem:[%s5563_s9 + $0x130] sm:$0xff] }
 0x3ec   : > { %2901 = vmatpush1.msra.mxu1 %v2819_v19  ;;  %v5207_v22 = vpop.f32.mrf.mxu0  ;;  %v2844_v19 = vld [vmem:[%s5563_s9 + $0x128] sm:$0xff] }
 0x3ed   : > { %2902 = vmatprep.subr.mxu1 %v2818_v9  ;;  %v2843_v9 = vld [vmem:[%s5563_s9 + $0x120] sm:$0xff] }
 0x3ee   : > { %2903 = vmatpush1.msra.mxu1 %v2817_v20  ;;  %v5221_v35 = vpop.f32.mrf.mxu0  ;;  %v2842_v20 = vld [vmem:[%s5563_s9 + $0x118] sm:$0xff] }
 0x3ef   : > { %2904 = vmatprep.subr.mxu1 %v2816_v21 }
 0x3f0   : > { %2905 = vmatpush1.msra.mxu1 %v2815_v52  ;;  %v5235_v46 = vpop.f32.mrf.mxu0  ;;  %v2841_v52 = vld [vmem:[%s5563_s9 + $0x110] sm:$0xff] }
 0x3f1   : > { %2906 = vmatprep.subr.mxu1 %v2814_v31  ;;  %v2840_v31 = vld [vmem:[%s5563_s9 + $0x108] sm:$0xff] }
 0x3f2   : > { %2907 = vmatpush1.msra.mxu1 %v2813_v27  ;;  %v5249_v49 = vpop.f32.mrf.mxu0 }
 0x3f3   : > { %2908 = vmatprep.subr.mxu1 %v2812_v34  ;;  %v2839_v34 = vld [vmem:[%s5563_s9 + $0x100] sm:$0xff] }
 0x3f4   : > { %2909 = vmatpush1.msra.mxu1 %v2811_v37  ;;  %v5263_v59 = vpop.f32.mrf.mxu0 }
 0x3f5   : > { %2910 = vmatprep.subr.mxu1 %v2810_v40  ;;  %v3038_v40 = vld [vmem:[#allocation10 + $0xf8] sm:$0xff] }
 0x3f6   : > { %2911 = vmatpush1.msra.mxu1 %v2809_v41  ;;  %v5277_v43 = vpop.f32.mrf.mxu0 }
 0x3f7   : > { %2912 = vmatprep.subr.mxu1 %v2808_v45 }
 0x3f8   : > { %2913 = vmatpush1.msra.mxu1 %v2807_v50 }
 0x3f9   : > { %2914 = vmatprep.subr.mxu1 %v2870_v48  ;;  %v5291_v8 = vpop.f32.mrf.mxu0 }
 0x3fa   : > { %2915 = vmatpush2.msra.mxu1 %v2869_v23 }
 0x3fb   : > { %2916 = vmatprep.subr.mxu1 %v2868_v29  ;;  %v5305_v58 = vpop.f32.mrf.mxu0 }
 0x3fc   : > { %2917 = vmatpush2.msra.mxu1 %v2867_v53 }
 0x3fd   : > { %2918 = vmatprep.subr.mxu1 %v2866_v54  ;;  %v5325_v17 = vpop.f32.mrf.mxu0 }
 0x3fe   : > { %2919 = vmatpush2.msra.mxu1 %v2865_v55 }
 0x3ff   : > { %2920 = vmatprep.subr.mxu1 %v2864_v1  ;;  %v5339_v21 = vpop.f32.mrf.mxu0 }
 0x400   : > { %2921 = vmatpush2.msra.mxu1 %v2863_v60 }
 0x401   : > { %2922 = vmatprep.subr.mxu1 %v2862_v61 }
 0x402   : > { %2923 = vmatpush2.msra.mxu1 %v2861_v2  ;;  %v2490_v2 = vmul.f32 %v5061_v39, %v5151_v10 }
 0x403   : > { %2924 = vmatprep.subr.mxu1 %v2860_v0  ;;  %v2491_v0 = vmul.f32 %v5068_v44, %v5165_v13 }
 0x404   : > { %2925 = vmatpush2.msra.mxu1 %v2859_v3  ;;  %v2492_v3 = vmul.f32 %v5061_v39, %v5185_v5 }
 0x405   : > { %2926 = vmatprep.subr.mxu1 %v2858_v42  ;;  %v2568_v10 = vadd.f32 %v5077_v12, %v2491_v0 }
 0x406   : > { %2927 = vmatpush2.msra.mxu1 %v2857_v6  ;;  %v2493_v6 = vmul.f32 %v5068_v44, %v5193_v18  ;;  %v2569_v13 = vadd.f32 %v5073_v51, %v2492_v3 }
 0x407   : > { %2928 = vmatprep.subr.mxu1 %v2856_v7  ;;  %v2494_v7 = vmul.f32 %v5061_v39, %v5207_v22 }
 0x408   : > { %2929 = vmatpush2.msra.mxu1 %v2855_v4  ;;  %v2495_v4 = vmul.f32 %v5068_v44, %v5221_v35  ;;  %v2570_v5 = vadd.f32 %v5077_v12, %v2493_v6  ;;  %v2497_v35 = vmul.f32 %v5068_v44, %v5249_v49  ;;  %v2502_v6 = vmul.f32 %v5061_v39, %v5325_v17 }
 0x409   : > { %2930 = vmatprep.subr.mxu1 %v2854_v26  ;;  %v2567_v26 = vadd.f32 %v5073_v51, %v2490_v2  ;;  %v2571_v18 = vadd.f32 %v5073_v51, %v2494_v7 }
 0x40a   : > { %2931 = vmatpush2.msra.mxu1 %v2853_v11  ;;  %v2572_v22 = vadd.f32 %v5077_v12, %v2495_v4 }
 0x40b   : > { %2932 = vmatprep.subr.mxu1 %v2852_v30  ;;  %v2496_v30 = vmul.f32 %v5061_v39, %v5235_v46  ;;  %v2499_v46 = vmul.f32 %v5068_v44, %v5277_v43  ;;  %v2501_v43 = vmul.f32 %v5068_v44, %v5305_v58 }
 0x40c   : > { %2933 = vmatpush2.msra.mxu1 %v2851_v24  ;;  %v2373_v27 = vpop.f32.mrf.mxu0 }
 0x40d   : > { %2934 = vmatprep.subr.mxu1 %v2850_v14  ;;  %v2498_v14 = vmul.f32 %v5061_v39, %v5263_v59  ;;  %v2500_v59 = vmul.f32 %v5061_v39, %v5291_v8  ;;  %v2576_v3 = vadd.f32 %v5077_v12, %v2499_v46  ;;  %v2503_v8 = vmul.f32 %v5068_v44, %v5339_v21 }
 0x40e   : > { %2935 = vmatpush2.msra.mxu1 %v2849_v15  ;;  %v2375_v37 = vpop.f32.mrf.mxu0  ;;  %v2631_v15 = vmax.f32 %v2567_v26, 0.0 }
 0x40f   : > { %2936 = vmatprep.subr.mxu1 %v2848_v28  ;;  %v2632_v28 = vmax.f32 %v2568_v10, 0.0  ;;  %v2575_v49 = vadd.f32 %v5073_v51, %v2498_v14  ;;  %v2578_v10 = vadd.f32 %v5077_v12, %v2501_v43 }
 0x410   : > { %2937 = vmatpush2.msra.mxu1 %v2847_v25  ;;  %v2379_v41 = vpop.f32.mrf.mxu0  ;;  %v2633_v25 = vmax.f32 %v2569_v13, 0.0 }
 0x411   : > { %2938 = vmatprep.subr.mxu1 %v2846_v16  ;;  %v2634_v16 = vmax.f32 %v2570_v5, 0.0  ;;  %v2639_v26 = vmax.f32 %v2575_v49, 0.0  ;;  %v2506_v13 = vmul.f32 %v5061_v39, %v2379_v41 }
 0x412   : > { %2939 = vmatpush2.msra.mxu1 %v2845_v56  ;;  %v2381_v45 = vpop.f32.mrf.mxu0  ;;  %v2573_v56 = vadd.f32 %v5073_v51, %v2496_v30  ;;  %v2640_v30 = vmax.f32 %v2576_v3, 0.0 }
 0x413   : > { %2940 = vmatprep.subr.mxu1 %v2844_v19  ;;  %v2635_v19 = vmax.f32 %v2571_v18, 0.0  ;;  %v2720_v2 = vmax.f32 %v5128_v47, %v2634_v16  ;;  %v2577_v47 = vadd.f32 %v5073_v51, %v2500_v59  ;;  %v2507_v17 = vmul.f32 %v5068_v44, %v2381_v45 }
 0x414   : > { %2941 = vmatpush2.msra.mxu1 %v2843_v9  ;;  %v2637_v0 = vmax.f32 %v2573_v56, 0.0  ;;  %v2580_v18 = vadd.f32 %v5077_v12, %v2503_v8  ;;  %v2583_v16 = vadd.f32 %v5073_v51, %v2506_v13 }
 0x415   : > { %2942 = vmatprep.subr.mxu1 %v2842_v20  ;;  %v2636_v20 = vmax.f32 %v2572_v22, 0.0 }
 0x416   : > { %2943 = vmatpush2.msra.mxu1 %v2841_v52  ;;  %v2574_v52 = vadd.f32 %v5077_v12, %v2497_v35  ;;  %v2644_v49 = vmax.f32 %v2580_v18, 0.0  ;;  %v2647_v3 = vmax.f32 %v2583_v16, 0.0 }
 0x417   : > { %2944 = vmatprep.subr.mxu1 %v2840_v31  ;;  %v2682_v31 = vmax.f32 %v5119_v57, %v2631_v15  ;;  %v2504_v57 = vmul.f32 %v5061_v39, %v2373_v27  ;;  %v2579_v27 = vadd.f32 %v5073_v51, %v2502_v6 }
 0x418   : > { %2945 = vmatpush2.msra.mxu1 %v2839_v34  ;;  %v2719_v34 = vmax.f32 %v5123_v62, %v2632_v28  ;;  %v2505_v62 = vmul.f32 %v5068_v44, %v2375_v37  ;;  %v2638_v58 = vmax.f32 %v2574_v52, 0.0 }
 0x419   : > { %3083 = vmatprep.subr.mxu1 %v3038_v40  ;;  %v2683_v40 = vmax.f32 %v5126_v63, %v2633_v25  ;;  %v2684_v7 = vmax.f32 %v2682_v31, %v2635_v19  ;;  %v2581_v22 = vadd.f32 %v5073_v51, %v2504_v57  ;;  %v2642_v25 = vmax.f32 %v2578_v10, 0.0 }
 0x41a   : > { %v2721_v4 = vmax.f32 %v2719_v34, %v2636_v20  ;;  %v2582_v35 = vadd.f32 %v5077_v12, %v2505_v62  ;;  %v2722_v45 = vmax.f32 %v2720_v2, %v2638_v58  ;;  %v2643_v20 = vmax.f32 %v2579_v27, 0.0 }
 0x41b   : > { %v2685_v21 = vmax.f32 %v2683_v40, %v2637_v0  ;;  %v2686_v15 = vmax.f32 %v2684_v7, %v2639_v26  ;;  %v2645_v59 = vmax.f32 %v2581_v22, 0.0 }
 0x41c   : > { %v2723_v19 = vmax.f32 %v2721_v4, %v2640_v30  ;;  %v2646_v31 = vmax.f32 %v2582_v35, 0.0  ;;  %v2724_v0 = vmax.f32 %v2722_v45, %v2642_v25 }
 0x41e   : > { %v2725_v58 = vmax.f32 %v2723_v19, %v2644_v49 }
 0x41f   : > { %v2385_v50 = vpop.f32.mrf.mxu0 }
 0x420   : > { %v2508_v5 = vmul.f32 %v5061_v39, %v2385_v50  ;;  %v2641_v50 = vmax.f32 %v2577_v47, 0.0  ;;  %v2726_v47 = vmax.f32 %v2724_v0, %v2646_v31 }
 0x421   : > { %v5350_v48 = vpop.f32.mrf.mxu0 }
 0x422   : > { %v2509_v37 = vmul.f32 %v5068_v44, %v5350_v48  ;;  %v2584_v48 = vadd.f32 %v5077_v12, %v2507_v17  ;;  %v2585_v56 = vadd.f32 %v5073_v51, %v2508_v5  ;;  %v2687_v34 = vmax.f32 %v2685_v21, %v2641_v50 }
 0x423   : > { %v5352_v23 = vpop.f32.mrf.mxu0 }
 0x424   : > { %v2510_v41 = vmul.f32 %v5061_v39, %v5352_v23  ;;  %v2586_v52 = vadd.f32 %v5077_v12, %v2509_v37  ;;  %v2648_v6 = vmax.f32 %v2584_v48, 0.0  ;;  %v2649_v7 = vmax.f32 %v2585_v56, 0.0 }
 0x425   : > { %v5354_v29 = vpop.f32.mrf.mxu0  ;;  %v2689_v26 = vmax.f32 %v2687_v34, %v2645_v59 }
 0x426   : > { %v2511_v28 = vmul.f32 %v5068_v44, %v5354_v29  ;;  %v2587_v29 = vadd.f32 %v5073_v51, %v2510_v41  ;;  %v2650_v57 = vmax.f32 %v2586_v52, 0.0  ;;  %v2727_v21 = vmax.f32 %v2725_v58, %v2648_v6 }
 0x427   : > { %v2691_v30 = vmax.f32 %v2689_v26, %v2649_v7 }
 0x428   : > { %v2588_v40 = vadd.f32 %v5077_v12, %v2511_v28  ;;  %v2651_v10 = vmax.f32 %v2587_v29, 0.0 }
 0x432   : > { %v5356_v53 = vpop.f32.mrf.mxu0 }
 0x433   : > { %v2512_v23 = vmul.f32 %v5061_v39, %v5356_v53  ;;  %v2688_v53 = vmax.f32 %v2686_v15, %v2643_v20 }
 0x434   : > { %v5358_v54 = vpop.f32.mrf.mxu0 }
 0x435   : > { %v2513_v43 = vmul.f32 %v5068_v44, %v5358_v54  ;;  %v2589_v62 = vadd.f32 %v5073_v51, %v2512_v23  ;;  %v2652_v54 = vmax.f32 %v2588_v40, 0.0  ;;  %v2690_v5 = vmax.f32 %v2688_v53, %v2647_v3 }
 0x436   : > { %v5360_v55 = vpop.f32.mrf.mxu0 }
 0x437   : > { %v2514_v2 = vmul.f32 %v5061_v39, %v5360_v55  ;;  %v2590_v13 = vadd.f32 %v5077_v12, %v2513_v43  ;;  %v2653_v18 = vmax.f32 %v2589_v62, 0.0  ;;  %v2692_v41 = vmax.f32 %v2690_v5, %v2651_v10 }
 0x438   : > { %v5362_v1 = vpop.f32.mrf.mxu0  ;;  %v2729_v50 = vmax.f32 %v2727_v21, %v2652_v54 }
 0x439   : > { %v2515_v4 = vmul.f32 %v5068_v44, %v5362_v1  ;;  %v2591_v55 = vadd.f32 %v5073_v51, %v2514_v2  ;;  %v2728_v1 = vmax.f32 %v2726_v47, %v2650_v57  ;;  %v2693_v19 = vmax.f32 %v2691_v30, %v2653_v18 }
 0x43b   : > { %v2592_v22 = vadd.f32 %v5077_v12, %v2515_v4  ;;  %v2655_v28 = vmax.f32 %v2591_v55, 0.0 }
 0x43d   : > { %v2694_v31 = vmax.f32 %v2692_v41, %v2655_v28 }
 0x445   : > { %v5364_v60 = vpop.f32.mrf.mxu0 }
 0x446   : > { %v2516_v17 = vmul.f32 %v5061_v39, %v5364_v60 }
 0x447   : > { %v5366_v61 = vpop.f32.mrf.mxu0 }
 0x448   : > { %v2517_v35 = vmul.f32 %v5068_v44, %v5366_v61  ;;  %v2593_v25 = vadd.f32 %v5073_v51, %v2516_v17 }
 0x449   : > { %v5374_v42 = vpop.f32.mrf.mxu0 }
 0x44a   : > { %v2518_v27 = vmul.f32 %v5061_v39, %v5374_v42  ;;  %v2654_v42 = vmax.f32 %v2590_v13, 0.0  ;;  %v2594_v20 = vadd.f32 %v5077_v12, %v2517_v35 }
 0x44b   : > { %v5385_v11 = vpop.f32.mrf.mxu0 }
 0x44c   : > { %v2519_v45 = vmul.f32 %v5068_v44, %v5385_v11  ;;  %v2595_v16 = vadd.f32 %v5073_v51, %v2518_v27  ;;  %v2658_v3 = vmax.f32 %v2594_v20, 0.0 }
 0x44e   : > { %v2596_v52 = vadd.f32 %v5077_v12, %v2519_v45  ;;  %v2659_v29 = vmax.f32 %v2595_v16, 0.0 }
 0x450   : > { %v2696_v54 = vmax.f32 %v2694_v31, %v2659_v29 }
 0x458   : > { %v5391_v24 = vpop.f32.mrf.mxu0 }
 0x459   : > { %v2520_v60 = vmul.f32 %v5061_v39, %v5391_v24  ;;  %v2656_v24 = vmax.f32 %v2592_v22, 0.0 }
 0x45a   : > { %v5401_v9 = vpop.f32.mrf.mxu0 }
 0x45b   : > { %v2521_v61 = vmul.f32 %v5068_v44, %v5401_v9  ;;  %v2597_v23 = vadd.f32 %v5073_v51, %v2520_v60  ;;  %v2730_v9 = vmax.f32 %v2728_v1, %v2654_v42  ;;  %v2731_v0 = vmax.f32 %v2729_v50, %v2656_v24 }
 0x45c   : > { %v5420_v63 = vpop.f32.mrf.mxu0 }
 0x45d   : > { %v2522_v15 = vmul.f32 %v5061_v39, %v5420_v63  ;;  %v2598_v34 = vadd.f32 %v5077_v12, %v2521_v61  ;;  %v2661_v53 = vmax.f32 %v2597_v23, 0.0  ;;  %v2732_v21 = vmax.f32 %v2730_v9, %v2658_v3 }
 0x45e   : > { %v2429_v14 = vpop.f32.mrf.mxu0 }
 0x45f   : > { %v2523_v48 = vmul.f32 %v5068_v44, %v2429_v14  ;;  %v2599_v49 = vadd.f32 %v5073_v51, %v2522_v15  ;;  %v2657_v14 = vmax.f32 %v2593_v25, 0.0  ;;  %v2662_v13 = vmax.f32 %v2598_v34, 0.0 }
 0x461   : > { %v2600_v40 = vadd.f32 %v5077_v12, %v2523_v48  ;;  %v2663_v57 = vmax.f32 %v2599_v49, 0.0  ;;  %v2695_v58 = vmax.f32 %v2693_v19, %v2657_v14  ;;  %v2734_v42 = vmax.f32 %v2732_v21, %v2662_v13  ;;  %v3031_v13 = vld [vmem:[#allocation10 + $0xc0] sm:$0xff] }
 0x462   : > { %v4273_v14 = vmov 1966171168   ;;  %v3027_v21 = vld [vmem:[#allocation10 + $0xa0] sm:$0xff] }
 0x463   : > { %v2664_v55 = vmax.f32 %v2600_v40, 0.0  ;;  %v2697_v18 = vmax.f32 %v2695_v58, %v2661_v53  ;;  %v2698_v22 = vmax.f32 %v2696_v54, %v2663_v57  ;;  %v3032_v54 = vld [vmem:[#allocation10 + $0xc8] sm:$0xff] }
 0x46b   : > { %v2433_v46 = vpop.f32.mrf.mxu0 }
 0x46c   : > { %v2524_v11 = vmul.f32 %v5061_v39, %v2433_v46 }
 0x46d   : > { %v2435_v8 = vpop.f32.mrf.mxu0 }
 0x46e   : > { %v2525_v59 = vmul.f32 %v5068_v44, %v2435_v8  ;;  %v2601_v43 = vadd.f32 %v5073_v51, %v2524_v11  ;;  %v2660_v8 = vmax.f32 %v2596_v52, 0.0 }
 0x46f   : > { %v2439_v37 = vpop.f32.mrf.mxu0 }
 0x470   : > { %v2526_v63 = vmul.f32 %v5061_v39, %v2439_v37  ;;  %v2602_v62 = vadd.f32 %v5077_v12, %v2525_v59  ;;  %v2665_v17 = vmax.f32 %v2601_v43, 0.0  ;;  %v2733_v1 = vmax.f32 %v2731_v0, %v2660_v8 }
 0x471   : > { %v2441_v56 = vpop.f32.mrf.mxu0 }
 0x472   : > { %v2527_v46 = vmul.f32 %v5068_v44, %v2441_v56  ;;  %v2603_v6 = vadd.f32 %v5073_v51, %v2526_v63  ;;  %v2666_v35 = vmax.f32 %v2602_v62, 0.0  ;;  %v2735_v28 = vmax.f32 %v2733_v1, %v2664_v55  ;;  %v3030_v55 = vld [vmem:[#allocation10 + $0xb8] sm:$0xff]  ;;  %v3023_v1 = vld [vmem:[#allocation10 + $0x80] sm:$0xff] }
 0x473   : > { %v2699_v25 = vmax.f32 %v2697_v18, %v2665_v17  ;;  %v3029_v17 = vld [vmem:[#allocation10 + $0xb0] sm:$0xff]  ;;  %v3022_v18 = vld [vmem:[#allocation10 + $0x78] sm:$0xff] }
 0x474   : > { %v2604_v26 = vadd.f32 %v5077_v12, %v2527_v46  ;;  %v2667_v30 = vmax.f32 %v2603_v6, 0.0  ;;  %v2755_v46 = vunpack.c.l.s4 %v4273_v14  ;;  %v3057_v14 = vld [vmem:[#allocation10 + $0x190] sm:$0xff] }
 0x476   : > { %v2668_v45 = vmax.f32 %v2604_v26, 0.0  ;;  %v2700_v16 = vmax.f32 %v2698_v22, %v2667_v30  ;;  %v2756_v43 = vunpack.c.0.s8 %v2755_v46  ;;  %v3036_v26 = vld [vmem:[#allocation10 + $0xe8] sm:$0xff]  ;;  %v3026_v30 = vld [vmem:[#allocation10 + $0x98] sm:$0xff]  ;;  %v3021_v22 = vld [vmem:[#allocation10 + $0x70] sm:$0xff] }
 0x477   : > { %v3056_v46 = vld [vmem:[#allocation10 + $0x188] sm:$0xff] }
 0x478   : > { %v2737_v56 = vmax.f32 %v2735_v28, %v2668_v45  ;;  %v5495_v6 = vsub.s32 %v2756_v43, %v4585_v33  ;;  %v3037_v33 = vld [vmem:[#allocation10 + $0xf0] sm:$0xff]  ;;  %v3018_v45 = vld [vmem:[#allocation10 + $0x58] sm:$0xff]  ;;  %v3051_v43 = vld [vmem:[#allocation10 + $0x160] sm:$0xff] }
 0x479   : > { %v3013_v28 = vld [vmem:[#allocation10 + $0x30] sm:$0xff] }
 0x47e   : > { %v2445_v2 = vpop.f32.mrf.mxu0 }
 0x47f   : > { %v2528_v7 = vmul.f32 %v5061_v39, %v2445_v2 }
 0x480   : > { %v2447_v4 = vpop.f32.mrf.mxu0 }
 0x481   : > { %v2605_v47 = vadd.f32 %v5073_v51, %v2528_v7  ;;  %v2529_v10 = vmul.f32 %v5068_v44, %v2447_v4 }
 0x482   : > { %v2451_v5 = vpop.f32.mrf.mxu0 }
 0x483   : > { %v2606_v27 = vadd.f32 %v5077_v12, %v2529_v10  ;;  %v2530_v37 = vmul.f32 %v5061_v39, %v2451_v5  ;;  %v2669_v60 = vmax.f32 %v2605_v47, 0.0  ;;  %v2736_v39 = vmax.f32 %v2734_v42, %v2666_v35  ;;  %v3035_v47 = vld [vmem:[#allocation10 + $0xe0] sm:$0xff]  ;;  %v3033_v10 = vld [vmem:[#allocation10 + $0xd0] sm:$0xff]  ;;  %v3028_v5 = vld [vmem:[#allocation10 + $0xa8] sm:$0xff] }
 0x484   : > { %v2453_v41 = vpop.f32.mrf.mxu0  ;;  %v3020_v35 = vld [vmem:[#allocation10 + $0x68] sm:$0xff]  ;;  %v3014_v42 = vld [vmem:[#allocation10 + $0x38] sm:$0xff] }
 0x485   : > { %v2607_v15 = vadd.f32 %v5073_v51, %v2530_v37  ;;  %v2531_v50 = vmul.f32 %v5068_v44, %v2453_v41  ;;  %v2670_v61 = vmax.f32 %v2606_v27, 0.0  ;;  %v2701_v19 = vmax.f32 %v2699_v25, %v2669_v60  ;;  %v3025_v27 = vld [vmem:[#allocation10 + $0x90] sm:$0xff]  ;;  %v3024_v37 = vld [vmem:[#allocation10 + $0x88] sm:$0xff]  ;;  %v3019_v41 = vld [vmem:[#allocation10 + $0x60] sm:$0xff] }
 0x486   : > { %v3017_v60 = vld [vmem:[#allocation10 + $0x50] sm:$0xff]  ;;  %v3012_v25 = vld [vmem:[#allocation10 + $0x28] sm:$0xff] }
 0x487   : > { %v2671_v48 = vmax.f32 %v2607_v15, 0.0  ;;  %v2608_v11 = vadd.f32 %v5077_v12, %v2531_v50  ;;  %v2738_v63 = vmax.f32 %v2736_v39, %v2670_v61  ;;  %v3016_v15 = vld [vmem:[#allocation10 + $0x48] sm:$0xff]  ;;  %v3015_v50 = vld [vmem:[#allocation10 + $0x40] sm:$0xff]  ;;  %v3010_v61 = vld [vmem:[#allocation10 + $0x18] sm:$0xff] }
 0x488   : > { %v3007_v39 = vld [vmem:[#allocation10] sm:$0xff] }
 0x489   : > { %v2702_v24 = vmax.f32 %v2700_v16, %v2671_v48  ;;  %v2672_v20 = vmax.f32 %v2608_v11, 0.0  ;;  %v3011_v16 = vld [vmem:[#allocation10 + $0x20] sm:$0xff]  ;;  %v3009_v48 = vld [vmem:[#allocation10 + $0x10] sm:$0xff]  ;;  %v3008_v11 = vld [vmem:[#allocation10 + $0x8] sm:$0xff] }
 0x48b   : > { %v2703_v52 = vmax.f32 %v2701_v19, %v2702_v24  ;;  %v2739_v23 = vmax.f32 %v2737_v56, %v2672_v20  ;;  %v3070_v56 = vld [vmem:[#allocation10 + $0x1f8] sm:$0xff]  ;;  %v3069_v19 = vld [vmem:[#allocation10 + $0x1f0] sm:$0xff]  ;;  %v3068_v24 = vld [vmem:[#allocation10 + $0x1e8] sm:$0xff] }
 0x48c   : > { %v3067_v20 = vld [vmem:[#allocation10 + $0x1e0] sm:$0xff] }
 0x48d   : > { %v2704_v49 = vrot.slane %v2703_v52, 4  ;;  %v2740_v51 = vmax.f32 %v2738_v63, %v2739_v23  ;;  %v3066_v63 = vld [vmem:[#allocation10 + $0x1d8] sm:$0xff]  ;;  %v3064_v23 = vld [vmem:[#allocation10 + $0x1c8] sm:$0xff] }
 0x48f   : > { %v2705_v59 = vmax.f32 %v2703_v52, %v2704_v49  ;;  %v2741_v44 = vrot.slane %v2740_v51, 4  ;;  %v3065_v52 = vld [vmem:[#allocation10 + $0x1d0] sm:$0xff]  ;;  %v3063_v49 = vld [vmem:[#allocation10 + $0x1c0] sm:$0xff] }
 0x491   : > { %v2706_v9 = vrot.slane %v2705_v59, 2  ;;  %v2742_v31 = vmax.f32 %v2740_v51, %v2741_v44  ;;  %v3062_v51 = vld [vmem:[#allocation10 + $0x1b8] sm:$0xff]  ;;  %v3060_v44 = vld [vmem:[#allocation10 + $0x1a8] sm:$0xff] }
 0x493   : > { %v2707_v29 = vmax.f32 %v2705_v59, %v2706_v9  ;;  %v2743_v34 = vrot.slane %v2742_v31, 2  ;;  %v3061_v59 = vld [vmem:[#allocation10 + $0x1b0] sm:$0xff]  ;;  %v3059_v9 = vld [vmem:[#allocation10 + $0x1a0] sm:$0xff] }
 0x495   : > { %v2708_v40 = vrot.slane %v2707_v29, 1  ;;  %v2744_v12 = vmax.f32 %v2742_v31, %v2743_v34  ;;  %v3058_v31 = vld [vmem:[#allocation10 + $0x198] sm:$0xff] }
 0x496   : > { %v3054_v34 = vld [vmem:[#allocation10 + $0x178] sm:$0xff] }
 0x497   : > { %v2745_v2 = vrot.slane %v2744_v12, 1  ;;  %v2709_v0 = vmax.f32 %v2707_v29, %v2708_v40  ;;  %v3055_v29 = vld [vmem:[#allocation10 + $0x180] sm:$0xff]  ;;  %v3053_v40 = vld [vmem:[#allocation10 + $0x170] sm:$0xff] }
 0x499   : > { %v2746_v3 = vmax.f32 %v2744_v12, %v2745_v2  ;;  %v3052_v12 = vld [vmem:[#allocation10 + $0x168] sm:$0xff]  ;;  %v3050_v2 = vld [vmem:[#allocation10 + $0x158] sm:$0xff] }
 0x49b   : > { %v2753_v7 = vcombine.low %v2709_v0, %v2746_v3  ;;  %v3049_v0 = vld [vmem:[#allocation10 + $0x150] sm:$0xff]  ;;  %v3048_v3 = vld [vmem:[#allocation10 + $0x148] sm:$0xff] }
 0x49d   : > { %v2760_v8 = vrot.slane %v2753_v7, %v5495_v6  ;;  %v3047_v7 = vld [vmem:[#allocation10 + $0x140] sm:$0xff] }
 0x49f   : > { %v2767_v57 = vrot.slane %v2760_v8, %v5495_v6  ;;  %v3046_v8 = vld [vmem:[#allocation10 + $0x138] sm:$0xff] }
 0x4a1   : > { %2773 = vst.msk [vmem:[#allocation2] sm:$0x3] %vm5499_vm1, %v2767_v57  ;;  %v3045_v57 = vld [vmem:[#allocation10 + $0x130] sm:$0xff] }
 0x4a8   : > { %v2806_v62 = vld [vmem:[#allocation2] sm:$0x3] }
 0x4a9   : > { %v2875_v4 = vrot.slane %v2806_v62, %v4593_v38  ;;  %v2879_v58 = vrot.slane %v2806_v62, %v4589_v36  ;;  %v3044_v62 = vld [vmem:[#allocation10 + $0x128] sm:$0xff] }
 0x4ab   : > { %2946 = vmatprep.mubr.f32.mxu1 %v2879_v58  ;;  %v3042_v58 = vld [vmem:[#allocation10 + $0x118] sm:$0xff] }
 0x4ac   : > { %2947 = vmatmul.mubr.f32.vlgmr.msra.gmra.mxu1 %v2875_v4  ;;  %v3043_v4 = vld [vmem:[#allocation10 + $0x120] sm:$0xff] }
 0x4ad   : > { %3084 = vmatpush1.msra.mxu1 %v3037_v33  ;;  %v3041_v33 = vld [vmem:[#allocation10 + $0x110] sm:$0xff] }
 0x4ae   : > { %3085 = vmatprep.subr.mxu1 %v3036_v26  ;;  %v3040_v26 = vld [vmem:[#allocation10 + $0x108] sm:$0xff] }
 0x4af   : > { %3086 = vmatpush1.msra.mxu1 %v3035_v47  ;;  %v3039_v47 = vld [vmem:[#allocation10 + $0x100] sm:$0xff] }
 0x4b0   : > { %3087 = vmatprep.subr.mxu1 %v3034_v32  ;;  %v3199_v32 = vld [vmem:[#allocation13 + $0xf8] sm:$0xff] }
 0x4b1   : > { %3088 = vmatpush1.msra.mxu1 %v3033_v10  ;;  %v3198_v10 = vld [vmem:[#allocation13 + $0xf0] sm:$0xff]  ;;  %3232 = vmatprep.subr.mxu0 %v3199_v32  ;;  %v3203_v32 = vld [vmem:[#allocation13 + $0x118] sm:$0xff] }
 0x4b2   : > { %3089 = vmatprep.subr.mxu1 %v3032_v54  ;;  %v3197_v54 = vld [vmem:[#allocation13 + $0xe8] sm:$0xff]  ;;  %3233 = vmatpush1.msra.mxu0 %v3198_v10  ;;  %v2953_v10 = vld [vmem:[%s5564_s10] ss:$2 sm:$0x3] }
 0x4b3   : > { %3090 = vmatpush1.msra.mxu1 %v3031_v13  ;;  %v3196_v13 = vld [vmem:[#allocation13 + $0xe0] sm:$0xff]  ;;  %3234 = vmatprep.subr.mxu0 %v3197_v54  ;;  %v3608_v54 = vld [vmem:[%s5564_s10 + $0x1] ss:$2 sm:$0x3] }
 0x4b4   : > { %3091 = vmatprep.subr.mxu1 %v3030_v55  ;;  %v3195_v55 = vld [vmem:[#allocation13 + $0xd8] sm:$0xff]  ;;  %3235 = vmatpush1.msra.mxu0 %v3196_v13  ;;  %v2958_v13 = vrot.slane %v2953_v10, %v4593_v38 }
 0x4b5   : > { %3092 = vmatpush1.msra.mxu1 %v3029_v17  ;;  %v3194_v17 = vld [vmem:[#allocation13 + $0xd0] sm:$0xff]  ;;  %3236 = vmatprep.subr.mxu0 %v3195_v55  ;;  %v2973_v55 = vrot.slane %v3608_v54, %v4593_v38 }
 0x4b6   : > { %3093 = vmatprep.subr.mxu1 %v3028_v5  ;;  %v3193_v5 = vld [vmem:[#allocation13 + $0xc8] sm:$0xff]  ;;  %3237 = vmatpush1.msra.mxu0 %v3194_v17  ;;  %v2962_v17 = vrot.slane %v2953_v10, %v4589_v36 }
 0x4b7   : > { %3094 = vmatpush1.msra.mxu1 %v3027_v21  ;;  %v3192_v21 = vld [vmem:[#allocation13 + $0xc0] sm:$0xff]  ;;  %3238 = vmatprep.subr.mxu0 %v3193_v5 }
 0x4b8   : > { %3095 = vmatprep.subr.mxu1 %v3026_v30  ;;  %v3191_v30 = vld [vmem:[#allocation13 + $0xb8] sm:$0xff]  ;;  %3239 = vmatpush1.msra.mxu0 %v3192_v21 }
 0x4b9   : > { %3096 = vmatpush1.msra.mxu1 %v3025_v27  ;;  %v3190_v27 = vld [vmem:[#allocation13 + $0xb0] sm:$0xff]  ;;  %3240 = vmatprep.subr.mxu0 %v3191_v30  ;;  %v2977_v30 = vrot.slane %v3608_v54, %v4589_v36 }
 0x4ba   : > { %3097 = vmatprep.subr.mxu1 %v3024_v37  ;;  %v3189_v37 = vld [vmem:[#allocation13 + $0xa8] sm:$0xff]  ;;  %3241 = vmatpush1.msra.mxu0 %v3190_v27 }
 0x4bb   : > { %3098 = vmatpush1.msra.mxu1 %v3023_v1  ;;  %v3188_v1 = vld [vmem:[#allocation13 + $0xa0] sm:$0xff]  ;;  %3242 = vmatprep.subr.mxu0 %v3189_v37 }
 0x4bc   : > { %3099 = vmatprep.subr.mxu1 %v3022_v18  ;;  %v3187_v18 = vld [vmem:[#allocation13 + $0x98] sm:$0xff]  ;;  %3243 = vmatpush1.msra.mxu0 %v3188_v1 }
 0x4bd   : > { %3100 = vmatpush1.msra.mxu1 %v3021_v22  ;;  %v3186_v22 = vld [vmem:[#allocation13 + $0x90] sm:$0xff]  ;;  %3244 = vmatprep.subr.mxu0 %v3187_v18 }
 0x4be   : > { %3101 = vmatprep.subr.mxu1 %v3020_v35  ;;  %v3185_v35 = vld [vmem:[#allocation13 + $0x88] sm:$0xff]  ;;  %3245 = vmatpush1.msra.mxu0 %v3186_v22 }
 0x4bf   : > { %3102 = vmatpush1.msra.mxu1 %v3019_v41  ;;  %v3184_v41 = vld [vmem:[#allocation13 + $0x80] sm:$0xff]  ;;  %3246 = vmatprep.subr.mxu0 %v3185_v35 }
 0x4c0   : > { %3103 = vmatprep.subr.mxu1 %v3018_v45  ;;  %v3183_v45 = vld [vmem:[#allocation13 + $0x78] sm:$0xff]  ;;  %3247 = vmatpush1.msra.mxu0 %v3184_v41 }
 0x4c1   : > { %3104 = vmatpush1.msra.mxu1 %v3017_v60  ;;  %v3182_v60 = vld [vmem:[#allocation13 + $0x70] sm:$0xff]  ;;  %3248 = vmatprep.subr.mxu0 %v3183_v45 }
 0x4c2   : > { %3105 = vmatprep.subr.mxu1 %v3016_v15  ;;  %v3181_v15 = vld [vmem:[#allocation13 + $0x68] sm:$0xff]  ;;  %3249 = vmatpush1.msra.mxu0 %v3182_v60 }
 0x4c3   : > { %3106 = vmatpush1.msra.mxu1 %v3015_v50  ;;  %v3180_v50 = vld [vmem:[#allocation13 + $0x60] sm:$0xff]  ;;  %3250 = vmatprep.subr.mxu0 %v3181_v15  ;;  %v3202_v15 = vld [vmem:[#allocation13 + $0x110] sm:$0xff] }
 0x4c4   : > { %3107 = vmatprep.subr.mxu1 %v3014_v42  ;;  %v3179_v42 = vld [vmem:[#allocation13 + $0x58] sm:$0xff]  ;;  %3251 = vmatpush1.msra.mxu0 %v3180_v50  ;;  %v3201_v50 = vld [vmem:[#allocation13 + $0x108] sm:$0xff] }
 0x4c5   : > { %3108 = vmatpush1.msra.mxu1 %v3013_v28  ;;  %v3178_v28 = vld [vmem:[#allocation13 + $0x50] sm:$0xff]  ;;  %3252 = vmatprep.subr.mxu0 %v3179_v42  ;;  %v3200_v42 = vld [vmem:[#allocation13 + $0x100] sm:$0xff] }
 0x4c6   : > { %3109 = vmatprep.subr.mxu1 %v3012_v25  ;;  %v3177_v25 = vld [vmem:[#allocation13 + $0x48] sm:$0xff]  ;;  %3253 = vmatpush1.msra.mxu0 %v3178_v28  ;;  %v3071_v28 = vld [vmem:[#allocation11] sm:$0x3] }
 0x4c7   : > { %3110 = vmatpush1.msra.mxu1 %v3011_v16  ;;  %v3176_v16 = vld [vmem:[#allocation13 + $0x40] sm:$0xff]  ;;  %3254 = vmatprep.subr.mxu0 %v3177_v25  ;;  %v3076_v25 = vrot.slane %v3071_v28, %v4593_v38 }
 0x4c8   : > { %3111 = vmatprep.subr.mxu1 %v3010_v61  ;;  %v3175_v61 = vld [vmem:[#allocation13 + $0x38] sm:$0xff]  ;;  %3255 = vmatpush1.msra.mxu0 %v3176_v16  ;;  %v3080_v16 = vrot.slane %v3071_v28, %v4589_v36 }
 0x4c9   : > { %3112 = vmatpush1.msra.mxu1 %v3009_v48  ;;  %v3174_v48 = vld [vmem:[#allocation13 + $0x30] sm:$0xff]  ;;  %3256 = vmatprep.subr.mxu0 %v3175_v61 }
 0x4ca   : > { %3113 = vmatprep.subr.mxu1 %v3008_v11  ;;  %v3173_v11 = vld [vmem:[#allocation13 + $0x28] sm:$0xff]  ;;  %3257 = vmatpush1.msra.mxu0 %v3174_v48 }
 0x4cb   : > { %3114 = vmatpush1.msra.mxu1 %v3007_v39  ;;  %v3172_v39 = vld [vmem:[#allocation13 + $0x20] sm:$0xff]  ;;  %3258 = vmatprep.subr.mxu0 %v3173_v11 }
 0x4cc   : > { %3115 = vmatprep.subr.mxu1 %v3070_v56  ;;  %v3171_v56 = vld [vmem:[#allocation13 + $0x18] sm:$0xff]  ;;  %3259 = vmatpush1.msra.mxu0 %v3172_v39 }
 0x4cd   : > { %3116 = vmatpush2.msra.mxu1 %v3069_v19  ;;  %v3170_v19 = vld [vmem:[#allocation13 + $0x10] sm:$0xff]  ;;  %3260 = vmatprep.subr.mxu0 %v3171_v56 }
 0x4ce   : > { %3117 = vmatprep.subr.mxu1 %v3068_v24  ;;  %v3169_v24 = vld [vmem:[#allocation13 + $0x8] sm:$0xff]  ;;  %3261 = vmatpush1.msra.mxu0 %v3170_v19 }
 0x4cf   : > { %3118 = vmatpush2.msra.mxu1 %v3067_v20  ;;  %v3168_v20 = vld [vmem:[#allocation13] sm:$0xff]  ;;  %3262 = vmatprep.subr.mxu0 %v3169_v24 }
 0x4d0   : > { %3119 = vmatprep.subr.mxu1 %v3066_v63  ;;  %v3231_v63 = vld [vmem:[#allocation13 + $0x1f8] sm:$0xff]  ;;  %3263 = vmatpush1.msra.mxu0 %v3168_v20 }
 0x4d1   : > { %3120 = vmatpush2.msra.mxu1 %v3065_v52  ;;  %v3230_v52 = vld [vmem:[#allocation13 + $0x1f0] sm:$0xff]  ;;  %3264 = vmatprep.subr.mxu0 %v3231_v63 }
 0x4d2   : > { %3121 = vmatprep.subr.mxu1 %v3064_v23  ;;  %v3229_v23 = vld [vmem:[#allocation13 + $0x1e8] sm:$0xff]  ;;  %3265 = vmatpush2.msra.mxu0 %v3230_v52 }
 0x4d3   : > { %3122 = vmatpush2.msra.mxu1 %v3063_v49  ;;  %v3228_v49 = vld [vmem:[#allocation13 + $0x1e0] sm:$0xff]  ;;  %3266 = vmatprep.subr.mxu0 %v3229_v23 }
 0x4d4   : > { %3123 = vmatprep.subr.mxu1 %v3062_v51  ;;  %v3227_v51 = vld [vmem:[#allocation13 + $0x1d8] sm:$0xff]  ;;  %3267 = vmatpush2.msra.mxu0 %v3228_v49 }
 0x4d5   : > { %3124 = vmatpush2.msra.mxu1 %v3061_v59  ;;  %v3226_v59 = vld [vmem:[#allocation13 + $0x1d0] sm:$0xff]  ;;  %3268 = vmatprep.subr.mxu0 %v3227_v51 }
 0x4d6   : > { %3125 = vmatprep.subr.mxu1 %v3060_v44  ;;  %v3225_v44 = vld [vmem:[#allocation13 + $0x1c8] sm:$0xff]  ;;  %3269 = vmatpush2.msra.mxu0 %v3226_v59 }
 0x4d7   : > { %3126 = vmatpush2.msra.mxu1 %v3059_v9  ;;  %v3224_v9 = vld [vmem:[#allocation13 + $0x1c0] sm:$0xff]  ;;  %3270 = vmatprep.subr.mxu0 %v3225_v44 }
 0x4d8   : > { %3127 = vmatprep.subr.mxu1 %v3058_v31  ;;  %v3223_v31 = vld [vmem:[#allocation13 + $0x1b8] sm:$0xff]  ;;  %3271 = vmatpush2.msra.mxu0 %v3224_v9 }
 0x4d9   : > { %3128 = vmatpush2.msra.mxu1 %v3057_v14  ;;  %v3222_v14 = vld [vmem:[#allocation13 + $0x1b0] sm:$0xff]  ;;  %3272 = vmatprep.subr.mxu0 %v3223_v31 }
 0x4da   : > { %3129 = vmatprep.subr.mxu1 %v3056_v46  ;;  %v3221_v46 = vld [vmem:[#allocation13 + $0x1a8] sm:$0xff]  ;;  %3273 = vmatpush2.msra.mxu0 %v3222_v14 }
 0x4db   : > { %3130 = vmatpush2.msra.mxu1 %v3055_v29  ;;  %v3220_v29 = vld [vmem:[#allocation13 + $0x1a0] sm:$0xff]  ;;  %3274 = vmatprep.subr.mxu0 %v3221_v46 }
 0x4dc   : > { %3131 = vmatprep.subr.mxu1 %v3054_v34  ;;  %v3219_v34 = vld [vmem:[#allocation13 + $0x198] sm:$0xff]  ;;  %3275 = vmatpush2.msra.mxu0 %v3220_v29 }
 0x4dd   : > { %3132 = vmatpush2.msra.mxu1 %v3053_v40  ;;  %v3218_v40 = vld [vmem:[#allocation13 + $0x190] sm:$0xff]  ;;  %3276 = vmatprep.subr.mxu0 %v3219_v34  ;;  %v3309_v34 = vld [vmem:[%s5568_s14] sm:$0x1f] }
 0x4de   : > { %3133 = vmatprep.subr.mxu1 %v3052_v12  ;;  %v3217_v12 = vld [vmem:[#allocation13 + $0x188] sm:$0xff]  ;;  %3277 = vmatpush2.msra.mxu0 %v3218_v40 }
 0x4df   : > { %3134 = vmatpush2.msra.mxu1 %v3051_v43  ;;  %v3216_v43 = vld [vmem:[#allocation13 + $0x180] sm:$0xff]  ;;  %3278 = vmatprep.subr.mxu0 %v3217_v12 }
 0x4e0   : > { %3135 = vmatprep.subr.mxu1 %v3050_v2  ;;  %v3215_v2 = vld [vmem:[#allocation13 + $0x178] sm:$0xff]  ;;  %3279 = vmatpush2.msra.mxu0 %v3216_v43  ;;  %v3310_v43 = vld [vmem:[%s5568_s14 + $0x8] sm:$0x1f] }
 0x4e1   : > { %3136 = vmatpush2.msra.mxu1 %v3049_v0  ;;  %v3214_v0 = vld [vmem:[#allocation13 + $0x170] sm:$0xff]  ;;  %3280 = vmatprep.subr.mxu0 %v3215_v2 }
 0x4e2   : > { %3137 = vmatprep.subr.mxu1 %v3048_v3  ;;  %v3213_v3 = vld [vmem:[#allocation13 + $0x168] sm:$0xff]  ;;  %3281 = vmatpush2.msra.mxu0 %v3214_v0 }
 0x4e3   : > { %3138 = vmatpush2.msra.mxu1 %v3047_v7  ;;  %v3212_v7 = vld [vmem:[#allocation13 + $0x160] sm:$0xff]  ;;  %3282 = vmatprep.subr.mxu0 %v3213_v3 }
 0x4e4   : > { %3139 = vmatprep.subr.mxu1 %v3046_v8  ;;  %v3211_v8 = vld [vmem:[#allocation13 + $0x158] sm:$0xff]  ;;  %3283 = vmatpush2.msra.mxu0 %v3212_v7 }
 0x4e5   : > { %3140 = vmatpush2.msra.mxu1 %v3045_v57  ;;  %v3210_v57 = vld [vmem:[#allocation13 + $0x150] sm:$0xff]  ;;  %3284 = vmatprep.subr.mxu0 %v3211_v8 }
 0x4e6   : > { %3141 = vmatprep.subr.mxu1 %v3044_v62  ;;  %v3209_v62 = vld [vmem:[#allocation13 + $0x148] sm:$0xff]  ;;  %3285 = vmatpush2.msra.mxu0 %v3210_v57 }
 0x4e7   : > { %3142 = vmatpush2.msra.mxu1 %v3043_v4  ;;  %v3208_v4 = vld [vmem:[#allocation13 + $0x140] sm:$0xff]  ;;  %3286 = vmatprep.subr.mxu0 %v3209_v62 }
 0x4e8   : > { %3143 = vmatprep.subr.mxu1 %v3042_v58  ;;  %v3207_v58 = vld [vmem:[#allocation13 + $0x138] sm:$0xff]  ;;  %3287 = vmatpush2.msra.mxu0 %v3208_v4 }
 0x4e9   : > { %3144 = vmatpush2.msra.mxu1 %v3041_v33  ;;  %v3206_v33 = vld [vmem:[#allocation13 + $0x130] sm:$0xff]  ;;  %3288 = vmatprep.subr.mxu0 %v3207_v58 }
 0x4ea   : > { %3145 = vmatprep.subr.mxu1 %v3040_v26  ;;  %v3205_v26 = vld [vmem:[#allocation13 + $0x128] sm:$0xff]  ;;  %3289 = vmatpush2.msra.mxu0 %v3206_v33 }
 0x4eb   : > { %3146 = vmatpush2.msra.mxu1 %v3039_v47  ;;  %v3204_v47 = vld [vmem:[#allocation13 + $0x120] sm:$0xff]  ;;  %3290 = vmatprep.subr.mxu0 %v3205_v26 }
 0x4ec   : > { %3291 = vmatpush2.msra.mxu0 %v3204_v47 }
 0x4ed   : > { %3292 = vmatprep.subr.mxu0 %v3203_v32 }
 0x4ee   : > { %3293 = vmatpush2.msra.mxu0 %v3202_v15 }
 0x4ef   : > { %3294 = vmatprep.subr.mxu0 %v3201_v50 }
 0x4f0   : > { %3295 = vmatpush2.msra.mxu0 %v3200_v42 }
 0x56c   : > { %v2948_v5 = vpop.f32.mrf.mxu1 }
 0x56d   : > { %v2965_v21 = vmul.f32 %v2958_v13, %v2948_v5  ;;  %v3347_v13 = vrot.slane %v3309_v34, 3 }
 0x56e   : > { %v2950_v27 = vpop.f32.mrf.mxu1 }
 0x56f   : > { %v2980_v37 = vadd.f32 %v2973_v55, %v2965_v21  ;;  %v2966_v1 = vmul.f32 %v2962_v17, %v2950_v27 }
 0x571   : > { %v2981_v18 = vadd.f32 %v2977_v30, %v2966_v1  ;;  %v2982_v22 = vmax.f32 %v2980_v37, 0.0  ;;  %v3348_v30 = vrot.slane %v3310_v43, 3  ;;  %v3353_v37 = vrot.slane %v3309_v34, 4 }
 0x573   : > { %v2983_v35 = vmax.f32 %v2981_v18, 0.0  ;;  %v3354_v18 = vrot.slane %v3310_v43, 4 }
 0x575   : > { %v2986_v41 = vcombine.low %v2982_v22, %v2983_v35  ;;  %3147 = vmatprep.mubr.f32.mxu1 %v2983_v35 }
 0x576   : > { %3148 = vmatmul.mubr.f32.vlgmr.msra.gmra.mxu1 %v2982_v22 }
 0x577   : > { %v2993_v45 = vrot.slane %v2986_v41, %v5495_v6 }
 0x579   : > { %v3000_v60 = vrot.slane %v2993_v45, %v5495_v6 }
 0x57b   : > { %3006 = vst.msk [vmem:[%s652_s27] sm:$0x3] %vm5499_vm1, %v3000_v60 }
 0x636   : > { %v3149_v61 = vpop.f32.mrf.mxu1 }
 0x637   : > { %v3150_v48 = vadd.f32 %v3149_v61, %v3076_v25 }
 0x638   : > { %v3151_v11 = vpop.f32.mrf.mxu1 }
 0x639   : > { %v3152_v39 = vadd.f32 %v3151_v11, %v3080_v16  ;;  %v3166_v19 = vmul.f32 %v3150_v48, %v3150_v48  ;;  %v3156_v24 = vsub.f32 0.0, %v3150_v48 }
 0x63b   : > { %v3167_v56 = vmul.f32 %v3152_v39, %v3152_v39  ;;  %v3157_v20 = vsub.f32 0.0, %v3152_v39  ;;  %v3158_v63 = vmul.f32 1.442695, %v3156_v24 }
 0x63d   : > { %3296 = vmatprep.mubr.f32.mxu0 %v3167_v56  ;;  %v3160_v52 = vmul.f32 1.442695, %v3157_v20  ;;  %4020 = vpow2.f32 %v3158_v63 }
 0x63e   : > { %3297 = vmatmul.mubr.f32.vlgmr.msra.gmra.mxu0 %v3166_v19 }
 0x63f   : > { %4022 = vpow2.f32 %v3160_v52 }
 0x64a   : > { %v4021_v23 = vpop.eup %4020 }
 0x64b   : > { %v3162_v51 = vadd.f32 1.0, %v4021_v23 }
 0x64c   : > { %v4023_v49 = vpop.eup %4022 }
 0x64d   : > { %v3163_v38 = vadd.f32 1.0, %v4023_v49  ;;  %4024 = vrcp.f32 %v3162_v51 }
 0x64f   : > { %4026 = vrcp.f32 %v3163_v38 }
 0x65a   : > { %v4025_v31 = vpop.eup %4024 }
 0x65b   : > { %v3315_v46 = vrot.slane %v4025_v31, 7 }
 0x65c   : > { %v4027_v14 = vpop.eup %4026 }
 0x65d   : > { %v3316_v29 = vrot.slane %v4027_v14, 7  ;;  %v3319_v40 = vmul.f32 %v3315_v46, %v3309_v34 }
 0x65f   : > { %v3320_v0 = vmul.f32 %v3316_v29, %v3310_v43  ;;  %v3323_v57 = vrot.slane %v3319_v40, 1 }
 0x661   : > { %v3324_v33 = vrot.slane %v3320_v0, 1 }
 0x6fe   : > { %v3298_v36 = vpop.f32.mrf.mxu0 }
 0x6ff   : > { %v3303_v59 = vmax.f32 %v3298_v36, 1e-12 }
 0x700   : > { %v3300_v44 = vpop.f32.mrf.mxu0 }
 0x701   : > { %4028 = vrsqrt.f32 %v3303_v59  ;;  %v3304_v9 = vmax.f32 %v3300_v44, 1e-12 }
 0x702   : > { %4030 = vtanh.f32 %v3150_v48 }
 0x703   : > { %4032 = vrsqrt.f32 %v3304_v9 }
 0x704   : > { %4034 = vtanh.f32 %v3152_v39 }
 0x70e   : > { %v4029_v12 = vpop.eup %4028 }
 0x70f   : > { %v4031_v2 = vpop.eup %4030  ;;  %v3307_v3 = vmul.f32 %v4029_v12, %v3150_v48 }
 0x710   : > { %v4033_v7 = vpop.eup %4032  ;;  %v3311_v58 = vmul.f32 %v4031_v2, %v3309_v34 }
 0x711   : > { %v4035_v8 = vpop.eup %4034  ;;  %v3331_v62 = vrot.slane %v3307_v3, 6  ;;  %v3308_v4 = vmul.f32 %v4033_v7, %v3152_v39 }
 0x712   : > { %v3312_v32 = vmul.f32 %v4035_v8, %v3310_v43  ;;  %v3327_v10 = vadd.f32 %v3323_v57, %v3311_v58 }
 0x713   : > { %v3335_v26 = vmul.f32 %v3331_v62, %v3309_v34  ;;  %v3332_v47 = vrot.slane %v3308_v4, 6 }
 0x714   : > { %v3328_v5 = vadd.f32 %v3324_v33, %v3312_v32 }
 0x715   : > { %v3339_v54 = vrot.slane %v3335_v26, 2  ;;  %v3336_v55 = vmul.f32 %v3332_v47, %v3310_v43 }
 0x717   : > { %v3343_v17 = vadd.f32 %v3339_v54, %v3327_v10  ;;  %v3340_v21 = vrot.slane %v3336_v55, 2 }
 0x719   : > { %v3351_v27 = vmul.f32 %v3347_v13, %v3343_v17  ;;  %v3344_v1 = vadd.f32 %v3340_v21, %v3328_v5 }
 0x71b   : > { %v3352_v22 = vmul.f32 %v3348_v30, %v3344_v1  ;;  %v3357_v35 = vadd.f32 %v3353_v37, %v3351_v27 }
 0x71d   : > { %v3358_v41 = vadd.f32 %v3354_v18, %v3352_v22 }
 0x71f   : > { %v3361_v45 = vcombine.low %v3357_v35, %v3358_v41 }
 0x721   : > { %v3368_v60 = vrot.slane %v3361_v45, %v5495_v6 }
 0x723   : > { %v3375_v15 = vrot.slane %v3368_v60, %v5495_v6 }
 0x725   : > { %3377 = vst.msk [vmem:[%s656_s28] sm:$0x3] %vm5499_vm1, %v3375_v15 }
 0x726 PF: > { %s5600_s20 = sld [smem:[#allocation18_spill]]  ;;  %s5601_s21 = smov %s4252_s22 }
 0x727   : > { %s5602_s22 = smov %s5604_s30 }
 0x72c   : > { %s31_s23 = sadd.s32 1, %s5600_s20  }
 0x72d   : > { %p28_p0 = scmp.ge.s32.totalorder %s31_s23, 4  }
 0x72f   :  { %30 = sbr.rel (!%p28_p0) target bundleno = 10 (0xa), region = 165 }
 0x734   :  { %3411 = vsyncpa [#allocation4], 1 }
 0x735   :  { %3413 = vsyncpa [#allocation4 + $0x1], 1 }
 0x736   :  { %3414 = vsyncpa [#allocation6], 1 }
 0x737   :  { %3415 = vsyncpa [#allocation9], 1 }
 0x738   :  { %3416 = vsyncpa [#allocation12], 1 }

</bundles_post_ra>
